<compile_context>
chip_gen: v7x
topology: tpu7x:2x2x1
jax: 0.10.0
libtpu: 0.0.40
codegen_flags: <defaults>
</compile_context>

<pallas_src>
import functools

import jax
import jax.numpy as jnp
from jax import lax
from jax.experimental import pallas as pl
from jax.experimental.pallas import tpu as pltpu


def _round_up(x, m):
    return ((x + m - 1) // m) * m


# --------------------------- fused GRU + FC kernel ---------------------------
def _fused_gru_fc_kernel(*args, num_layers, hidden_pad, seq_len, batch_pad):
    """All GRU layers + final Linear in a single invocation (no grid).

    args = (x_flat,                                  # (T*Bp, Dp)  time-major, batch-padded
            [w_ih, w_hh, b_gi, b_hn] * num_layers,   # gate-slab packed, lane-padded
            w_fc, b_fc,                              # (Hp, Cp), (1, Cp)
            o_ref,                                   # (Bp, Cp) output
            gi_buf, y_buf, h_buf)                    # VMEM scratch
    """
    Hp, T, Bp = hidden_pad, seq_len, batch_pad
    n_in = 1 + 4 * num_layers + 2

    x_ref = args[0]
    layer_refs = [args[1 + 4 * l: 5 + 4 * l] for l in range(num_layers)]
    w_fc_ref, b_fc_ref = args[n_in - 2], args[n_in - 1]
    o_ref = args[n_in]
    gi_buf, y_buf, h_buf = args[n_in + 1], args[n_in + 2], args[n_in + 3]

    # TODO(synk): for realistic L/H, stack per-layer weights behind a grid axis
    # (BlockSpec index_map lambda l: (l, 0, 0), "arbitrary") so the next layer's
    # weight DMA overlaps this layer's recurrence; on v7x (64 MiB VMEM) also
    # chunk gi_buf over time for long sequences.  Not needed at these shapes.
    cur2 = x_ref[...]                                     # (T*Bp, D_in of layer 0)

    for l in range(num_layers):
        w_ih_ref, w_hh_ref, b_gi_ref, b_hn_ref = layer_refs[l]
        is_last = (l == num_layers - 1)

        # Hoisted input projection: ONE matmul over all timesteps.
        #   (T*Bp, D_in) @ (D_in, G) + (1, G), gate-concatenated (r|z|n),
        #   each gate occupying its own lane-aligned Hp-wide slab.
        gi_buf[...] = (jnp.dot(cur2, w_ih_ref[...],
                               preferred_element_type=jnp.float32)
                       + b_gi_ref[...])

        # Loop-invariant values hoisted out of the recurrence.
        # TODO(synk): optionally pin W_hh in the MXU across the time loop via
        # pltpu.matmul_push_rhs / matmul_acc_lhs / matmul_pop; relying on Mosaic
        # hoisting the loop-invariant RHS push for now.
        w_hh = w_hh_ref[...]                              # (Hp, G)
        b_hn_b = jnp.broadcast_to(b_hn_ref[...], (Bp, Hp))  # hoisted broadcast
        h_buf[...] = jnp.zeros((Bp, Hp), jnp.float32)

        def step(t, carry):
            # Bp is a multiple of 8, so t*Bp is sublane-tile aligned: these are
            # full-tile, unmasked VMEM accesses (the review's (T, Bp, .) intent).
            toff = pl.multiple_of(t * Bp, 8)
            h_prev = h_buf[...]                                        # (Bp, Hp)
            gi = gi_buf[pl.ds(toff, Bp), :]                            # (Bp, G)
            gh = jnp.dot(h_prev, w_hh,
                         preferred_element_type=jnp.float32)           # (Bp, G)
            # Lane-aligned gate slabs: slices at multiples of Hp (=128k) are free.
            r = jax.nn.sigmoid(gi[:, 0:Hp] + gh[:, 0:Hp])
            z = jax.nn.sigmoid(gi[:, Hp:2 * Hp] + gh[:, Hp:2 * Hp])
            n = jnp.tanh(gi[:, 2 * Hp:3 * Hp] + r * (gh[:, 2 * Hp:3 * Hp] + b_hn_b))
            h_new = n + z * (h_prev - n)      # == (1 - z) * n + z * h_prev
            h_buf[...] = h_new
            if not is_last:                   # last layer: only h_n is needed
                y_buf[pl.ds(toff, Bp), :] = h_new
            return carry

        # Moderately-unrolled serial time loop (LLO visibility without
        # inflating live ranges for large T).
        lax.fori_loop(0, T, step, 0, unroll=min(8, T))

        if not is_last:
            cur2 = y_buf[...]                             # next layer's input (T*Bp, Hp)

    # Fused final Linear on h_n[-1]: (Bp, Hp) @ (Hp, Cp) + b  (lane-dense Cp=128k).
    o_ref[...] = (jnp.dot(h_buf[...], w_fc_ref[...],
                          preferred_element_type=jnp.float32)
                  + b_fc_ref[...])


# ----------------------------- wrapper / packing -----------------------------
def pack_gru_params(w_ih_pt, w_hh_pt, b_ih_pt, b_hh_pt, d_in_pad):
    """PyTorch nn.GRU layer params -> gate-slab packed, lane-padded, bias-folded.

    Inputs (PyTorch layout, gate order r, z, n):
      w_ih_pt: (3H, D_in), w_hh_pt: (3H, H), b_ih_pt: (3H,), b_hh_pt: (3H,)
    Returns (all float32, zero-padded):
      w_ih: (d_in_pad, G), w_hh: (Hp, G), b_gi: (1, G) = b_ih + [b_hr, b_hz, 0],
      b_hn: (1, Hp);  Hp = round_up(H, 128), G = 3*Hp (one 128-aligned slab/gate).
    Padded hidden columns stay exactly zero through the recurrence, so the
    padding is semantics-preserving.
    """
    threeH, d_in = w_ih_pt.shape
    H = threeH // 3
    Hp = _round_up(H, 128)
    G = 3 * Hp
    w_ih = jnp.zeros((d_in_pad, G), jnp.float32)
    w_hh = jnp.zeros((Hp, G), jnp.float32)
    b_gi = jnp.zeros((1, G), jnp.float32)
    for g in range(3):                        # r, z, n -> slabs [g*Hp, g*Hp+H)
        w_ih = w_ih.at[:d_in, g * Hp:g * Hp + H].set(w_ih_pt[g * H:(g + 1) * H, :].T)
        w_hh = w_hh.at[:H, g * Hp:g * Hp + H].set(w_hh_pt[g * H:(g + 1) * H, :].T)
        b_gi = b_gi.at[0, g * Hp:g * Hp + H].set(b_ih_pt[g * H:(g + 1) * H])
    b_gi = b_gi.at[0, 0:H].add(b_hh_pt[0:H])             # fold b_hr
    b_gi = b_gi.at[0, Hp:Hp + H].add(b_hh_pt[H:2 * H])   # fold b_hz
    b_hn = jnp.zeros((1, Hp), jnp.float32).at[0, :H].set(b_hh_pt[2 * H:3 * H])
    return w_ih, w_hh, b_gi, b_hn


@functools.partial(jax.jit, static_argnames=("num_classes",))
def gru_model_forward(x, packed_layers, w_fc_p, b_fc_p, *, num_classes):
    """x: (B, T, input_size) batch-first, like the PyTorch module. Returns (B, C)."""
    B, T, D = x.shape
    Dp = packed_layers[0][0].shape[0]         # layer-0 w_ih: (Dp, G)
    Hp = packed_layers[0][1].shape[0]         # w_hh: (Hp, G)
    G = packed_layers[0][1].shape[1]
    Cp = w_fc_p.shape[1]
    Bp = _round_up(B, 8)                      # sublane tile for f32
    num_layers = len(packed_layers)

    # One-time layout change in plain JAX: time-major, batch padded to the
    # sublane tile, flattened to (T*Bp, Dp). Padded batch rows never mix with
    # real rows (all matmuls/gates are row-wise) and are sliced off below.
    x_t = jnp.transpose(x, (1, 0, 2))                                   # (T, B, D)
    x_pad = jnp.zeros((T, Bp, Dp), jnp.float32).at[:, :B, :D].set(x_t)
    x_flat = x_pad.reshape(T * Bp, Dp)

    flat_params = [p for layer in packed_layers for p in layer]

    # TODO(synk): bf16 weights/activations (f32 accum) and a 2-TensorCore batch
    # split would help at large H / B on v6e/v7x; skipped at these tiny shapes
    # to keep exact f32 semantics.
    kernel = functools.partial(_fused_gru_fc_kernel, num_layers=num_layers,
                               hidden_pad=Hp, seq_len=T, batch_pad=Bp)
    out_p = pl.pallas_call(
        kernel,
        out_shape=jax.ShapeDtypeStruct((Bp, Cp), jnp.float32),
        scratch_shapes=[
            pltpu.VMEM((T * Bp, G), jnp.float32),   # gi_buf: hoisted input projection
            pltpu.VMEM((T * Bp, Hp), jnp.float32),  # y_buf: inter-layer activations
            pltpu.VMEM((Bp, Hp), jnp.float32),      # h_buf: recurrent state
        ],
    )(x_flat, *flat_params, w_fc_p, b_fc_p)
    return out_p[:B, :num_classes]


# ----------------------------- pure-JAX reference ----------------------------
def gru_model_ref(x, torch_layers, w_fc, b_fc):
    """Reference with exact nn.GRU semantics on the raw (PyTorch-layout) weights."""
    B, T, _ = x.shape
    inp = x
    for (w_ih, w_hh, b_ih, b_hh) in torch_layers:
        H = w_hh.shape[1]
        h = jnp.zeros((B, H), jnp.float32)
        ys = []
        for t in range(T):
            x_t = inp[:, t, :]
            gi = x_t @ w_ih.T + b_ih
            gh = h @ w_hh.T + b_hh
            r = jax.nn.sigmoid(gi[:, :H] + gh[:, :H])
            z = jax.nn.sigmoid(gi[:, H:2 * H] + gh[:, H:2 * H])
            n = jnp.tanh(gi[:, 2 * H:] + r * gh[:, 2 * H:])
            h = (1.0 - z) * n + z * h
            ys.append(h)
        inp = jnp.stack(ys, axis=1)
    return inp[:, -1, :] @ w_fc + b_fc


# ---------------------------------- main -------------------------------------
if __name__ == "__main__":
    # Shapes implied by the module: (batch, seq, input_size) -> (batch, num_classes)
    B, T = 2, 8
    input_size, hidden_size, num_layers, num_classes = 16, 32, 2, 4

    key = jax.random.PRNGKey(0)
    k = 1.0 / (hidden_size ** 0.5)

    Hp = _round_up(hidden_size, 128)
    Cp = _round_up(num_classes, 128)
    Dp0 = _round_up(input_size, 8)

    torch_layers = []      # PyTorch-layout params (for the reference)
    packed_layers = []     # packed / padded params (for the kernel)
    d_in, d_in_pad = input_size, Dp0
    for layer in range(num_layers):
        key, k1, k2, k3, k4 = jax.random.split(key, 5)
        w_ih = jax.random.uniform(k1, (3 * hidden_size, d_in), jnp.float32, -k, k)
        w_hh = jax.random.uniform(k2, (3 * hidden_size, hidden_size), jnp.float32, -k, k)
        b_ih = jax.random.uniform(k3, (3 * hidden_size,), jnp.float32, -k, k)
        b_hh = jax.random.uniform(k4, (3 * hidden_size,), jnp.float32, -k, k)
        torch_layers.append((w_ih, w_hh, b_ih, b_hh))
        packed_layers.append(pack_gru_params(w_ih, w_hh, b_ih, b_hh, d_in_pad))
        d_in, d_in_pad = hidden_size, Hp

    key, k5, k6, kx = jax.random.split(key, 4)
    w_fc = jax.random.uniform(k5, (hidden_size, num_classes), jnp.float32, -k, k)  # = W_fc^T
    b_fc = jax.random.uniform(k6, (num_classes,), jnp.float32, -k, k)
    # Lane-padded classifier (dense output store); sliced back outside the kernel.
    w_fc_p = jnp.zeros((Hp, Cp), jnp.float32).at[:hidden_size, :num_classes].set(w_fc)
    b_fc_p = jnp.zeros((1, Cp), jnp.float32).at[0, :num_classes].set(b_fc)

    x = jax.random.normal(kx, (B, T, input_size), jnp.float32)

    out = gru_model_forward(x, tuple(packed_layers), w_fc_p, b_fc_p,
                            num_classes=num_classes)
    out = jax.block_until_ready(out)

    ref = gru_model_ref(x, torch_layers, w_fc, b_fc)
    assert out.shape == (B, num_classes), out.shape
    assert jnp.allclose(out, ref, atol=1e-5, rtol=1e-5), (out, ref)

    print("KERNEL_OK")
</pallas_src>

<mosaic_0001>
module attributes {stable_mosaic.version = 11 : i64} {
  func.func @_fused_gru_fc_kernel(%arg0: memref<64x16xf32, #tpu.memory_space<vmem>>, %arg1: memref<16x384xf32, #tpu.memory_space<vmem>>, %arg2: memref<128x384xf32, #tpu.memory_space<vmem>>, %arg3: memref<1x384xf32, #tpu.memory_space<vmem>>, %arg4: memref<1x128xf32, #tpu.memory_space<vmem>>, %arg5: memref<128x384xf32, #tpu.memory_space<vmem>>, %arg6: memref<128x384xf32, #tpu.memory_space<vmem>>, %arg7: memref<1x384xf32, #tpu.memory_space<vmem>>, %arg8: memref<1x128xf32, #tpu.memory_space<vmem>>, %arg9: memref<128x128xf32, #tpu.memory_space<vmem>>, %arg10: memref<1x128xf32, #tpu.memory_space<vmem>>, %arg11: memref<8x128xf32, #tpu.memory_space<vmem>>, %arg12: memref<64x384xf32, #tpu.memory_space<vmem>>, %arg13: memref<64x128xf32, #tpu.memory_space<vmem>>, %arg14: memref<8x128xf32, #tpu.memory_space<vmem>>) attributes {dimension_semantics = [], scalar_prefetch = 0 : i64, scratch_operands = 3 : i64, tpu.core_type = #tpu.core_type<tc>} {
    %c0 = arith.constant 0 : index
    %c0_0 = arith.constant 0 : index
    %0 = vector.load %arg0[%c0, %c0_0] : memref<64x16xf32, #tpu.memory_space<vmem>>, vector<64x16xf32>
    %c0_1 = arith.constant 0 : index
    %c0_2 = arith.constant 0 : index
    %1 = vector.load %arg1[%c0_1, %c0_2] : memref<16x384xf32, #tpu.memory_space<vmem>>, vector<16x384xf32>
    %cst = arith.constant dense<0.000000e+00> : vector<64x384xf32>
    %2 = tpu.matmul %0, %1, %cst {dimension_numbers = #tpu.dot_dimension_numbers<[1], [0], [0], [1], [0, 0, 1, 1], [], []>} : vector<64x16xf32>, vector<16x384xf32>, vector<64x384xf32> -> vector<64x384xf32>
    %c0_3 = arith.constant 0 : index
    %c0_4 = arith.constant 0 : index
    %3 = vector.load %arg3[%c0_3, %c0_4] : memref<1x384xf32, #tpu.memory_space<vmem>>, vector<1x384xf32>
    %4 = vector.broadcast %3 : vector<1x384xf32> to vector<64x384xf32>
    %5 = arith.addf %2, %4 : vector<64x384xf32>
    %c0_5 = arith.constant 0 : index
    %c0_6 = arith.constant 0 : index
    %6 = vector.load %arg12[%c0_5, %c0_6] : memref<64x384xf32, #tpu.memory_space<vmem>>, vector<64x384xf32>
    tpu.vector_store %arg12[%c0_5, %c0_6], %5 {strides = array<i32>} : memref<64x384xf32, #tpu.memory_space<vmem>>, vector<64x384xf32>,
    %c0_7 = arith.constant 0 : index
    %c0_8 = arith.constant 0 : index
    %7 = vector.load %arg2[%c0_7, %c0_8] : memref<128x384xf32, #tpu.memory_space<vmem>>, vector<128x384xf32>
    %c0_9 = arith.constant 0 : index
    %c0_10 = arith.constant 0 : index
    %8 = vector.load %arg4[%c0_9, %c0_10] : memref<1x128xf32, #tpu.memory_space<vmem>>, vector<1x128xf32>
    %9 = vector.shape_cast %8 : vector<1x128xf32> to vector<1x128xf32>
    %10 = vector.broadcast %9 : vector<1x128xf32> to vector<8x128xf32>
    %cst_11 = arith.constant 0.000000e+00 : f32
    %11 = vector.broadcast %cst_11 : f32 to vector<8x128xf32>
    %c0_12 = arith.constant 0 : index
    %c0_13 = arith.constant 0 : index
    %12 = vector.load %arg14[%c0_12, %c0_13] : memref<8x128xf32, #tpu.memory_space<vmem>>, vector<8x128xf32>
    tpu.vector_store %arg14[%c0_12, %c0_13], %11 {strides = array<i32>} : memref<8x128xf32, #tpu.memory_space<vmem>>, vector<8x128xf32>,
    %c0_i32 = arith.constant 0 : i32
    %c8_i32 = arith.constant 8 : i32
    %13 = arith.muli %c0_i32, %c8_i32 : i32
    %14 = tpu.assume_multiple %13, 8 : i32
    %c0_14 = arith.constant 0 : index
    %c0_15 = arith.constant 0 : index
    %15 = vector.load %arg14[%c0_14, %c0_15] : memref<8x128xf32, #tpu.memory_space<vmem>>, vector<8x128xf32>
    %16 = arith.index_cast %14 : i32 to index
    %c0_16 = arith.constant 0 : index
    %17 = vector.load %arg12[%16, %c0_16] : memref<64x384xf32, #tpu.memory_space<vmem>>, vector<8x384xf32>
    %cst_17 = arith.constant dense<0.000000e+00> : vector<8x384xf32>
    %18 = tpu.matmul %15, %7, %cst_17 {dimension_numbers = #tpu.dot_dimension_numbers<[1], [0], [0], [1], [0, 0, 1, 1], [], []>} : vector<8x128xf32>, vector<128x384xf32>, vector<8x384xf32> -> vector<8x384xf32>
    %19 = vector.extract_strided_slice %17 {offsets = [0, 0], sizes = [8, 128], strides = [1, 1]} : vector<8x384xf32> to vector<8x128xf32>
    %20 = vector.extract_strided_slice %18 {offsets = [0, 0], sizes = [8, 128], strides = [1, 1]} : vector<8x384xf32> to vector<8x128xf32>
    %21 = arith.addf %19, %20 : vector<8x128xf32>
    %22 = arith.negf %21 : vector<8x128xf32>
    %23 = math.exp %22 : vector<8x128xf32>
    %cst_18 = arith.constant 1.000000e+00 : f32
    %24 = vector.broadcast %cst_18 : f32 to vector<8x128xf32>
    %25 = arith.addf %24, %23 : vector<8x128xf32>
    %26 = arith.divf %24, %25 : vector<8x128xf32>
    %27 = vector.extract_strided_slice %17 {offsets = [0, 128], sizes = [8, 128], strides = [1, 1]} : vector<8x384xf32> to vector<8x128xf32>
    %28 = vector.extract_strided_slice %18 {offsets = [0, 128], sizes = [8, 128], strides = [1, 1]} : vector<8x384xf32> to vector<8x128xf32>
    %29 = arith.addf %27, %28 : vector<8x128xf32>
    %30 = arith.negf %29 : vector<8x128xf32>
    %31 = math.exp %30 : vector<8x128xf32>
    %cst_19 = arith.constant 1.000000e+00 : f32
    %32 = vector.broadcast %cst_19 : f32 to vector<8x128xf32>
    %33 = arith.addf %32, %31 : vector<8x128xf32>
    %34 = arith.divf %32, %33 : vector<8x128xf32>
    %35 = vector.extract_strided_slice %17 {offsets = [0, 256], sizes = [8, 128], strides = [1, 1]} : vector<8x384xf32> to vector<8x128xf32>
    %36 = vector.extract_strided_slice %18 {offsets = [0, 256], sizes = [8, 128], strides = [1, 1]} : vector<8x384xf32> to vector<8x128xf32>
    %37 = arith.addf %36, %10 : vector<8x128xf32>
    %38 = arith.mulf %26, %37 : vector<8x128xf32>
    %39 = arith.addf %35, %38 : vector<8x128xf32>
    %40 = math.tanh %39 : vector<8x128xf32>
    %41 = arith.subf %15, %40 : vector<8x128xf32>
    %42 = arith.mulf %34, %41 : vector<8x128xf32>
    %43 = arith.addf %40, %42 : vector<8x128xf32>
    %c0_20 = arith.constant 0 : index
    %c0_21 = arith.constant 0 : index
    %44 = vector.load %arg14[%c0_20, %c0_21] : memref<8x128xf32, #tpu.memory_space<vmem>>, vector<8x128xf32>
    tpu.vector_store %arg14[%c0_20, %c0_21], %43 {strides = array<i32>} : memref<8x128xf32, #tpu.memory_space<vmem>>, vector<8x128xf32>,
    %45 = arith.index_cast %14 : i32 to index
    %c0_22 = arith.constant 0 : index
    %46 = vector.load %arg13[%45, %c0_22] : memref<64x128xf32, #tpu.memory_space<vmem>>, vector<8x128xf32>
    tpu.vector_store %arg13[%45, %c0_22], %43 {strides = array<i32>} : memref<64x128xf32, #tpu.memory_space<vmem>>, vector<8x128xf32>,
    %c1_i32 = arith.constant 1 : i32
    %c8_i32_23 = arith.constant 8 : i32
    %47 = arith.muli %c1_i32, %c8_i32_23 : i32
    %48 = tpu.assume_multiple %47, 8 : i32
    %c0_24 = arith.constant 0 : index
    %c0_25 = arith.constant 0 : index
    %49 = vector.load %arg14[%c0_24, %c0_25] : memref<8x128xf32, #tpu.memory_space<vmem>>, vector<8x128xf32>
    %50 = arith.index_cast %48 : i32 to index
    %c0_26 = arith.constant 0 : index
    %51 = vector.load %arg12[%50, %c0_26] : memref<64x384xf32, #tpu.memory_space<vmem>>, vector<8x384xf32>
    %cst_27 = arith.constant dense<0.000000e+00> : vector<8x384xf32>
    %52 = tpu.matmul %49, %7, %cst_27 {dimension_numbers = #tpu.dot_dimension_numbers<[1], [0], [0], [1], [0, 0, 1, 1], [], []>} : vector<8x128xf32>, vector<128x384xf32>, vector<8x384xf32> -> vector<8x384xf32>
    %53 = vector.extract_strided_slice %51 {offsets = [0, 0], sizes = [8, 128], strides = [1, 1]} : vector<8x384xf32> to vector<8x128xf32>
    %54 = vector.extract_strided_slice %52 {offsets = [0, 0], sizes = [8, 128], strides = [1, 1]} : vector<8x384xf32> to vector<8x128xf32>
    %55 = arith.addf %53, %54 : vector<8x128xf32>
    %56 = arith.negf %55 : vector<8x128xf32>
    %57 = math.exp %56 : vector<8x128xf32>
    %cst_28 = arith.constant 1.000000e+00 : f32
    %58 = vector.broadcast %cst_28 : f32 to vector<8x128xf32>
    %59 = arith.addf %58, %57 : vector<8x128xf32>
    %60 = arith.divf %58, %59 : vector<8x128xf32>
    %61 = vector.extract_strided_slice %51 {offsets = [0, 128], sizes = [8, 128], strides = [1, 1]} : vector<8x384xf32> to vector<8x128xf32>
    %62 = vector.extract_strided_slice %52 {offsets = [0, 128], sizes = [8, 128], strides = [1, 1]} : vector<8x384xf32> to vector<8x128xf32>
    %63 = arith.addf %61, %62 : vector<8x128xf32>
    %64 = arith.negf %63 : vector<8x128xf32>
    %65 = math.exp %64 : vector<8x128xf32>
    %cst_29 = arith.constant 1.000000e+00 : f32
    %66 = vector.broadcast %cst_29 : f32 to vector<8x128xf32>
    %67 = arith.addf %66, %65 : vector<8x128xf32>
    %68 = arith.divf %66, %67 : vector<8x128xf32>
    %69 = vector.extract_strided_slice %51 {offsets = [0, 256], sizes = [8, 128], strides = [1, 1]} : vector<8x384xf32> to vector<8x128xf32>
    %70 = vector.extract_strided_slice %52 {offsets = [0, 256], sizes = [8, 128], strides = [1, 1]} : vector<8x384xf32> to vector<8x128xf32>
    %71 = arith.addf %70, %10 : vector<8x128xf32>
    %72 = arith.mulf %60, %71 : vector<8x128xf32>
    %73 = arith.addf %69, %72 : vector<8x128xf32>
    %74 = math.tanh %73 : vector<8x128xf32>
    %75 = arith.subf %49, %74 : vector<8x128xf32>
    %76 = arith.mulf %68, %75 : vector<8x128xf32>
    %77 = arith.addf %74, %76 : vector<8x128xf32>
    %c0_30 = arith.constant 0 : index
    %c0_31 = arith.constant 0 : index
    %78 = vector.load %arg14[%c0_30, %c0_31] : memref<8x128xf32, #tpu.memory_space<vmem>>, vector<8x128xf32>
    tpu.vector_store %arg14[%c0_30, %c0_31], %77 {strides = array<i32>} : memref<8x128xf32, #tpu.memory_space<vmem>>, vector<8x128xf32>,
    %79 = arith.index_cast %48 : i32 to index
    %c0_32 = arith.constant 0 : index
    %80 = vector.load %arg13[%79, %c0_32] : memref<64x128xf32, #tpu.memory_space<vmem>>, vector<8x128xf32>
    tpu.vector_store %arg13[%79, %c0_32], %77 {strides = array<i32>} : memref<64x128xf32, #tpu.memory_space<vmem>>, vector<8x128xf32>,
    %c2_i32 = arith.constant 2 : i32
    %c8_i32_33 = arith.constant 8 : i32
    %81 = arith.muli %c2_i32, %c8_i32_33 : i32
    %82 = tpu.assume_multiple %81, 8 : i32
    %c0_34 = arith.constant 0 : index
    %c0_35 = arith.constant 0 : index
    %83 = vector.load %arg14[%c0_34, %c0_35] : memref<8x128xf32, #tpu.memory_space<vmem>>, vector<8x128xf32>
    %84 = arith.index_cast %82 : i32 to index
    %c0_36 = arith.constant 0 : index
    %85 = vector.load %arg12[%84, %c0_36] : memref<64x384xf32, #tpu.memory_space<vmem>>, vector<8x384xf32>
    %cst_37 = arith.constant dense<0.000000e+00> : vector<8x384xf32>
    %86 = tpu.matmul %83, %7, %cst_37 {dimension_numbers = #tpu.dot_dimension_numbers<[1], [0], [0], [1], [0, 0, 1, 1], [], []>} : vector<8x128xf32>, vector<128x384xf32>, vector<8x384xf32> -> vector<8x384xf32>
    %87 = vector.extract_strided_slice %85 {offsets = [0, 0], sizes = [8, 128], strides = [1, 1]} : vector<8x384xf32> to vector<8x128xf32>
    %88 = vector.extract_strided_slice %86 {offsets = [0, 0], sizes = [8, 128], strides = [1, 1]} : vector<8x384xf32> to vector<8x128xf32>
    %89 = arith.addf %87, %88 : vector<8x128xf32>
    %90 = arith.negf %89 : vector<8x128xf32>
    %91 = math.exp %90 : vector<8x128xf32>
    %cst_38 = arith.constant 1.000000e+00 : f32
    %92 = vector.broadcast %cst_38 : f32 to vector<8x128xf32>
    %93 = arith.addf %92, %91 : vector<8x128xf32>
    %94 = arith.divf %92, %93 : vector<8x128xf32>
    %95 = vector.extract_strided_slice %85 {offsets = [0, 128], sizes = [8, 128], strides = [1, 1]} : vector<8x384xf32> to vector<8x128xf32>
    %96 = vector.extract_strided_slice %86 {offsets = [0, 128], sizes = [8, 128], strides = [1, 1]} : vector<8x384xf32> to vector<8x128xf32>
    %97 = arith.addf %95, %96 : vector<8x128xf32>
    %98 = arith.negf %97 : vector<8x128xf32>
    %99 = math.exp %98 : vector<8x128xf32>
    %cst_39 = arith.constant 1.000000e+00 : f32
    %100 = vector.broadcast %cst_39 : f32 to vector<8x128xf32>
    %101 = arith.addf %100, %99 : vector<8x128xf32>
    %102 = arith.divf %100, %101 : vector<8x128xf32>
    %103 = vector.extract_strided_slice %85 {offsets = [0, 256], sizes = [8, 128], strides = [1, 1]} : vector<8x384xf32> to vector<8x128xf32>
    %104 = vector.extract_strided_slice %86 {offsets = [0, 256], sizes = [8, 128], strides = [1, 1]} : vector<8x384xf32> to vector<8x128xf32>
    %105 = arith.addf %104, %10 : vector<8x128xf32>
    %106 = arith.mulf %94, %105 : vector<8x128xf32>
    %107 = arith.addf %103, %106 : vector<8x128xf32>
    %108 = math.tanh %107 : vector<8x128xf32>
    %109 = arith.subf %83, %108 : vector<8x128xf32>
    %110 = arith.mulf %102, %109 : vector<8x128xf32>
    %111 = arith.addf %108, %110 : vector<8x128xf32>
    %c0_40 = arith.constant 0 : index
    %c0_41 = arith.constant 0 : index
    %112 = vector.load %arg14[%c0_40, %c0_41] : memref<8x128xf32, #tpu.memory_space<vmem>>, vector<8x128xf32>
    tpu.vector_store %arg14[%c0_40, %c0_41], %111 {strides = array<i32>} : memref<8x128xf32, #tpu.memory_space<vmem>>, vector<8x128xf32>,
    %113 = arith.index_cast %82 : i32 to index
    %c0_42 = arith.constant 0 : index
    %114 = vector.load %arg13[%113, %c0_42] : memref<64x128xf32, #tpu.memory_space<vmem>>, vector<8x128xf32>
    tpu.vector_store %arg13[%113, %c0_42], %111 {strides = array<i32>} : memref<64x128xf32, #tpu.memory_space<vmem>>, vector<8x128xf32>,
    %c3_i32 = arith.constant 3 : i32
    %c8_i32_43 = arith.constant 8 : i32
    %115 = arith.muli %c3_i32, %c8_i32_43 : i32
    %116 = tpu.assume_multiple %115, 8 : i32
    %c0_44 = arith.constant 0 : index
    %c0_45 = arith.constant 0 : index
    %117 = vector.load %arg14[%c0_44, %c0_45] : memref<8x128xf32, #tpu.memory_space<vmem>>, vector<8x128xf32>
    %118 = arith.index_cast %116 : i32 to index
    %c0_46 = arith.constant 0 : index
    %119 = vector.load %arg12[%118, %c0_46] : memref<64x384xf32, #tpu.memory_space<vmem>>, vector<8x384xf32>
    %cst_47 = arith.constant dense<0.000000e+00> : vector<8x384xf32>
    %120 = tpu.matmul %117, %7, %cst_47 {dimension_numbers = #tpu.dot_dimension_numbers<[1], [0], [0], [1], [0, 0, 1, 1], [], []>} : vector<8x128xf32>, vector<128x384xf32>, vector<8x384xf32> -> vector<8x384xf32>
    %121 = vector.extract_strided_slice %119 {offsets = [0, 0], sizes = [8, 128], strides = [1, 1]} : vector<8x384xf32> to vector<8x128xf32>
    %122 = vector.extract_strided_slice %120 {offsets = [0, 0], sizes = [8, 128], strides = [1, 1]} : vector<8x384xf32> to vector<8x128xf32>
    %123 = arith.addf %121, %122 : vector<8x128xf32>
    %124 = arith.negf %123 : vector<8x128xf32>
    %125 = math.exp %124 : vector<8x128xf32>
    %cst_48 = arith.constant 1.000000e+00 : f32
    %126 = vector.broadcast %cst_48 : f32 to vector<8x128xf32>
    %127 = arith.addf %126, %125 : vector<8x128xf32>
    %128 = arith.divf %126, %127 : vector<8x128xf32>
    %129 = vector.extract_strided_slice %119 {offsets = [0, 128], sizes = [8, 128], strides = [1, 1]} : vector<8x384xf32> to vector<8x128xf32>
    %130 = vector.extract_strided_slice %120 {offsets = [0, 128], sizes = [8, 128], strides = [1, 1]} : vector<8x384xf32> to vector<8x128xf32>
    %131 = arith.addf %129, %130 : vector<8x128xf32>
    %132 = arith.negf %131 : vector<8x128xf32>
    %133 = math.exp %132 : vector<8x128xf32>
    %cst_49 = arith.constant 1.000000e+00 : f32
    %134 = vector.broadcast %cst_49 : f32 to vector<8x128xf32>
    %135 = arith.addf %134, %133 : vector<8x128xf32>
    %136 = arith.divf %134, %135 : vector<8x128xf32>
    %137 = vector.extract_strided_slice %119 {offsets = [0, 256], sizes = [8, 128], strides = [1, 1]} : vector<8x384xf32> to vector<8x128xf32>
    %138 = vector.extract_strided_slice %120 {offsets = [0, 256], sizes = [8, 128], strides = [1, 1]} : vector<8x384xf32> to vector<8x128xf32>
    %139 = arith.addf %138, %10 : vector<8x128xf32>
    %140 = arith.mulf %128, %139 : vector<8x128xf32>
    %141 = arith.addf %137, %140 : vector<8x128xf32>
    %142 = math.tanh %141 : vector<8x128xf32>
    %143 = arith.subf %117, %142 : vector<8x128xf32>
    %144 = arith.mulf %136, %143 : vector<8x128xf32>
    %145 = arith.addf %142, %144 : vector<8x128xf32>
    %c0_50 = arith.constant 0 : index
    %c0_51 = arith.constant 0 : index
    %146 = vector.load %arg14[%c0_50, %c0_51] : memref<8x128xf32, #tpu.memory_space<vmem>>, vector<8x128xf32>
    tpu.vector_store %arg14[%c0_50, %c0_51], %145 {strides = array<i32>} : memref<8x128xf32, #tpu.memory_space<vmem>>, vector<8x128xf32>,
    %147 = arith.index_cast %116 : i32 to index
    %c0_52 = arith.constant 0 : index
    %148 = vector.load %arg13[%147, %c0_52] : memref<64x128xf32, #tpu.memory_space<vmem>>, vector<8x128xf32>
    tpu.vector_store %arg13[%147, %c0_52], %145 {strides = array<i32>} : memref<64x128xf32, #tpu.memory_space<vmem>>, vector<8x128xf32>,
    %c4_i32 = arith.constant 4 : i32
    %c8_i32_53 = arith.constant 8 : i32
    %149 = arith.muli %c4_i32, %c8_i32_53 : i32
    %150 = tpu.assume_multiple %149, 8 : i32
    %c0_54 = arith.constant 0 : index
    %c0_55 = arith.constant 0 : index
    %151 = vector.load %arg14[%c0_54, %c0_55] : memref<8x128xf32, #tpu.memory_space<vmem>>, vector<8x128xf32>
    %152 = arith.index_cast %150 : i32 to index
    %c0_56 = arith.constant 0 : index
    %153 = vector.load %arg12[%152, %c0_56] : memref<64x384xf32, #tpu.memory_space<vmem>>, vector<8x384xf32>
    %cst_57 = arith.constant dense<0.000000e+00> : vector<8x384xf32>
    %154 = tpu.matmul %151, %7, %cst_57 {dimension_numbers = #tpu.dot_dimension_numbers<[1], [0], [0], [1], [0, 0, 1, 1], [], []>} : vector<8x128xf32>, vector<128x384xf32>, vector<8x384xf32> -> vector<8x384xf32>
    %155 = vector.extract_strided_slice %153 {offsets = [0, 0], sizes = [8, 128], strides = [1, 1]} : vector<8x384xf32> to vector<8x128xf32>
    %156 = vector.extract_strided_slice %154 {offsets = [0, 0], sizes = [8, 128], strides = [1, 1]} : vector<8x384xf32> to vector<8x128xf32>
    %157 = arith.addf %155, %156 : vector<8x128xf32>
    %158 = arith.negf %157 : vector<8x128xf32>
    %159 = math.exp %158 : vector<8x128xf32>
    %cst_58 = arith.constant 1.000000e+00 : f32
    %160 = vector.broadcast %cst_58 : f32 to vector<8x128xf32>
    %161 = arith.addf %160, %159 : vector<8x128xf32>
    %162 = arith.divf %160, %161 : vector<8x128xf32>
    %163 = vector.extract_strided_slice %153 {offsets = [0, 128], sizes = [8, 128], strides = [1, 1]} : vector<8x384xf32> to vector<8x128xf32>
    %164 = vector.extract_strided_slice %154 {offsets = [0, 128], sizes = [8, 128], strides = [1, 1]} : vector<8x384xf32> to vector<8x128xf32>
    %165 = arith.addf %163, %164 : vector<8x128xf32>
    %166 = arith.negf %165 : vector<8x128xf32>
    %167 = math.exp %166 : vector<8x128xf32>
    %cst_59 = arith.constant 1.000000e+00 : f32
    %168 = vector.broadcast %cst_59 : f32 to vector<8x128xf32>
    %169 = arith.addf %168, %167 : vector<8x128xf32>
    %170 = arith.divf %168, %169 : vector<8x128xf32>
    %171 = vector.extract_strided_slice %153 {offsets = [0, 256], sizes = [8, 128], strides = [1, 1]} : vector<8x384xf32> to vector<8x128xf32>
    %172 = vector.extract_strided_slice %154 {offsets = [0, 256], sizes = [8, 128], strides = [1, 1]} : vector<8x384xf32> to vector<8x128xf32>
    %173 = arith.addf %172, %10 : vector<8x128xf32>
    %174 = arith.mulf %162, %173 : vector<8x128xf32>
    %175 = arith.addf %171, %174 : vector<8x128xf32>
    %176 = math.tanh %175 : vector<8x128xf32>
    %177 = arith.subf %151, %176 : vector<8x128xf32>
    %178 = arith.mulf %170, %177 : vector<8x128xf32>
    %179 = arith.addf %176, %178 : vector<8x128xf32>
    %c0_60 = arith.constant 0 : index
    %c0_61 = arith.constant 0 : index
    %180 = vector.load %arg14[%c0_60, %c0_61] : memref<8x128xf32, #tpu.memory_space<vmem>>, vector<8x128xf32>
    tpu.vector_store %arg14[%c0_60, %c0_61], %179 {strides = array<i32>} : memref<8x128xf32, #tpu.memory_space<vmem>>, vector<8x128xf32>,
    %181 = arith.index_cast %150 : i32 to index
    %c0_62 = arith.constant 0 : index
    %182 = vector.load %arg13[%181, %c0_62] : memref<64x128xf32, #tpu.memory_space<vmem>>, vector<8x128xf32>
    tpu.vector_store %arg13[%181, %c0_62], %179 {strides = array<i32>} : memref<64x128xf32, #tpu.memory_space<vmem>>, vector<8x128xf32>,
    %c5_i32 = arith.constant 5 : i32
    %c8_i32_63 = arith.constant 8 : i32
    %183 = arith.muli %c5_i32, %c8_i32_63 : i32
    %184 = tpu.assume_multiple %183, 8 : i32
    %c0_64 = arith.constant 0 : index
    %c0_65 = arith.constant 0 : index
    %185 = vector.load %arg14[%c0_64, %c0_65] : memref<8x128xf32, #tpu.memory_space<vmem>>, vector<8x128xf32>
    %186 = arith.index_cast %184 : i32 to index
    %c0_66 = arith.constant 0 : index
    %187 = vector.load %arg12[%186, %c0_66] : memref<64x384xf32, #tpu.memory_space<vmem>>, vector<8x384xf32>
    %cst_67 = arith.constant dense<0.000000e+00> : vector<8x384xf32>
    %188 = tpu.matmul %185, %7, %cst_67 {dimension_numbers = #tpu.dot_dimension_numbers<[1], [0], [0], [1], [0, 0, 1, 1], [], []>} : vector<8x128xf32>, vector<128x384xf32>, vector<8x384xf32> -> vector<8x384xf32>
    %189 = vector.extract_strided_slice %187 {offsets = [0, 0], sizes = [8, 128], strides = [1, 1]} : vector<8x384xf32> to vector<8x128xf32>
    %190 = vector.extract_strided_slice %188 {offsets = [0, 0], sizes = [8, 128], strides = [1, 1]} : vector<8x384xf32> to vector<8x128xf32>
    %191 = arith.addf %189, %190 : vector<8x128xf32>
    %192 = arith.negf %191 : vector<8x128xf32>
    %193 = math.exp %192 : vector<8x128xf32>
    %cst_68 = arith.constant 1.000000e+00 : f32
    %194 = vector.broadcast %cst_68 : f32 to vector<8x128xf32>
    %195 = arith.addf %194, %193 : vector<8x128xf32>
    %196 = arith.divf %194, %195 : vector<8x128xf32>
    %197 = vector.extract_strided_slice %187 {offsets = [0, 128], sizes = [8, 128], strides = [1, 1]} : vector<8x384xf32> to vector<8x128xf32>
    %198 = vector.extract_strided_slice %188 {offsets = [0, 128], sizes = [8, 128], strides = [1, 1]} : vector<8x384xf32> to vector<8x128xf32>
    %199 = arith.addf %197, %198 : vector<8x128xf32>
    %200 = arith.negf %199 : vector<8x128xf32>
    %201 = math.exp %200 : vector<8x128xf32>
    %cst_69 = arith.constant 1.000000e+00 : f32
    %202 = vector.broadcast %cst_69 : f32 to vector<8x128xf32>
    %203 = arith.addf %202, %201 : vector<8x128xf32>
    %204 = arith.divf %202, %203 : vector<8x128xf32>
    %205 = vector.extract_strided_slice %187 {offsets = [0, 256], sizes = [8, 128], strides = [1, 1]} : vector<8x384xf32> to vector<8x128xf32>
    %206 = vector.extract_strided_slice %188 {offsets = [0, 256], sizes = [8, 128], strides = [1, 1]} : vector<8x384xf32> to vector<8x128xf32>
    %207 = arith.addf %206, %10 : vector<8x128xf32>
    %208 = arith.mulf %196, %207 : vector<8x128xf32>
    %209 = arith.addf %205, %208 : vector<8x128xf32>
    %210 = math.tanh %209 : vector<8x128xf32>
    %211 = arith.subf %185, %210 : vector<8x128xf32>
    %212 = arith.mulf %204, %211 : vector<8x128xf32>
    %213 = arith.addf %210, %212 : vector<8x128xf32>
    %c0_70 = arith.constant 0 : index
    %c0_71 = arith.constant 0 : index
    %214 = vector.load %arg14[%c0_70, %c0_71] : memref<8x128xf32, #tpu.memory_space<vmem>>, vector<8x128xf32>
    tpu.vector_store %arg14[%c0_70, %c0_71], %213 {strides = array<i32>} : memref<8x128xf32, #tpu.memory_space<vmem>>, vector<8x128xf32>,
    %215 = arith.index_cast %184 : i32 to index
    %c0_72 = arith.constant 0 : index
    %216 = vector.load %arg13[%215, %c0_72] : memref<64x128xf32, #tpu.memory_space<vmem>>, vector<8x128xf32>
    tpu.vector_store %arg13[%215, %c0_72], %213 {strides = array<i32>} : memref<64x128xf32, #tpu.memory_space<vmem>>, vector<8x128xf32>,
    %c6_i32 = arith.constant 6 : i32
    %c8_i32_73 = arith.constant 8 : i32
    %217 = arith.muli %c6_i32, %c8_i32_73 : i32
    %218 = tpu.assume_multiple %217, 8 : i32
    %c0_74 = arith.constant 0 : index
    %c0_75 = arith.constant 0 : index
    %219 = vector.load %arg14[%c0_74, %c0_75] : memref<8x128xf32, #tpu.memory_space<vmem>>, vector<8x128xf32>
    %220 = arith.index_cast %218 : i32 to index
    %c0_76 = arith.constant 0 : index
    %221 = vector.load %arg12[%220, %c0_76] : memref<64x384xf32, #tpu.memory_space<vmem>>, vector<8x384xf32>
    %cst_77 = arith.constant dense<0.000000e+00> : vector<8x384xf32>
    %222 = tpu.matmul %219, %7, %cst_77 {dimension_numbers = #tpu.dot_dimension_numbers<[1], [0], [0], [1], [0, 0, 1, 1], [], []>} : vector<8x128xf32>, vector<128x384xf32>, vector<8x384xf32> -> vector<8x384xf32>
    %223 = vector.extract_strided_slice %221 {offsets = [0, 0], sizes = [8, 128], strides = [1, 1]} : vector<8x384xf32> to vector<8x128xf32>
    %224 = vector.extract_strided_slice %222 {offsets = [0, 0], sizes = [8, 128], strides = [1, 1]} : vector<8x384xf32> to vector<8x128xf32>
    %225 = arith.addf %223, %224 : vector<8x128xf32>
    %226 = arith.negf %225 : vector<8x128xf32>
    %227 = math.exp %226 : vector<8x128xf32>
    %cst_78 = arith.constant 1.000000e+00 : f32
    %228 = vector.broadcast %cst_78 : f32 to vector<8x128xf32>
    %229 = arith.addf %228, %227 : vector<8x128xf32>
    %230 = arith.divf %228, %229 : vector<8x128xf32>
    %231 = vector.extract_strided_slice %221 {offsets = [0, 128], sizes = [8, 128], strides = [1, 1]} : vector<8x384xf32> to vector<8x128xf32>
    %232 = vector.extract_strided_slice %222 {offsets = [0, 128], sizes = [8, 128], strides = [1, 1]} : vector<8x384xf32> to vector<8x128xf32>
    %233 = arith.addf %231, %232 : vector<8x128xf32>
    %234 = arith.negf %233 : vector<8x128xf32>
    %235 = math.exp %234 : vector<8x128xf32>
    %cst_79 = arith.constant 1.000000e+00 : f32
    %236 = vector.broadcast %cst_79 : f32 to vector<8x128xf32>
    %237 = arith.addf %236, %235 : vector<8x128xf32>
    %238 = arith.divf %236, %237 : vector<8x128xf32>
    %239 = vector.extract_strided_slice %221 {offsets = [0, 256], sizes = [8, 128], strides = [1, 1]} : vector<8x384xf32> to vector<8x128xf32>
    %240 = vector.extract_strided_slice %222 {offsets = [0, 256], sizes = [8, 128], strides = [1, 1]} : vector<8x384xf32> to vector<8x128xf32>
    %241 = arith.addf %240, %10 : vector<8x128xf32>
    %242 = arith.mulf %230, %241 : vector<8x128xf32>
    %243 = arith.addf %239, %242 : vector<8x128xf32>
    %244 = math.tanh %243 : vector<8x128xf32>
    %245 = arith.subf %219, %244 : vector<8x128xf32>
    %246 = arith.mulf %238, %245 : vector<8x128xf32>
    %247 = arith.addf %244, %246 : vector<8x128xf32>
    %c0_80 = arith.constant 0 : index
    %c0_81 = arith.constant 0 : index
    %248 = vector.load %arg14[%c0_80, %c0_81] : memref<8x128xf32, #tpu.memory_space<vmem>>, vector<8x128xf32>
    tpu.vector_store %arg14[%c0_80, %c0_81], %247 {strides = array<i32>} : memref<8x128xf32, #tpu.memory_space<vmem>>, vector<8x128xf32>,
    %249 = arith.index_cast %218 : i32 to index
    %c0_82 = arith.constant 0 : index
    %250 = vector.load %arg13[%249, %c0_82] : memref<64x128xf32, #tpu.memory_space<vmem>>, vector<8x128xf32>
    tpu.vector_store %arg13[%249, %c0_82], %247 {strides = array<i32>} : memref<64x128xf32, #tpu.memory_space<vmem>>, vector<8x128xf32>,
    %c7_i32 = arith.constant 7 : i32
    %c8_i32_83 = arith.constant 8 : i32
    %251 = arith.muli %c7_i32, %c8_i32_83 : i32
    %252 = tpu.assume_multiple %251, 8 : i32
    %c0_84 = arith.constant 0 : index
    %c0_85 = arith.constant 0 : index
    %253 = vector.load %arg14[%c0_84, %c0_85] : memref<8x128xf32, #tpu.memory_space<vmem>>, vector<8x128xf32>
    %254 = arith.index_cast %252 : i32 to index
    %c0_86 = arith.constant 0 : index
    %255 = vector.load %arg12[%254, %c0_86] : memref<64x384xf32, #tpu.memory_space<vmem>>, vector<8x384xf32>
    %cst_87 = arith.constant dense<0.000000e+00> : vector<8x384xf32>
    %256 = tpu.matmul %253, %7, %cst_87 {dimension_numbers = #tpu.dot_dimension_numbers<[1], [0], [0], [1], [0, 0, 1, 1], [], []>} : vector<8x128xf32>, vector<128x384xf32>, vector<8x384xf32> -> vector<8x384xf32>
    %257 = vector.extract_strided_slice %255 {offsets = [0, 0], sizes = [8, 128], strides = [1, 1]} : vector<8x384xf32> to vector<8x128xf32>
    %258 = vector.extract_strided_slice %256 {offsets = [0, 0], sizes = [8, 128], strides = [1, 1]} : vector<8x384xf32> to vector<8x128xf32>
    %259 = arith.addf %257, %258 : vector<8x128xf32>
    %260 = arith.negf %259 : vector<8x128xf32>
    %261 = math.exp %260 : vector<8x128xf32>
    %cst_88 = arith.constant 1.000000e+00 : f32
    %262 = vector.broadcast %cst_88 : f32 to vector<8x128xf32>
    %263 = arith.addf %262, %261 : vector<8x128xf32>
    %264 = arith.divf %262, %263 : vector<8x128xf32>
    %265 = vector.extract_strided_slice %255 {offsets = [0, 128], sizes = [8, 128], strides = [1, 1]} : vector<8x384xf32> to vector<8x128xf32>
    %266 = vector.extract_strided_slice %256 {offsets = [0, 128], sizes = [8, 128], strides = [1, 1]} : vector<8x384xf32> to vector<8x128xf32>
    %267 = arith.addf %265, %266 : vector<8x128xf32>
    %268 = arith.negf %267 : vector<8x128xf32>
    %269 = math.exp %268 : vector<8x128xf32>
    %cst_89 = arith.constant 1.000000e+00 : f32
    %270 = vector.broadcast %cst_89 : f32 to vector<8x128xf32>
    %271 = arith.addf %270, %269 : vector<8x128xf32>
    %272 = arith.divf %270, %271 : vector<8x128xf32>
    %273 = vector.extract_strided_slice %255 {offsets = [0, 256], sizes = [8, 128], strides = [1, 1]} : vector<8x384xf32> to vector<8x128xf32>
    %274 = vector.extract_strided_slice %256 {offsets = [0, 256], sizes = [8, 128], strides = [1, 1]} : vector<8x384xf32> to vector<8x128xf32>
    %275 = arith.addf %274, %10 : vector<8x128xf32>
    %276 = arith.mulf %264, %275 : vector<8x128xf32>
    %277 = arith.addf %273, %276 : vector<8x128xf32>
    %278 = math.tanh %277 : vector<8x128xf32>
    %279 = arith.subf %253, %278 : vector<8x128xf32>
    %280 = arith.mulf %272, %279 : vector<8x128xf32>
    %281 = arith.addf %278, %280 : vector<8x128xf32>
    %c0_90 = arith.constant 0 : index
    %c0_91 = arith.constant 0 : index
    %282 = vector.load %arg14[%c0_90, %c0_91] : memref<8x128xf32, #tpu.memory_space<vmem>>, vector<8x128xf32>
    tpu.vector_store %arg14[%c0_90, %c0_91], %281 {strides = array<i32>} : memref<8x128xf32, #tpu.memory_space<vmem>>, vector<8x128xf32>,
    %283 = arith.index_cast %252 : i32 to index
    %c0_92 = arith.constant 0 : index
    %284 = vector.load %arg13[%283, %c0_92] : memref<64x128xf32, #tpu.memory_space<vmem>>, vector<8x128xf32>
    tpu.vector_store %arg13[%283, %c0_92], %281 {strides = array<i32>} : memref<64x128xf32, #tpu.memory_space<vmem>>, vector<8x128xf32>,
    %c8_i32_93 = arith.constant 8 : i32
    %c0_94 = arith.constant 0 : index
    %c0_95 = arith.constant 0 : index
    %285 = vector.load %arg13[%c0_94, %c0_95] : memref<64x128xf32, #tpu.memory_space<vmem>>, vector<64x128xf32>
    %c0_96 = arith.constant 0 : index
    %c0_97 = arith.constant 0 : index
    %286 = vector.load %arg5[%c0_96, %c0_97] : memref<128x384xf32, #tpu.memory_space<vmem>>, vector<128x384xf32>
    %cst_98 = arith.constant dense<0.000000e+00> : vector<64x384xf32>
    %287 = tpu.matmul %285, %286, %cst_98 {dimension_numbers = #tpu.dot_dimension_numbers<[1], [0], [0], [1], [0, 0, 1, 1], [], []>} : vector<64x128xf32>, vector<128x384xf32>, vector<64x384xf32> -> vector<64x384xf32>
    %c0_99 = arith.constant 0 : index
    %c0_100 = arith.constant 0 : index
    %288 = vector.load %arg7[%c0_99, %c0_100] : memref<1x384xf32, #tpu.memory_space<vmem>>, vector<1x384xf32>
    %289 = vector.broadcast %288 : vector<1x384xf32> to vector<64x384xf32>
    %290 = arith.addf %287, %289 : vector<64x384xf32>
    %c0_101 = arith.constant 0 : index
    %c0_102 = arith.constant 0 : index
    %291 = vector.load %arg12[%c0_101, %c0_102] : memref<64x384xf32, #tpu.memory_space<vmem>>, vector<64x384xf32>
    tpu.vector_store %arg12[%c0_101, %c0_102], %290 {strides = array<i32>} : memref<64x384xf32, #tpu.memory_space<vmem>>, vector<64x384xf32>,
    %c0_103 = arith.constant 0 : index
    %c0_104 = arith.constant 0 : index
    %292 = vector.load %arg6[%c0_103, %c0_104] : memref<128x384xf32, #tpu.memory_space<vmem>>, vector<128x384xf32>
    %c0_105 = arith.constant 0 : index
    %c0_106 = arith.constant 0 : index
    %293 = vector.load %arg8[%c0_105, %c0_106] : memref<1x128xf32, #tpu.memory_space<vmem>>, vector<1x128xf32>
    %294 = vector.shape_cast %293 : vector<1x128xf32> to vector<1x128xf32>
    %295 = vector.broadcast %294 : vector<1x128xf32> to vector<8x128xf32>
    %cst_107 = arith.constant 0.000000e+00 : f32
    %296 = vector.broadcast %cst_107 : f32 to vector<8x128xf32>
    %c0_108 = arith.constant 0 : index
    %c0_109 = arith.constant 0 : index
    %297 = vector.load %arg14[%c0_108, %c0_109] : memref<8x128xf32, #tpu.memory_space<vmem>>, vector<8x128xf32>
    tpu.vector_store %arg14[%c0_108, %c0_109], %296 {strides = array<i32>} : memref<8x128xf32, #tpu.memory_space<vmem>>, vector<8x128xf32>,
    %c0_i32_110 = arith.constant 0 : i32
    %c8_i32_111 = arith.constant 8 : i32
    %298 = arith.muli %c0_i32_110, %c8_i32_111 : i32
    %299 = tpu.assume_multiple %298, 8 : i32
    %c0_112 = arith.constant 0 : index
    %c0_113 = arith.constant 0 : index
    %300 = vector.load %arg14[%c0_112, %c0_113] : memref<8x128xf32, #tpu.memory_space<vmem>>, vector<8x128xf32>
    %301 = arith.index_cast %299 : i32 to index
    %c0_114 = arith.constant 0 : index
    %302 = vector.load %arg12[%301, %c0_114] : memref<64x384xf32, #tpu.memory_space<vmem>>, vector<8x384xf32>
    %cst_115 = arith.constant dense<0.000000e+00> : vector<8x384xf32>
    %303 = tpu.matmul %300, %292, %cst_115 {dimension_numbers = #tpu.dot_dimension_numbers<[1], [0], [0], [1], [0, 0, 1, 1], [], []>} : vector<8x128xf32>, vector<128x384xf32>, vector<8x384xf32> -> vector<8x384xf32>
    %304 = vector.extract_strided_slice %302 {offsets = [0, 0], sizes = [8, 128], strides = [1, 1]} : vector<8x384xf32> to vector<8x128xf32>
    %305 = vector.extract_strided_slice %303 {offsets = [0, 0], sizes = [8, 128], strides = [1, 1]} : vector<8x384xf32> to vector<8x128xf32>
    %306 = arith.addf %304, %305 : vector<8x128xf32>
    %307 = arith.negf %306 : vector<8x128xf32>
    %308 = math.exp %307 : vector<8x128xf32>
    %cst_116 = arith.constant 1.000000e+00 : f32
    %309 = vector.broadcast %cst_116 : f32 to vector<8x128xf32>
    %310 = arith.addf %309, %308 : vector<8x128xf32>
    %311 = arith.divf %309, %310 : vector<8x128xf32>
    %312 = vector.extract_strided_slice %302 {offsets = [0, 128], sizes = [8, 128], strides = [1, 1]} : vector<8x384xf32> to vector<8x128xf32>
    %313 = vector.extract_strided_slice %303 {offsets = [0, 128], sizes = [8, 128], strides = [1, 1]} : vector<8x384xf32> to vector<8x128xf32>
    %314 = arith.addf %312, %313 : vector<8x128xf32>
    %315 = arith.negf %314 : vector<8x128xf32>
    %316 = math.exp %315 : vector<8x128xf32>
    %cst_117 = arith.constant 1.000000e+00 : f32
    %317 = vector.broadcast %cst_117 : f32 to vector<8x128xf32>
    %318 = arith.addf %317, %316 : vector<8x128xf32>
    %319 = arith.divf %317, %318 : vector<8x128xf32>
    %320 = vector.extract_strided_slice %302 {offsets = [0, 256], sizes = [8, 128], strides = [1, 1]} : vector<8x384xf32> to vector<8x128xf32>
    %321 = vector.extract_strided_slice %303 {offsets = [0, 256], sizes = [8, 128], strides = [1, 1]} : vector<8x384xf32> to vector<8x128xf32>
    %322 = arith.addf %321, %295 : vector<8x128xf32>
    %323 = arith.mulf %311, %322 : vector<8x128xf32>
    %324 = arith.addf %320, %323 : vector<8x128xf32>
    %325 = math.tanh %324 : vector<8x128xf32>
    %326 = arith.subf %300, %325 : vector<8x128xf32>
    %327 = arith.mulf %319, %326 : vector<8x128xf32>
    %328 = arith.addf %325, %327 : vector<8x128xf32>
    %c0_118 = arith.constant 0 : index
    %c0_119 = arith.constant 0 : index
    %329 = vector.load %arg14[%c0_118, %c0_119] : memref<8x128xf32, #tpu.memory_space<vmem>>, vector<8x128xf32>
    tpu.vector_store %arg14[%c0_118, %c0_119], %328 {strides = array<i32>} : memref<8x128xf32, #tpu.memory_space<vmem>>, vector<8x128xf32>,
    %c1_i32_120 = arith.constant 1 : i32
    %c8_i32_121 = arith.constant 8 : i32
    %330 = arith.muli %c1_i32_120, %c8_i32_121 : i32
    %331 = tpu.assume_multiple %330, 8 : i32
    %c0_122 = arith.constant 0 : index
    %c0_123 = arith.constant 0 : index
    %332 = vector.load %arg14[%c0_122, %c0_123] : memref<8x128xf32, #tpu.memory_space<vmem>>, vector<8x128xf32>
    %333 = arith.index_cast %331 : i32 to index
    %c0_124 = arith.constant 0 : index
    %334 = vector.load %arg12[%333, %c0_124] : memref<64x384xf32, #tpu.memory_space<vmem>>, vector<8x384xf32>
    %cst_125 = arith.constant dense<0.000000e+00> : vector<8x384xf32>
    %335 = tpu.matmul %332, %292, %cst_125 {dimension_numbers = #tpu.dot_dimension_numbers<[1], [0], [0], [1], [0, 0, 1, 1], [], []>} : vector<8x128xf32>, vector<128x384xf32>, vector<8x384xf32> -> vector<8x384xf32>
    %336 = vector.extract_strided_slice %334 {offsets = [0, 0], sizes = [8, 128], strides = [1, 1]} : vector<8x384xf32> to vector<8x128xf32>
    %337 = vector.extract_strided_slice %335 {offsets = [0, 0], sizes = [8, 128], strides = [1, 1]} : vector<8x384xf32> to vector<8x128xf32>
    %338 = arith.addf %336, %337 : vector<8x128xf32>
    %339 = arith.negf %338 : vector<8x128xf32>
    %340 = math.exp %339 : vector<8x128xf32>
    %cst_126 = arith.constant 1.000000e+00 : f32
    %341 = vector.broadcast %cst_126 : f32 to vector<8x128xf32>
    %342 = arith.addf %341, %340 : vector<8x128xf32>
    %343 = arith.divf %341, %342 : vector<8x128xf32>
    %344 = vector.extract_strided_slice %334 {offsets = [0, 128], sizes = [8, 128], strides = [1, 1]} : vector<8x384xf32> to vector<8x128xf32>
    %345 = vector.extract_strided_slice %335 {offsets = [0, 128], sizes = [8, 128], strides = [1, 1]} : vector<8x384xf32> to vector<8x128xf32>
    %346 = arith.addf %344, %345 : vector<8x128xf32>
    %347 = arith.negf %346 : vector<8x128xf32>
    %348 = math.exp %347 : vector<8x128xf32>
    %cst_127 = arith.constant 1.000000e+00 : f32
    %349 = vector.broadcast %cst_127 : f32 to vector<8x128xf32>
    %350 = arith.addf %349, %348 : vector<8x128xf32>
    %351 = arith.divf %349, %350 : vector<8x128xf32>
    %352 = vector.extract_strided_slice %334 {offsets = [0, 256], sizes = [8, 128], strides = [1, 1]} : vector<8x384xf32> to vector<8x128xf32>
    %353 = vector.extract_strided_slice %335 {offsets = [0, 256], sizes = [8, 128], strides = [1, 1]} : vector<8x384xf32> to vector<8x128xf32>
    %354 = arith.addf %353, %295 : vector<8x128xf32>
    %355 = arith.mulf %343, %354 : vector<8x128xf32>
    %356 = arith.addf %352, %355 : vector<8x128xf32>
    %357 = math.tanh %356 : vector<8x128xf32>
    %358 = arith.subf %332, %357 : vector<8x128xf32>
    %359 = arith.mulf %351, %358 : vector<8x128xf32>
    %360 = arith.addf %357, %359 : vector<8x128xf32>
    %c0_128 = arith.constant 0 : index
    %c0_129 = arith.constant 0 : index
    %361 = vector.load %arg14[%c0_128, %c0_129] : memref<8x128xf32, #tpu.memory_space<vmem>>, vector<8x128xf32>
    tpu.vector_store %arg14[%c0_128, %c0_129], %360 {strides = array<i32>} : memref<8x128xf32, #tpu.memory_space<vmem>>, vector<8x128xf32>,
    %c2_i32_130 = arith.constant 2 : i32
    %c8_i32_131 = arith.constant 8 : i32
    %362 = arith.muli %c2_i32_130, %c8_i32_131 : i32
    %363 = tpu.assume_multiple %362, 8 : i32
    %c0_132 = arith.constant 0 : index
    %c0_133 = arith.constant 0 : index
    %364 = vector.load %arg14[%c0_132, %c0_133] : memref<8x128xf32, #tpu.memory_space<vmem>>, vector<8x128xf32>
    %365 = arith.index_cast %363 : i32 to index
    %c0_134 = arith.constant 0 : index
    %366 = vector.load %arg12[%365, %c0_134] : memref<64x384xf32, #tpu.memory_space<vmem>>, vector<8x384xf32>
    %cst_135 = arith.constant dense<0.000000e+00> : vector<8x384xf32>
    %367 = tpu.matmul %364, %292, %cst_135 {dimension_numbers = #tpu.dot_dimension_numbers<[1], [0], [0], [1], [0, 0, 1, 1], [], []>} : vector<8x128xf32>, vector<128x384xf32>, vector<8x384xf32> -> vector<8x384xf32>
    %368 = vector.extract_strided_slice %366 {offsets = [0, 0], sizes = [8, 128], strides = [1, 1]} : vector<8x384xf32> to vector<8x128xf32>
    %369 = vector.extract_strided_slice %367 {offsets = [0, 0], sizes = [8, 128], strides = [1, 1]} : vector<8x384xf32> to vector<8x128xf32>
    %370 = arith.addf %368, %369 : vector<8x128xf32>
    %371 = arith.negf %370 : vector<8x128xf32>
    %372 = math.exp %371 : vector<8x128xf32>
    %cst_136 = arith.constant 1.000000e+00 : f32
    %373 = vector.broadcast %cst_136 : f32 to vector<8x128xf32>
    %374 = arith.addf %373, %372 : vector<8x128xf32>
    %375 = arith.divf %373, %374 : vector<8x128xf32>
    %376 = vector.extract_strided_slice %366 {offsets = [0, 128], sizes = [8, 128], strides = [1, 1]} : vector<8x384xf32> to vector<8x128xf32>
    %377 = vector.extract_strided_slice %367 {offsets = [0, 128], sizes = [8, 128], strides = [1, 1]} : vector<8x384xf32> to vector<8x128xf32>
    %378 = arith.addf %376, %377 : vector<8x128xf32>
    %379 = arith.negf %378 : vector<8x128xf32>
    %380 = math.exp %379 : vector<8x128xf32>
    %cst_137 = arith.constant 1.000000e+00 : f32
    %381 = vector.broadcast %cst_137 : f32 to vector<8x128xf32>
    %382 = arith.addf %381, %380 : vector<8x128xf32>
    %383 = arith.divf %381, %382 : vector<8x128xf32>
    %384 = vector.extract_strided_slice %366 {offsets = [0, 256], sizes = [8, 128], strides = [1, 1]} : vector<8x384xf32> to vector<8x128xf32>
    %385 = vector.extract_strided_slice %367 {offsets = [0, 256], sizes = [8, 128], strides = [1, 1]} : vector<8x384xf32> to vector<8x128xf32>
    %386 = arith.addf %385, %295 : vector<8x128xf32>
    %387 = arith.mulf %375, %386 : vector<8x128xf32>
    %388 = arith.addf %384, %387 : vector<8x128xf32>
    %389 = math.tanh %388 : vector<8x128xf32>
    %390 = arith.subf %364, %389 : vector<8x128xf32>
    %391 = arith.mulf %383, %390 : vector<8x128xf32>
    %392 = arith.addf %389, %391 : vector<8x128xf32>
    %c0_138 = arith.constant 0 : index
    %c0_139 = arith.constant 0 : index
    %393 = vector.load %arg14[%c0_138, %c0_139] : memref<8x128xf32, #tpu.memory_space<vmem>>, vector<8x128xf32>
    tpu.vector_store %arg14[%c0_138, %c0_139], %392 {strides = array<i32>} : memref<8x128xf32, #tpu.memory_space<vmem>>, vector<8x128xf32>,
    %c3_i32_140 = arith.constant 3 : i32
    %c8_i32_141 = arith.constant 8 : i32
    %394 = arith.muli %c3_i32_140, %c8_i32_141 : i32
    %395 = tpu.assume_multiple %394, 8 : i32
    %c0_142 = arith.constant 0 : index
    %c0_143 = arith.constant 0 : index
    %396 = vector.load %arg14[%c0_142, %c0_143] : memref<8x128xf32, #tpu.memory_space<vmem>>, vector<8x128xf32>
    %397 = arith.index_cast %395 : i32 to index
    %c0_144 = arith.constant 0 : index
    %398 = vector.load %arg12[%397, %c0_144] : memref<64x384xf32, #tpu.memory_space<vmem>>, vector<8x384xf32>
    %cst_145 = arith.constant dense<0.000000e+00> : vector<8x384xf32>
    %399 = tpu.matmul %396, %292, %cst_145 {dimension_numbers = #tpu.dot_dimension_numbers<[1], [0], [0], [1], [0, 0, 1, 1], [], []>} : vector<8x128xf32>, vector<128x384xf32>, vector<8x384xf32> -> vector<8x384xf32>
    %400 = vector.extract_strided_slice %398 {offsets = [0, 0], sizes = [8, 128], strides = [1, 1]} : vector<8x384xf32> to vector<8x128xf32>
    %401 = vector.extract_strided_slice %399 {offsets = [0, 0], sizes = [8, 128], strides = [1, 1]} : vector<8x384xf32> to vector<8x128xf32>
    %402 = arith.addf %400, %401 : vector<8x128xf32>
    %403 = arith.negf %402 : vector<8x128xf32>
    %404 = math.exp %403 : vector<8x128xf32>
    %cst_146 = arith.constant 1.000000e+00 : f32
    %405 = vector.broadcast %cst_146 : f32 to vector<8x128xf32>
    %406 = arith.addf %405, %404 : vector<8x128xf32>
    %407 = arith.divf %405, %406 : vector<8x128xf32>
    %408 = vector.extract_strided_slice %398 {offsets = [0, 128], sizes = [8, 128], strides = [1, 1]} : vector<8x384xf32> to vector<8x128xf32>
    %409 = vector.extract_strided_slice %399 {offsets = [0, 128], sizes = [8, 128], strides = [1, 1]} : vector<8x384xf32> to vector<8x128xf32>
    %410 = arith.addf %408, %409 : vector<8x128xf32>
    %411 = arith.negf %410 : vector<8x128xf32>
    %412 = math.exp %411 : vector<8x128xf32>
    %cst_147 = arith.constant 1.000000e+00 : f32
    %413 = vector.broadcast %cst_147 : f32 to vector<8x128xf32>
    %414 = arith.addf %413, %412 : vector<8x128xf32>
    %415 = arith.divf %413, %414 : vector<8x128xf32>
    %416 = vector.extract_strided_slice %398 {offsets = [0, 256], sizes = [8, 128], strides = [1, 1]} : vector<8x384xf32> to vector<8x128xf32>
    %417 = vector.extract_strided_slice %399 {offsets = [0, 256], sizes = [8, 128], strides = [1, 1]} : vector<8x384xf32> to vector<8x128xf32>
    %418 = arith.addf %417, %295 : vector<8x128xf32>
    %419 = arith.mulf %407, %418 : vector<8x128xf32>
    %420 = arith.addf %416, %419 : vector<8x128xf32>
    %421 = math.tanh %420 : vector<8x128xf32>
    %422 = arith.subf %396, %421 : vector<8x128xf32>
    %423 = arith.mulf %415, %422 : vector<8x128xf32>
    %424 = arith.addf %421, %423 : vector<8x128xf32>
    %c0_148 = arith.constant 0 : index
    %c0_149 = arith.constant 0 : index
    %425 = vector.load %arg14[%c0_148, %c0_149] : memref<8x128xf32, #tpu.memory_space<vmem>>, vector<8x128xf32>
    tpu.vector_store %arg14[%c0_148, %c0_149], %424 {strides = array<i32>} : memref<8x128xf32, #tpu.memory_space<vmem>>, vector<8x128xf32>,
    %c4_i32_150 = arith.constant 4 : i32
    %c8_i32_151 = arith.constant 8 : i32
    %426 = arith.muli %c4_i32_150, %c8_i32_151 : i32
    %427 = tpu.assume_multiple %426, 8 : i32
    %c0_152 = arith.constant 0 : index
    %c0_153 = arith.constant 0 : index
    %428 = vector.load %arg14[%c0_152, %c0_153] : memref<8x128xf32, #tpu.memory_space<vmem>>, vector<8x128xf32>
    %429 = arith.index_cast %427 : i32 to index
    %c0_154 = arith.constant 0 : index
    %430 = vector.load %arg12[%429, %c0_154] : memref<64x384xf32, #tpu.memory_space<vmem>>, vector<8x384xf32>
    %cst_155 = arith.constant dense<0.000000e+00> : vector<8x384xf32>
    %431 = tpu.matmul %428, %292, %cst_155 {dimension_numbers = #tpu.dot_dimension_numbers<[1], [0], [0], [1], [0, 0, 1, 1], [], []>} : vector<8x128xf32>, vector<128x384xf32>, vector<8x384xf32> -> vector<8x384xf32>
    %432 = vector.extract_strided_slice %430 {offsets = [0, 0], sizes = [8, 128], strides = [1, 1]} : vector<8x384xf32> to vector<8x128xf32>
    %433 = vector.extract_strided_slice %431 {offsets = [0, 0], sizes = [8, 128], strides = [1, 1]} : vector<8x384xf32> to vector<8x128xf32>
    %434 = arith.addf %432, %433 : vector<8x128xf32>
    %435 = arith.negf %434 : vector<8x128xf32>
    %436 = math.exp %435 : vector<8x128xf32>
    %cst_156 = arith.constant 1.000000e+00 : f32
    %437 = vector.broadcast %cst_156 : f32 to vector<8x128xf32>
    %438 = arith.addf %437, %436 : vector<8x128xf32>
    %439 = arith.divf %437, %438 : vector<8x128xf32>
    %440 = vector.extract_strided_slice %430 {offsets = [0, 128], sizes = [8, 128], strides = [1, 1]} : vector<8x384xf32> to vector<8x128xf32>
    %441 = vector.extract_strided_slice %431 {offsets = [0, 128], sizes = [8, 128], strides = [1, 1]} : vector<8x384xf32> to vector<8x128xf32>
    %442 = arith.addf %440, %441 : vector<8x128xf32>
    %443 = arith.negf %442 : vector<8x128xf32>
    %444 = math.exp %443 : vector<8x128xf32>
    %cst_157 = arith.constant 1.000000e+00 : f32
    %445 = vector.broadcast %cst_157 : f32 to vector<8x128xf32>
    %446 = arith.addf %445, %444 : vector<8x128xf32>
    %447 = arith.divf %445, %446 : vector<8x128xf32>
    %448 = vector.extract_strided_slice %430 {offsets = [0, 256], sizes = [8, 128], strides = [1, 1]} : vector<8x384xf32> to vector<8x128xf32>
    %449 = vector.extract_strided_slice %431 {offsets = [0, 256], sizes = [8, 128], strides = [1, 1]} : vector<8x384xf32> to vector<8x128xf32>
    %450 = arith.addf %449, %295 : vector<8x128xf32>
    %451 = arith.mulf %439, %450 : vector<8x128xf32>
    %452 = arith.addf %448, %451 : vector<8x128xf32>
    %453 = math.tanh %452 : vector<8x128xf32>
    %454 = arith.subf %428, %453 : vector<8x128xf32>
    %455 = arith.mulf %447, %454 : vector<8x128xf32>
    %456 = arith.addf %453, %455 : vector<8x128xf32>
    %c0_158 = arith.constant 0 : index
    %c0_159 = arith.constant 0 : index
    %457 = vector.load %arg14[%c0_158, %c0_159] : memref<8x128xf32, #tpu.memory_space<vmem>>, vector<8x128xf32>
    tpu.vector_store %arg14[%c0_158, %c0_159], %456 {strides = array<i32>} : memref<8x128xf32, #tpu.memory_space<vmem>>, vector<8x128xf32>,
    %c5_i32_160 = arith.constant 5 : i32
    %c8_i32_161 = arith.constant 8 : i32
    %458 = arith.muli %c5_i32_160, %c8_i32_161 : i32
    %459 = tpu.assume_multiple %458, 8 : i32
    %c0_162 = arith.constant 0 : index
    %c0_163 = arith.constant 0 : index
    %460 = vector.load %arg14[%c0_162, %c0_163] : memref<8x128xf32, #tpu.memory_space<vmem>>, vector<8x128xf32>
    %461 = arith.index_cast %459 : i32 to index
    %c0_164 = arith.constant 0 : index
    %462 = vector.load %arg12[%461, %c0_164] : memref<64x384xf32, #tpu.memory_space<vmem>>, vector<8x384xf32>
    %cst_165 = arith.constant dense<0.000000e+00> : vector<8x384xf32>
    %463 = tpu.matmul %460, %292, %cst_165 {dimension_numbers = #tpu.dot_dimension_numbers<[1], [0], [0], [1], [0, 0, 1, 1], [], []>} : vector<8x128xf32>, vector<128x384xf32>, vector<8x384xf32> -> vector<8x384xf32>
    %464 = vector.extract_strided_slice %462 {offsets = [0, 0], sizes = [8, 128], strides = [1, 1]} : vector<8x384xf32> to vector<8x128xf32>
    %465 = vector.extract_strided_slice %463 {offsets = [0, 0], sizes = [8, 128], strides = [1, 1]} : vector<8x384xf32> to vector<8x128xf32>
    %466 = arith.addf %464, %465 : vector<8x128xf32>
    %467 = arith.negf %466 : vector<8x128xf32>
    %468 = math.exp %467 : vector<8x128xf32>
    %cst_166 = arith.constant 1.000000e+00 : f32
    %469 = vector.broadcast %cst_166 : f32 to vector<8x128xf32>
    %470 = arith.addf %469, %468 : vector<8x128xf32>
    %471 = arith.divf %469, %470 : vector<8x128xf32>
    %472 = vector.extract_strided_slice %462 {offsets = [0, 128], sizes = [8, 128], strides = [1, 1]} : vector<8x384xf32> to vector<8x128xf32>
    %473 = vector.extract_strided_slice %463 {offsets = [0, 128], sizes = [8, 128], strides = [1, 1]} : vector<8x384xf32> to vector<8x128xf32>
    %474 = arith.addf %472, %473 : vector<8x128xf32>
    %475 = arith.negf %474 : vector<8x128xf32>
    %476 = math.exp %475 : vector<8x128xf32>
    %cst_167 = arith.constant 1.000000e+00 : f32
    %477 = vector.broadcast %cst_167 : f32 to vector<8x128xf32>
    %478 = arith.addf %477, %476 : vector<8x128xf32>
    %479 = arith.divf %477, %478 : vector<8x128xf32>
    %480 = vector.extract_strided_slice %462 {offsets = [0, 256], sizes = [8, 128], strides = [1, 1]} : vector<8x384xf32> to vector<8x128xf32>
    %481 = vector.extract_strided_slice %463 {offsets = [0, 256], sizes = [8, 128], strides = [1, 1]} : vector<8x384xf32> to vector<8x128xf32>
    %482 = arith.addf %481, %295 : vector<8x128xf32>
    %483 = arith.mulf %471, %482 : vector<8x128xf32>
    %484 = arith.addf %480, %483 : vector<8x128xf32>
    %485 = math.tanh %484 : vector<8x128xf32>
    %486 = arith.subf %460, %485 : vector<8x128xf32>
    %487 = arith.mulf %479, %486 : vector<8x128xf32>
    %488 = arith.addf %485, %487 : vector<8x128xf32>
    %c0_168 = arith.constant 0 : index
    %c0_169 = arith.constant 0 : index
    %489 = vector.load %arg14[%c0_168, %c0_169] : memref<8x128xf32, #tpu.memory_space<vmem>>, vector<8x128xf32>
    tpu.vector_store %arg14[%c0_168, %c0_169], %488 {strides = array<i32>} : memref<8x128xf32, #tpu.memory_space<vmem>>, vector<8x128xf32>,
    %c6_i32_170 = arith.constant 6 : i32
    %c8_i32_171 = arith.constant 8 : i32
    %490 = arith.muli %c6_i32_170, %c8_i32_171 : i32
    %491 = tpu.assume_multiple %490, 8 : i32
    %c0_172 = arith.constant 0 : index
    %c0_173 = arith.constant 0 : index
    %492 = vector.load %arg14[%c0_172, %c0_173] : memref<8x128xf32, #tpu.memory_space<vmem>>, vector<8x128xf32>
    %493 = arith.index_cast %491 : i32 to index
    %c0_174 = arith.constant 0 : index
    %494 = vector.load %arg12[%493, %c0_174] : memref<64x384xf32, #tpu.memory_space<vmem>>, vector<8x384xf32>
    %cst_175 = arith.constant dense<0.000000e+00> : vector<8x384xf32>
    %495 = tpu.matmul %492, %292, %cst_175 {dimension_numbers = #tpu.dot_dimension_numbers<[1], [0], [0], [1], [0, 0, 1, 1], [], []>} : vector<8x128xf32>, vector<128x384xf32>, vector<8x384xf32> -> vector<8x384xf32>
    %496 = vector.extract_strided_slice %494 {offsets = [0, 0], sizes = [8, 128], strides = [1, 1]} : vector<8x384xf32> to vector<8x128xf32>
    %497 = vector.extract_strided_slice %495 {offsets = [0, 0], sizes = [8, 128], strides = [1, 1]} : vector<8x384xf32> to vector<8x128xf32>
    %498 = arith.addf %496, %497 : vector<8x128xf32>
    %499 = arith.negf %498 : vector<8x128xf32>
    %500 = math.exp %499 : vector<8x128xf32>
    %cst_176 = arith.constant 1.000000e+00 : f32
    %501 = vector.broadcast %cst_176 : f32 to vector<8x128xf32>
    %502 = arith.addf %501, %500 : vector<8x128xf32>
    %503 = arith.divf %501, %502 : vector<8x128xf32>
    %504 = vector.extract_strided_slice %494 {offsets = [0, 128], sizes = [8, 128], strides = [1, 1]} : vector<8x384xf32> to vector<8x128xf32>
    %505 = vector.extract_strided_slice %495 {offsets = [0, 128], sizes = [8, 128], strides = [1, 1]} : vector<8x384xf32> to vector<8x128xf32>
    %506 = arith.addf %504, %505 : vector<8x128xf32>
    %507 = arith.negf %506 : vector<8x128xf32>
    %508 = math.exp %507 : vector<8x128xf32>
    %cst_177 = arith.constant 1.000000e+00 : f32
    %509 = vector.broadcast %cst_177 : f32 to vector<8x128xf32>
    %510 = arith.addf %509, %508 : vector<8x128xf32>
    %511 = arith.divf %509, %510 : vector<8x128xf32>
    %512 = vector.extract_strided_slice %494 {offsets = [0, 256], sizes = [8, 128], strides = [1, 1]} : vector<8x384xf32> to vector<8x128xf32>
    %513 = vector.extract_strided_slice %495 {offsets = [0, 256], sizes = [8, 128], strides = [1, 1]} : vector<8x384xf32> to vector<8x128xf32>
    %514 = arith.addf %513, %295 : vector<8x128xf32>
    %515 = arith.mulf %503, %514 : vector<8x128xf32>
    %516 = arith.addf %512, %515 : vector<8x128xf32>
    %517 = math.tanh %516 : vector<8x128xf32>
    %518 = arith.subf %492, %517 : vector<8x128xf32>
    %519 = arith.mulf %511, %518 : vector<8x128xf32>
    %520 = arith.addf %517, %519 : vector<8x128xf32>
    %c0_178 = arith.constant 0 : index
    %c0_179 = arith.constant 0 : index
    %521 = vector.load %arg14[%c0_178, %c0_179] : memref<8x128xf32, #tpu.memory_space<vmem>>, vector<8x128xf32>
    tpu.vector_store %arg14[%c0_178, %c0_179], %520 {strides = array<i32>} : memref<8x128xf32, #tpu.memory_space<vmem>>, vector<8x128xf32>,
    %c7_i32_180 = arith.constant 7 : i32
    %c8_i32_181 = arith.constant 8 : i32
    %522 = arith.muli %c7_i32_180, %c8_i32_181 : i32
    %523 = tpu.assume_multiple %522, 8 : i32
    %c0_182 = arith.constant 0 : index
    %c0_183 = arith.constant 0 : index
    %524 = vector.load %arg14[%c0_182, %c0_183] : memref<8x128xf32, #tpu.memory_space<vmem>>, vector<8x128xf32>
    %525 = arith.index_cast %523 : i32 to index
    %c0_184 = arith.constant 0 : index
    %526 = vector.load %arg12[%525, %c0_184] : memref<64x384xf32, #tpu.memory_space<vmem>>, vector<8x384xf32>
    %cst_185 = arith.constant dense<0.000000e+00> : vector<8x384xf32>
    %527 = tpu.matmul %524, %292, %cst_185 {dimension_numbers = #tpu.dot_dimension_numbers<[1], [0], [0], [1], [0, 0, 1, 1], [], []>} : vector<8x128xf32>, vector<128x384xf32>, vector<8x384xf32> -> vector<8x384xf32>
    %528 = vector.extract_strided_slice %526 {offsets = [0, 0], sizes = [8, 128], strides = [1, 1]} : vector<8x384xf32> to vector<8x128xf32>
    %529 = vector.extract_strided_slice %527 {offsets = [0, 0], sizes = [8, 128], strides = [1, 1]} : vector<8x384xf32> to vector<8x128xf32>
    %530 = arith.addf %528, %529 : vector<8x128xf32>
    %531 = arith.negf %530 : vector<8x128xf32>
    %532 = math.exp %531 : vector<8x128xf32>
    %cst_186 = arith.constant 1.000000e+00 : f32
    %533 = vector.broadcast %cst_186 : f32 to vector<8x128xf32>
    %534 = arith.addf %533, %532 : vector<8x128xf32>
    %535 = arith.divf %533, %534 : vector<8x128xf32>
    %536 = vector.extract_strided_slice %526 {offsets = [0, 128], sizes = [8, 128], strides = [1, 1]} : vector<8x384xf32> to vector<8x128xf32>
    %537 = vector.extract_strided_slice %527 {offsets = [0, 128], sizes = [8, 128], strides = [1, 1]} : vector<8x384xf32> to vector<8x128xf32>
    %538 = arith.addf %536, %537 : vector<8x128xf32>
    %539 = arith.negf %538 : vector<8x128xf32>
    %540 = math.exp %539 : vector<8x128xf32>
    %cst_187 = arith.constant 1.000000e+00 : f32
    %541 = vector.broadcast %cst_187 : f32 to vector<8x128xf32>
    %542 = arith.addf %541, %540 : vector<8x128xf32>
    %543 = arith.divf %541, %542 : vector<8x128xf32>
    %544 = vector.extract_strided_slice %526 {offsets = [0, 256], sizes = [8, 128], strides = [1, 1]} : vector<8x384xf32> to vector<8x128xf32>
    %545 = vector.extract_strided_slice %527 {offsets = [0, 256], sizes = [8, 128], strides = [1, 1]} : vector<8x384xf32> to vector<8x128xf32>
    %546 = arith.addf %545, %295 : vector<8x128xf32>
    %547 = arith.mulf %535, %546 : vector<8x128xf32>
    %548 = arith.addf %544, %547 : vector<8x128xf32>
    %549 = math.tanh %548 : vector<8x128xf32>
    %550 = arith.subf %524, %549 : vector<8x128xf32>
    %551 = arith.mulf %543, %550 : vector<8x128xf32>
    %552 = arith.addf %549, %551 : vector<8x128xf32>
    %c0_188 = arith.constant 0 : index
    %c0_189 = arith.constant 0 : index
    %553 = vector.load %arg14[%c0_188, %c0_189] : memref<8x128xf32, #tpu.memory_space<vmem>>, vector<8x128xf32>
    tpu.vector_store %arg14[%c0_188, %c0_189], %552 {strides = array<i32>} : memref<8x128xf32, #tpu.memory_space<vmem>>, vector<8x128xf32>,
    %c8_i32_190 = arith.constant 8 : i32
    %c0_191 = arith.constant 0 : index
    %c0_192 = arith.constant 0 : index
    %554 = vector.load %arg14[%c0_191, %c0_192] : memref<8x128xf32, #tpu.memory_space<vmem>>, vector<8x128xf32>
    %c0_193 = arith.constant 0 : index
    %c0_194 = arith.constant 0 : index
    %555 = vector.load %arg9[%c0_193, %c0_194] : memref<128x128xf32, #tpu.memory_space<vmem>>, vector<128x128xf32>
    %cst_195 = arith.constant dense<0.000000e+00> : vector<8x128xf32>
    %556 = tpu.matmul %554, %555, %cst_195 {dimension_numbers = #tpu.dot_dimension_numbers<[1], [0], [0], [1], [0, 0, 1, 1], [], []>} : vector<8x128xf32>, vector<128x128xf32>, vector<8x128xf32> -> vector<8x128xf32>
    %c0_196 = arith.constant 0 : index
    %c0_197 = arith.constant 0 : index
    %557 = vector.load %arg10[%c0_196, %c0_197] : memref<1x128xf32, #tpu.memory_space<vmem>>, vector<1x128xf32>
    %558 = vector.broadcast %557 : vector<1x128xf32> to vector<8x128xf32>
    %559 = arith.addf %556, %558 : vector<8x128xf32>
    %c0_198 = arith.constant 0 : index
    %c0_199 = arith.constant 0 : index
    %560 = vector.load %arg11[%c0_198, %c0_199] : memref<8x128xf32, #tpu.memory_space<vmem>>, vector<8x128xf32>
    tpu.vector_store %arg11[%c0_198, %c0_199], %559 {strides = array<i32>} : memref<8x128xf32, #tpu.memory_space<vmem>>, vector<8x128xf32>,
    return
  }
}

</mosaic_0001>

<bundles_post_ra>
// kernel: gru_model_forward.1
= control target key start
LH: loop header
LB: loop body
LE: loop exit
PB: predicated region body
PF: predicated region fallthrough
CT: control target
= control target key end

     0   :  { %16 = vsyncpa [#allocation6], 0  ;;  %s7135_s0 = inlined_call_operand.vmem [shape: f32[64,16], index: 0, kind: input, shape index: {}]   ;;  %s7136_s1 = inlined_call_operand.hbm [shape: f32[16,384], index: 1, kind: input, shape index: {}]   ;;  %s7137_s2 = inlined_call_operand.hbm [shape: f32[128,384], index: 2, kind: input, shape index: {}]   ;;  %s7138_s3 = inlined_call_operand.vmem [shape: f32[1,384], index: 3, kind: input, shape index: {}]   ;;  %s7139_s4 = inlined_call_operand.vmem [shape: f32[1,128], index: 4, kind: input, shape index: {}]   ;;  %s7140_s5 = inlined_call_operand.hbm [shape: f32[128,384], index: 5, kind: input, shape index: {}]   ;;  %s7141_s6 = inlined_call_operand.hbm [shape: f32[128,384], index: 6, kind: input, shape index: {}]   ;;  %s7142_s7 = inlined_call_operand.vmem [shape: f32[1,384], index: 7, kind: input, shape index: {}]   ;;  %s7143_s8 = inlined_call_operand.vmem [shape: f32[1,128], index: 8, kind: input, shape index: {}]   ;;  %s7144_s9 = inlined_call_operand.vmem [shape: f32[128,128], index: 9, kind: input, shape index: {}]   ;;  %s7145_s10 = inlined_call_operand.vmem [shape: f32[1,128], index: 10, kind: input, shape index: {}]   ;;  %s7146_s11 = inlined_call_operand.vmem [shape: f32[8,128], index: 11, kind: output, shape index: {}]  }
   0x1   :  { %17 = vsyncpa [#allocation8], 0 }
   0x2   :  { %18 = vsyncpa [#allocation11], 0  ;;  %s5987_s17 = smov [#allocation7]   ;;  %s5988_s19 = smov [#allocation5]  }
   0x3   :  { %s38_s18 = sshll.u32 %s5987_s17, 4  ;;  %s26_s20 = sshll.u32 %s5988_s19, 4  ;;  %s39_s18 = int_to_ptr.vmem [resolvable:$true] %s38_s18  ;;  %s6056_s20 = int_to_ptr.vmem [resolvable:$true] %s26_s20 }
   0x4   :  { %s5893_s23 = scalar_lea.hbm %s7137_s2, 6144 }
   0x5   :  { %p5894_p0 = scmp.ne.s32.totalorder %s7137_s2, %s5893_s23  ;;  %p5897_p1 = scmp.lt.u32.totalorder %s5893_s23, %s7137_s2 }
   0x7   :  { %p5899_p2 = pnand %p5897_p1, %p5894_p0 }
   0x9   :  { %5902 = shalt.err (!%p5899_p2)
}
   0xa   :  { %s5903_s28 = scalar_lea.vmem %s39_s18, 6144  ;;  %p5908_p4 = scmp.lt.s32.totalorder %s39_s18, %s39_s18 }
   0xb   :  { %p5904_p3 = scmp.ne.s32.totalorder %s39_s18, %s5903_s28  ;;  %p5909_p5 = scmp.lt.s32.totalorder %s5903_s28, %s5903_s28 }
   0xd   :  { %p5910_p6 = por %p5909_p5, %p5908_p4 }
   0xf   :  { %p5911_p7 = pnand %p5910_p6, %p5904_p3 }
  0x11   :  { %5914 = shalt.err (!%p5911_p7)
}
  0x12   :  { %s5989_s29 = smov 384   ;;  %s5990_s30 = smov 24  }
  0x13   :  { %44 = dma.hbm_to_vmem [thread:$0]  %s7137_s2, 6144, %s39_s18, [#allocation8], %s5989_s29, %s5989_s29, %s5990_s30  }
  0x14   :  { %s5915_s16 = scalar_lea.hbm %s7136_s1, 768 }
  0x15   :  { %p5916_p8 = scmp.ne.s32.totalorder %s7136_s1, %s5915_s16  ;;  %p5919_p9 = scmp.lt.u32.totalorder %s5915_s16, %s7136_s1 }
  0x17   :  { %p5921_p10 = pnand %p5919_p9, %p5916_p8 }
  0x19   :  { %5924 = shalt.err (!%p5921_p10)
}
  0x1a   :  { %s5925_s23 = scalar_lea.vmem %s6056_s20, 768  ;;  %p5930_p12 = scmp.lt.s32.totalorder %s6056_s20, %s6056_s20 }
  0x1b   :  { %p5926_p11 = scmp.ne.s32.totalorder %s6056_s20, %s5925_s23  ;;  %p5931_p13 = scmp.lt.s32.totalorder %s5925_s23, %s5925_s23 }
  0x1d   :  { %p5932_p0 = por %p5931_p13, %p5930_p12 }
  0x1f   :  { %p5933_p1 = pnand %p5932_p0, %p5926_p11 }
  0x21   :  { %5936 = shalt.err (!%p5933_p1)
}
  0x22   :  { %32 = dma.hbm_to_vmem [thread:$0]  %s7136_s1, 768, %s6056_s20, [#allocation6], %s5989_s29, %s5989_s29, %s5990_s30  }
  0x23   :  { %s5991_s24 = smov [#allocation9]   ;;  %s5992_s26 = smov [#allocation10]  }
  0x24   :  { %s54_s25 = sshll.u32 %s5991_s24, 4  ;;  %s66_s27 = sshll.u32 %s5992_s26, 4  ;;  %s55_s25 = int_to_ptr.vmem [resolvable:$true] %s54_s25  ;;  %s6093_s27 = int_to_ptr.vmem [resolvable:$true] %s66_s27 }
  0x25   :  { %s5937_s13 = scalar_lea.hbm %s7140_s5, 6144 }
  0x26   :  { %p5938_p2 = scmp.ne.s32.totalorder %s7140_s5, %s5937_s13  ;;  %p5941_p3 = scmp.lt.u32.totalorder %s5937_s13, %s7140_s5 }
  0x28   :  { %p5943_p4 = pnand %p5941_p3, %p5938_p2 }
  0x2a   :  { %5946 = shalt.err (!%p5943_p4)
}
  0x2b   :  { %s5947_s1 = scalar_lea.vmem %s55_s25, 6144  ;;  %p5952_p6 = scmp.lt.s32.totalorder %s55_s25, %s55_s25 }
  0x2c   :  { %p5948_p5 = scmp.ne.s32.totalorder %s55_s25, %s5947_s1  ;;  %p5953_p7 = scmp.lt.s32.totalorder %s5947_s1, %s5947_s1 }
  0x2e   :  { %p5954_p8 = por %p5953_p7, %p5952_p6 }
  0x30   :  { %p5955_p9 = pnand %p5954_p8, %p5948_p5 }
  0x32   :  { %5958 = shalt.err (!%p5955_p9)
}
  0x33   :  { %60 = dma.hbm_to_vmem [thread:$0]  %s7140_s5, 6144, %s55_s25, [#allocation8], %s5989_s29, %s5989_s29, %s5990_s30  }
  0x34   :  { %s5959_s23 = scalar_lea.hbm %s7141_s6, 6144 }
  0x35   :  { %p5960_p10 = scmp.ne.s32.totalorder %s7141_s6, %s5959_s23  ;;  %p5963_p11 = scmp.lt.u32.totalorder %s5959_s23, %s7141_s6 }
  0x37   :  { %p5965_p12 = pnand %p5963_p11, %p5960_p10 }
  0x39   :  { %5968 = shalt.err (!%p5965_p12)
}
  0x3a   :  { %s5969_s28 = scalar_lea.vmem %s6093_s27, 6144  ;;  %p5974_p0 = scmp.lt.s32.totalorder %s6093_s27, %s6093_s27 }
  0x3b   :  { %p5970_p13 = scmp.ne.s32.totalorder %s6093_s27, %s5969_s28  ;;  %p5975_p1 = scmp.lt.s32.totalorder %s5969_s28, %s5969_s28 }
  0x3d   :  { %p5976_p2 = por %p5975_p1, %p5974_p0 }
  0x3f   :  { %p5977_p3 = pnand %p5976_p2, %p5970_p13 }
  0x41   :  { %5980 = shalt.err (!%p5977_p3)
}
  0x42   :  { %72 = dma.hbm_to_vmem [thread:$0]  %s7141_s6, 6144, %s6093_s27, [#allocation11], %s5989_s29, %s5989_s29, %s5990_s30  }
  0x43   :  { %5981 = dma.done.wait [#allocation6], 768  }
  0x44   :  { %5982 = vsyncadd [#allocation6], 4294966528 }
  0x45   :  { %5983 = dma.done.wait [#allocation8], 12288  }
  0x46   :  { %5984 = vsyncadd [#allocation8], 4294955008 }
  0x47   :  { %5985 = dma.done.wait [#allocation11], 6144  }
  0x48   :  { %5986 = vsyncadd [#allocation11], 4294961152  ;;  %v5993_v0 = vmov 0.0   ;;  %v102_v1 = vld [vmem:[#allocation5 + $0x8] sm:$0xff]  ;;  %v105_v2 = vld [vmem:[#allocation5 + $0x20] sm:$0xff]  ;;  %vm124_vm0 = vcmask 130048  }
  0x49   :  { %213 = vmatprep.mubr.f32.mxu0 %v5993_v0  ;;  %v101_v3 = vld [vmem:[#allocation5] sm:$0xff]  ;;  %v4667_v4 = vpack.c.bf16 %v105_v2, %v102_v1  ;;  %v104_v5 = vld [vmem:[#allocation5 + $0x18] sm:$0xff]  ;;  %v395_v9 = vld [vmem:[#allocation7 + $0x20] sm:$0xff]  ;;  %v5994_v48 = vmov 0.0|0.0   ;;  %vm5995_vm1 = vmmov 0  }
  0x4a   :  { %v93_v6 = vld [vmem:[%s7135_s0] sm:$0xff]  ;;  %v392_v7 = vld [vmem:[#allocation7 + $0x8] sm:$0xff]  ;;  %v4669_v8 = vpack.c.bf16 %v104_v5, %v101_v3  ;;  %v391_v10 = vld [vmem:[#allocation7] sm:$0xff] }
  0x4b   :  { %v394_v11 = vld [vmem:[#allocation7 + $0x18] sm:$0xff]  ;;  %4016 = vmatprep.mubr.msk.f32.mxu1 %vm124_vm0, %v93_v6  ;;  %4668 = vmatprep.subr.bf16.mxu0 %v4667_v4  ;;  %v6135_v12 = vpack.c.bf16 %v395_v9, %v392_v7  ;;  %v401_v14 = vld [vmem:[#allocation7 + $0x50] sm:$0xff]  ;;  %v400_v18 = vld [vmem:[#allocation7 + $0x48] sm:$0xff] }
  0x4c   :  { %v398_v13 = vld [vmem:[#allocation7 + $0x38] sm:$0xff]  ;;  %4670 = vmatpush1.bf16.msra.mxu0 %v4669_v8  ;;  %v6137_v15 = vpack.c.bf16 %v394_v11, %v391_v10  ;;  %v397_v17 = vld [vmem:[#allocation7 + $0x30] sm:$0xff]  ;;  %v404_v19 = vld [vmem:[#allocation7 + $0x68] sm:$0xff] }
  0x4d   :  { %4676 = vmatprep.subr.bf16.mxu0 %v6135_v12  ;;  %v6140_v16 = vpack.c.bf16 %v401_v14, %v398_v13  ;;  %v407_v20 = vld [vmem:[#allocation7 + $0x80] sm:$0xff]  ;;  %v94_v21 = vld [vmem:[%s7135_s0 + $0x8] sm:$0xff]  ;;  %v6148_v22 = vpack.c.bf16 %v400_v18, %v397_v17  ;;  %v413_v27 = vld [vmem:[#allocation7 + $0xb0] sm:$0xff] }
  0x4e   :  { %v6151_v23 = vpack.c.bf16 %v407_v20, %v404_v19  ;;  %v403_v24 = vld [vmem:[#allocation7 + $0x60] sm:$0xff]  ;;  %v406_v25 = vld [vmem:[#allocation7 + $0x78] sm:$0xff]  ;;  %v409_v34 = vld [vmem:[#allocation7 + $0x90] sm:$0xff] }
  0x4f   :  { %3638 = vmatmul.mubr.msk.f32.vlgmr.msra.gmra.mrb[0].mxu0 %vm124_vm0, %v93_v6  ;;  %v410_v26 = vld [vmem:[#allocation7 + $0x98] sm:$0xff]  ;;  %v103_v28 = vld [vmem:[#allocation5 + $0x10] sm:$0xff]  ;;  %v6159_v31 = vpack.c.bf16 %v406_v25, %v403_v24  ;;  %v412_v35 = vld [vmem:[#allocation7 + $0xa8] sm:$0xff] }
  0x50   :  { %4678 = vmatpush1.bf16.msra.mxu0 %v6137_v15  ;;  %219 = vmatprep.mubr.f32.mxu0 %v5993_v0  ;;  %v106_v29 = vld [vmem:[#allocation5 + $0x28] sm:$0xff]  ;;  %v95_v30 = vld [vmem:[%s7135_s0 + $0x10] sm:$0xff]  ;;  %v6162_v33 = vpack.c.bf16 %v413_v27, %v410_v26  ;;  %v393_v36 = vld [vmem:[#allocation7 + $0x10] sm:$0xff]  ;;  %v6172_v42 = vpack.c.bf16 %v412_v35, %v409_v34  ;;  %v109_v35 = vlaneseq }
  0x51   :  { %4680 = vmatprep.subr.bf16.mxu0 %v6140_v16  ;;  %v4671_v32 = vpack.c.bf16 %v106_v29, %v103_v28  ;;  %v416_v37 = vld [vmem:[#allocation7 + $0xc8] sm:$0xff]  ;;  %v419_v38 = vld [vmem:[#allocation7 + $0xe0] sm:$0xff]  ;;  %v402_v44 = vld [vmem:[#allocation7 + $0x58] sm:$0xff] }
  0x52   :  { %v396_v39 = vld [vmem:[#allocation7 + $0x28] sm:$0xff]  ;;  %v399_v43 = vld [vmem:[#allocation7 + $0x40] sm:$0xff]  ;;  %v6175_v45 = vpack.c.bf16 %v419_v38, %v416_v37  ;;  %v418_v47 = vld [vmem:[#allocation7 + $0xd8] sm:$0xff] }
  0x53   :  { %3639 = vmatmul.mubr.msk.f32.gmra.mrb[2].mxu0 %vm124_vm0, %v94_v21  ;;  %4672 = vmatprep.subr.bf16.mxu1 %v4671_v32  ;;  %v6165_v40 = vpack.c.bf16 %v396_v39, %v393_v36  ;;  %v96_v41 = vld [vmem:[%s7135_s0 + $0x18] sm:$0xff]  ;;  %v415_v46 = vld [vmem:[#allocation7 + $0xc0] sm:$0xff]  ;;  %v422_v49 = vld [vmem:[#allocation7 + $0xf8] sm:$0xff]  ;;  %v6181_v51 = vpack.c.bf16 %v402_v44, %v399_v43  ;;  %v6300_v36 = vshrl.u32 %v109_v35, 7 }
  0x54   :  { %4682 = vmatpush1.bf16.msra.mxu0 %v6148_v22  ;;  %225 = vmatprep.mubr.f32.mxu0 %v5993_v0  ;;  %v425_v50 = vld [vmem:[#allocation7 + $0x110] sm:$0xff]  ;;  %v6188_v53 = vpack.c.bf16 %v418_v47, %v415_v46  ;;  %v408_v55 = vld [vmem:[#allocation7 + $0x88] sm:$0xff]  ;;  %v431_v60 = vld [vmem:[#allocation7 + $0x140] sm:$0xff] }
  0x55   :  { %4684 = vmatprep.subr.bf16.mxu0 %v6151_v23  ;;  %4674 = vmatpush3.bf16.msra.mxu1 %v4671_v32  ;;  %v97_v52 = vld [vmem:[%s7135_s0 + $0x20] sm:$0xff]  ;;  %v6191_v56 = vpack.c.bf16 %v425_v50, %v422_v49  ;;  %v424_v58 = vld [vmem:[#allocation7 + $0x108] sm:$0xff]  ;;  %v98_v62 = vld [vmem:[%s7135_s0 + $0x28] sm:$0xff]  ;;  %v119_v37 = vsub.s32 2, %v6300_v36 }
  0x56   :  { %4707 = vmatprep.subr.bf16.mxu1 %v5994_v48  ;;  %v405_v54 = vld [vmem:[#allocation7 + $0x70] sm:$0xff]  ;;  %v428_v59 = vld [vmem:[#allocation7 + $0x128] sm:$0xff]  ;;  %v411_v1 = vld [vmem:[#allocation7 + $0xa0] sm:$0xff] }
  0x57   :  { %3640 = vmatmul.mubr.msk.f32.gmra.mrb[4].mxu0 %vm124_vm0, %v95_v30  ;;  %v421_v57 = vld [vmem:[#allocation7 + $0xf0] sm:$0xff]  ;;  %v6197_v61 = vpack.c.bf16 %v408_v55, %v405_v54  ;;  %v414_v2 = vld [vmem:[#allocation7 + $0xb8] sm:$0xff]  ;;  %v6207_v3 = vpack.c.bf16 %v431_v60, %v428_v59  ;;  %v427_v4 = vld [vmem:[#allocation7 + $0x120] sm:$0xff] }
  0x58   :  { %4686 = vmatpush1.bf16.msra.mxu0 %v6159_v31  ;;  %231 = vmatprep.mubr.f32.mxu0 %v5993_v0  ;;  %v6204_v63 = vpack.c.bf16 %v424_v58, %v421_v57  ;;  %v430_v5 = vld [vmem:[#allocation7 + $0x138] sm:$0xff]  ;;  %v437_v7 = vld [vmem:[#allocation7 + $0x170] sm:$0xff]  ;;  %v6213_v8 = vpack.c.bf16 %v414_v2, %v411_v1  ;;  %v99_v9 = vld [vmem:[%s7135_s0 + $0x30] sm:$0xff] }
  0x59   :  { %4688 = vmatprep.subr.bf16.mxu0 %v6162_v33  ;;  %4017 = vmatmul.mubr.msk.f32.vlgmr.msra.gmra.mrb[0].mxu1 %vm124_vm0, %v94_v21  ;;  %v434_v6 = vld [vmem:[#allocation7 + $0x158] sm:$0xff]  ;;  %v6220_v10 = vpack.c.bf16 %v430_v5, %v427_v4  ;;  %v417_v11 = vld [vmem:[#allocation7 + $0xd0] sm:$0xff]  ;;  %v420_v13 = vld [vmem:[#allocation7 + $0xe8] sm:$0xff]  ;;  %v115_v5 = vsub.s32 1, %v6300_v36 }
  0x5a   :  { %4709 = vmatpush3.bf16.msra.mxu1 %v6165_v40  ;;  %4019 = vmatprep.mubr.msk.f32.mxu1 %vm124_vm0, %v95_v30  ;;  %v6223_v14 = vpack.c.bf16 %v437_v7, %v434_v6  ;;  %v433_v17 = vld [vmem:[#allocation7 + $0x150] sm:$0xff]  ;;  %v436_v18 = vld [vmem:[#allocation7 + $0x168] sm:$0xff]  ;;  %v6229_v19 = vpack.c.bf16 %v420_v13, %v417_v11  ;;  %v423_v24 = vld [vmem:[#allocation7 + $0x100] sm:$0xff] }
  0x5b   :  { %3641 = vmatmul.mubr.msk.f32.gmra.mrb[6].mxu0 %vm124_vm0, %v96_v41  ;;  %4710 = vmatprep.subr.bf16.mxu1 %v5994_v48  ;;  %v100_v20 = vld [vmem:[%s7135_s0 + $0x38] sm:$0xff]  ;;  %v6236_v21 = vpack.c.bf16 %v436_v18, %v433_v17  ;;  %v426_v25 = vld [vmem:[#allocation7 + $0x118] sm:$0xff]  ;;  %v429_v27 = vld [vmem:[#allocation7 + $0x130] sm:$0xff] }
  0x5c   :  { %4690 = vmatpush1.bf16.msra.mxu0 %v6172_v42  ;;  %237 = vmatprep.mubr.f32.mxu0 %v5993_v0  ;;  %v6243_v26 = vpack.c.bf16 %v426_v25, %v423_v24  ;;  %v432_v28 = vld [vmem:[#allocation7 + $0x148] sm:$0xff]  ;;  %v435_v30 = vld [vmem:[#allocation7 + $0x160] sm:$0xff]  ;;  %v438_v32 = vld [vmem:[#allocation7 + $0x178] sm:$0xff] }
  0x5d   :  { %4692 = vmatprep.subr.bf16.mxu0 %v6175_v45  ;;  %4020 = vmatmul.mubr.msk.f32.gmra.mrb[2].mxu1 %vm124_vm0, %v96_v41  ;;  %v6253_v29 = vpack.c.bf16 %v432_v28, %v429_v27  ;;  %v6262_v34 = vpack.c.bf16 %v438_v32, %v435_v30  ;;  %v107_v38 = vld [vmem:[%s7138_s3] sm:$0x7] }
  0x5e   :  { %4712 = vmatpush3.bf16.msra.mxu1 %v6181_v51  ;;  %4022 = vmatprep.mubr.msk.f32.mxu1 %vm124_vm0, %v97_v52  ;;  %v120_v39 = vrot.slane %v107_v38, %v119_v37  ;;  %v6331_v11 = vrot.slane %v107_v38, %v115_v5  ;;  %v6337_v27 = vld [vmem:[%s7139_s4] ss:$0 sm:$0xff] }
  0x5f   :  { %3642 = vmatmul.mubr.msk.f32.gmra.mrb[8].mxu0 %vm124_vm0, %v97_v52  ;;  %4713 = vmatprep.subr.bf16.mxu1 %v5994_v48  ;;  %v111_v52 = vsub.s32 0, %v6300_v36 }
  0x60   :  { %4694 = vmatpush1.bf16.msra.mxu0 %v6188_v53  ;;  %243 = vmatprep.mubr.f32.mxu0 %v5993_v0 }
  0x61   :  { %4696 = vmatprep.subr.bf16.mxu0 %v6191_v56  ;;  %4023 = vmatmul.mubr.msk.f32.gmra.mrb[4].mxu1 %vm124_vm0, %v98_v62  ;;  %v6319_v58 = vrot.slane %v107_v38, %v111_v52 }
  0x62   :  { %4715 = vmatpush3.bf16.msra.mxu1 %v6197_v61  ;;  %4025 = vmatprep.mubr.msk.f32.mxu1 %vm124_vm0, %v99_v9 }
  0x63   :  { %3643 = vmatmul.mubr.msk.f32.gmra.mrb[10].mxu0 %vm124_vm0, %v98_v62  ;;  %4716 = vmatprep.subr.bf16.mxu1 %v5994_v48 }
  0x64   :  { %4698 = vmatpush1.bf16.msra.mxu0 %v6204_v63  ;;  %249 = vmatprep.mubr.f32.mxu0 %v5993_v0 }
  0x65   :  { %4700 = vmatprep.subr.bf16.mxu0 %v6207_v3  ;;  %4026 = vmatmul.mubr.msk.f32.gmra.mrb[6].mxu1 %vm124_vm0, %v100_v20 }
  0x66   :  { %4718 = vmatpush3.bf16.msra.mxu1 %v6213_v8  ;;  %4060 = vmatprep.mubr.msk.f32.mxu1 %vm5995_vm1, %v5993_v0 }
  0x67   :  { %3644 = vmatmul.mubr.msk.f32.gmra.mrb[12].mxu0 %vm124_vm0, %v99_v9  ;;  %4719 = vmatprep.subr.bf16.mxu1 %v5994_v48 }
  0x68   :  { %4702 = vmatpush1.bf16.msra.mxu0 %v6220_v10  ;;  %255 = vmatprep.mubr.f32.mxu0 %v5993_v0 }
  0x69   :  { %4704 = vmatprep.subr.bf16.mxu0 %v6223_v14 }
  0x6a   :  { %4721 = vmatpush3.bf16.msra.mxu1 %v6229_v19 }
  0x6b   :  { %3645 = vmatmul.mubr.msk.f32.gmra.mrb[14].mxu0 %vm124_vm0, %v100_v20  ;;  %4722 = vmatprep.subr.bf16.mxu1 %v5994_v48 }
  0x6c   :  { %4706 = vmatpush1.bf16.msra.mxu0 %v6236_v21  ;;  %518 = vmatprep.mubr.f32.mxu0 %v5993_v0 }
  0x6d   :  { %4732 = vmatprep.subr.bf16.mxu0 %v6135_v12 }
  0x6e   :  { %4724 = vmatpush3.bf16.msra.mxu1 %v6243_v26 }
  0x6f   :  { %519 = vmatmul.mubr.f32.vlgmr.msra.gmra.mrb[0].mxu0 %v5993_v0  ;;  %4725 = vmatprep.subr.bf16.mxu1 %v5994_v48 }
  0x70   :  { %4734 = vmatpush1.bf16.msra.mxu0 %v6137_v15  ;;  %689 = vmatprep.mubr.f32.mxu0 %v5993_v0 }
  0x71   :  { %4736 = vmatprep.subr.bf16.mxu0 %v6140_v16 }
  0x72   :  { %4727 = vmatpush3.bf16.msra.mxu1 %v6253_v29 }
  0x73   :  { %4728 = vmatprep.subr.bf16.mxu1 %v5994_v48 }
  0x74   :  { %4738 = vmatpush1.bf16.msra.mxu0 %v6148_v22 }
  0x75   :  { %4740 = vmatprep.subr.bf16.mxu0 %v6151_v23 }
  0x76   :  { %4730 = vmatpush3.bf16.msra.mxu1 %v6262_v34 }
  0x77   :  { %4763 = vmatprep.subr.bf16.mxu1 %v5994_v48 }
  0x78   :  { %4742 = vmatpush1.bf16.msra.mxu0 %v6159_v31 }
  0x79   :  { %4061 = vmatmul.mubr.f32.vlgmr.msra.gmra.mrb[8].mxu1 %v5993_v0  ;;  %4744 = vmatprep.subr.bf16.mxu0 %v6162_v33 }
  0x7a   :  { %4765 = vmatpush3.bf16.msra.mxu1 %v6165_v40  ;;  %4095 = vmatprep.mubr.msk.f32.mxu1 %vm5995_vm1, %v5993_v0 }
  0x7b   :  { %4766 = vmatprep.subr.bf16.mxu1 %v5994_v48 }
  0x7c   :  { %4746 = vmatpush1.bf16.msra.mxu0 %v6172_v42 }
  0x7d   :  { %4748 = vmatprep.subr.bf16.mxu0 %v6175_v45 }
  0x7e   :  { %4768 = vmatpush3.bf16.msra.mxu1 %v6181_v51 }
  0x7f   :  { %4769 = vmatprep.subr.bf16.mxu1 %v5994_v48 }
  0x80   :  { %4750 = vmatpush1.bf16.msra.mxu0 %v6188_v53 }
  0x81   :  { %4752 = vmatprep.subr.bf16.mxu0 %v6191_v56 }
  0x82   :  { %4771 = vmatpush3.bf16.msra.mxu1 %v6197_v61 }
  0x83   :  { %4772 = vmatprep.subr.bf16.mxu1 %v5994_v48 }
  0x84   :  { %4754 = vmatpush1.bf16.msra.mxu0 %v6204_v63 }
  0x85   :  { %4756 = vmatprep.subr.bf16.mxu0 %v6207_v3 }
  0x86   :  { %4774 = vmatpush3.bf16.msra.mxu1 %v6213_v8 }
  0x87   :  { %4775 = vmatprep.subr.bf16.mxu1 %v5994_v48 }
  0x88   :  { %4758 = vmatpush1.bf16.msra.mxu0 %v6220_v10 }
  0x89   :  { %4760 = vmatprep.subr.bf16.mxu0 %v6223_v14 }
  0x8a   :  { %4777 = vmatpush3.bf16.msra.mxu1 %v6229_v19 }
  0x8b   :  { %4778 = vmatprep.subr.bf16.mxu1 %v5994_v48 }
  0x8c   :  { %4762 = vmatpush1.bf16.msra.mxu0 %v6236_v21 }
  0x8d   :  { %4788 = vmatprep.subr.bf16.mxu0 %v6135_v12 }
  0x8e   :  { %4780 = vmatpush3.bf16.msra.mxu1 %v6243_v26 }
  0x8f   :  { %4781 = vmatprep.subr.bf16.mxu1 %v5994_v48 }
  0x92   :  { %4783 = vmatpush3.bf16.msra.mxu1 %v6253_v29 }
  0x93   :  { %4784 = vmatprep.subr.bf16.mxu1 %v5994_v48 }
  0x96   :  { %4786 = vmatpush3.bf16.msra.mxu1 %v6262_v34 }
  0x97   :  { %4819 = vmatprep.subr.bf16.mxu1 %v5994_v48 }
 0x12c   :  { %v4018_v41 = vpop.f32.mrb[0].mxu1 }
 0x12d   :  { %v6308_v43 = vadd.f32 %v4018_v41, %v120_v39  ;;  %v328_v44 = vpop.f32.mrb[1].mxu1 }
 0x12e   :  { %v329_v35 = vadd.f32 %v328_v44, %v120_v39 }
 0x130   :  { %v4021_v46 = vpop.f32.mrb[2].mxu1 }
 0x131   :  { %v6310_v47 = vadd.f32 %v4021_v46, %v120_v39  ;;  %v338_v49 = vpop.f32.mrb[3].mxu1 }
 0x132   :  { %v6312_v50 = vadd.f32 %v338_v49, %v120_v39 }
 0x134   :  { %v4024_v54 = vpop.f32.mrb[4].mxu1 }
 0x135   :  { %v6315_v55 = vadd.f32 %v4024_v54, %v120_v39  ;;  %v348_v57 = vpop.f32.mrb[5].mxu1 }
 0x136   :  { %v6321_v59 = vadd.f32 %v348_v57, %v120_v39 }
 0x138   :  { %v4027_v60 = vpop.f32.mrb[6].mxu1 }
 0x139   :  { %v6323_v1 = vadd.f32 %v4027_v60, %v120_v39  ;;  %v358_v2 = vpop.f32.mrb[7].mxu1 }
 0x13a   :  { %v6327_v7 = vadd.f32 %v358_v2, %v120_v39 }
 0x142   :  { %v520_v62 = vpop.f32.mrb[0].mxu0 }
 0x143   :  { %v5659_v4 = vadd.f32 %v520_v62, %v6319_v58  ;;  %v522_v6 = vpop.f32.mrb[1].mxu0 }
 0x144   :  { %v5660_v13 = vadd.f32 %v522_v6, %v6331_v11 }
 0x145   :  { %v3655_v9 = vmul.f32 -1.442695, %v5659_v4 }
 0x146   :  { %v3656_v20 = vmul.f32 -1.442695, %v5660_v13 }
 0x147   :  { %5732 = vpow2.f32 %v3655_v9 }
 0x148   :  { %5734 = vpow2.f32 %v3656_v20 }
 0x14c   :  { %v591_v17 = vpop.f32.mrb[8].mxu1 }
 0x14d   :  { %v4062_v18 = vpop.f32.mrb[9].mxu1  ;;  %v609_v28 = vadd.f32 %v6337_v27, %v591_v17 }
 0x151   :  { %v5733_v24 = vpop.eup %5732 }
 0x152   :  { %v599_v25 = vadd.f32 1.0, %v5733_v24  ;;  %v5735_v30 = vpop.eup %5734 }
 0x153   :  { %v606_v41 = vadd.f32 1.0, %v5735_v30 }
 0x154   :  { %5736 = vrcp.f32 %v599_v25 }
 0x15e   :  { %v5737_v32 = vpop.eup %5736 }
 0x15f   :  { %v610_v38 = vmul.f32 %v5737_v32, %v609_v28 }
 0x161   :  { %v611_v46 = vadd.f32 %v610_v38, %v329_v35 }
 0x163   :  { %5738 = vtanh.f32 %v611_v46 }
 0x164   :  { %5740 = vrcp.f32 %v606_v41 }
 0x16d   :  { %v5739_v49 = vpop.eup %5738 }
 0x16e   :  { %v613_v54 = vsub.f32 0.0, %v5739_v49  ;;  %v5741_v57 = vpop.eup %5740 }
 0x170   :  { %v614_v60 = vmul.f32 %v5741_v57, %v613_v54 }
 0x172   :  { %v6340_v62 = vadd.f32 %v5739_v49, %v614_v60 }
 0x174   :  { %690 = vmatmul.mubr.f32.vlgmr.msra.gmra.mrb[2].mxu0 %v6340_v62  ;;  %4096 = vmatmul.mubr.f32.vlgmr.msra.gmra.mrb[10].mxu1 %v6340_v62 }
 0x175   :  { %4790 = vmatpush1.bf16.msra.mxu0 %v6137_v15  ;;  %4821 = vmatpush3.bf16.msra.mxu1 %v6165_v40 }
 0x176   :  { %4792 = vmatprep.subr.bf16.mxu0 %v6140_v16  ;;  %4822 = vmatprep.subr.bf16.mxu1 %v5994_v48 }
 0x177   :  { %861 = vmatprep.mubr.f32.mxu0 %v5993_v0  ;;  %4130 = vmatprep.mubr.msk.f32.mxu1 %vm5995_vm1, %v5993_v0 }
 0x179   :  { %4794 = vmatpush1.bf16.msra.mxu0 %v6148_v22  ;;  %4824 = vmatpush3.bf16.msra.mxu1 %v6181_v51 }
 0x17a   :  { %4796 = vmatprep.subr.bf16.mxu0 %v6151_v23  ;;  %4825 = vmatprep.subr.bf16.mxu1 %v5994_v48 }
 0x17d   :  { %4798 = vmatpush1.bf16.msra.mxu0 %v6159_v31  ;;  %4827 = vmatpush3.bf16.msra.mxu1 %v6197_v61 }
 0x17e   :  { %4800 = vmatprep.subr.bf16.mxu0 %v6162_v33  ;;  %4828 = vmatprep.subr.bf16.mxu1 %v5994_v48 }
 0x181   :  { %4802 = vmatpush1.bf16.msra.mxu0 %v6172_v42  ;;  %4830 = vmatpush3.bf16.msra.mxu1 %v6213_v8 }
 0x182   :  { %4804 = vmatprep.subr.bf16.mxu0 %v6175_v45  ;;  %4831 = vmatprep.subr.bf16.mxu1 %v5994_v48 }
 0x185   :  { %4806 = vmatpush1.bf16.msra.mxu0 %v6188_v53  ;;  %4833 = vmatpush3.bf16.msra.mxu1 %v6229_v19 }
 0x186   :  { %4808 = vmatprep.subr.bf16.mxu0 %v6191_v56  ;;  %4834 = vmatprep.subr.bf16.mxu1 %v5994_v48 }
 0x189   :  { %4810 = vmatpush1.bf16.msra.mxu0 %v6204_v63  ;;  %4836 = vmatpush3.bf16.msra.mxu1 %v6243_v26 }
 0x18a   :  { %4812 = vmatprep.subr.bf16.mxu0 %v6207_v3  ;;  %4837 = vmatprep.subr.bf16.mxu1 %v5994_v48 }
 0x18d   :  { %4814 = vmatpush1.bf16.msra.mxu0 %v6220_v10  ;;  %4839 = vmatpush3.bf16.msra.mxu1 %v6253_v29 }
 0x18e   :  { %4816 = vmatprep.subr.bf16.mxu0 %v6223_v14  ;;  %4840 = vmatprep.subr.bf16.mxu1 %v5994_v48 }
 0x191   :  { %4818 = vmatpush1.bf16.msra.mxu0 %v6236_v21  ;;  %4842 = vmatpush3.bf16.msra.mxu1 %v6262_v34 }
 0x192   :  { %4844 = vmatprep.subr.bf16.mxu0 %v6135_v12  ;;  %4875 = vmatprep.subr.bf16.mxu1 %v5994_v48 }
 0x247   :  { %v691_v39 = vpop.f32.mrb[2].mxu0  ;;  %v762_v44 = vpop.f32.mrb[10].mxu1 }
 0x248   :  { %v5661_v2 = vadd.f32 %v691_v39, %v6319_v58  ;;  %v693_v4 = vpop.f32.mrb[3].mxu0  ;;  %v4097_v6 = vpop.f32.mrb[11].mxu1  ;;  %v780_v25 = vadd.f32 %v6337_v27, %v762_v44 }
 0x249   :  { %v5662_v13 = vadd.f32 %v693_v4, %v6331_v11 }
 0x24a   :  { %v3657_v9 = vmul.f32 -1.442695, %v5661_v2 }
 0x24b   :  { %v3658_v17 = vmul.f32 -1.442695, %v5662_v13 }
 0x24c   :  { %5742 = vpow2.f32 %v3657_v9 }
 0x24d   :  { %5744 = vpow2.f32 %v3658_v17 }
 0x256   :  { %v5743_v18 = vpop.eup %5742 }
 0x257   :  { %v770_v20 = vadd.f32 1.0, %v5743_v18  ;;  %v5745_v24 = vpop.eup %5744 }
 0x258   :  { %v777_v35 = vadd.f32 1.0, %v5745_v24 }
 0x259   :  { %5746 = vrcp.f32 %v770_v20 }
 0x263   :  { %v5747_v28 = vpop.eup %5746 }
 0x264   :  { %v781_v30 = vmul.f32 %v5747_v28, %v780_v25 }
 0x266   :  { %v782_v32 = vadd.f32 %v781_v30, %v6308_v43 }
 0x268   :  { %5748 = vtanh.f32 %v782_v32 }
 0x269   :  { %5750 = vrcp.f32 %v777_v35 }
 0x272   :  { %v5749_v38 = vpop.eup %5748 }
 0x273   :  { %v784_v41 = vsub.f32 %v6340_v62, %v5749_v38  ;;  %v5751_v46 = vpop.eup %5750 }
 0x275   :  { %v785_v49 = vmul.f32 %v5751_v46, %v784_v41 }
 0x277   :  { %v6384_v54 = vadd.f32 %v5749_v38, %v785_v49 }
 0x279   :  { %862 = vmatmul.mubr.f32.vlgmr.msra.gmra.mrb[4].mxu0 %v6384_v54  ;;  %4131 = vmatmul.mubr.f32.vlgmr.msra.gmra.mrb[12].mxu1 %v6384_v54 }
 0x27a   :  { %4846 = vmatpush1.bf16.msra.mxu0 %v6137_v15  ;;  %4877 = vmatpush3.bf16.msra.mxu1 %v6165_v40 }
 0x27b   :  { %4848 = vmatprep.subr.bf16.mxu0 %v6140_v16  ;;  %4878 = vmatprep.subr.bf16.mxu1 %v5994_v48 }
 0x27c   :  { %1033 = vmatprep.mubr.f32.mxu0 %v5993_v0  ;;  %4165 = vmatprep.mubr.msk.f32.mxu1 %vm5995_vm1, %v5993_v0 }
 0x27e   :  { %4850 = vmatpush1.bf16.msra.mxu0 %v6148_v22  ;;  %4880 = vmatpush3.bf16.msra.mxu1 %v6181_v51 }
 0x27f   :  { %4852 = vmatprep.subr.bf16.mxu0 %v6151_v23  ;;  %4881 = vmatprep.subr.bf16.mxu1 %v5994_v48 }
 0x282   :  { %4854 = vmatpush1.bf16.msra.mxu0 %v6159_v31  ;;  %4883 = vmatpush3.bf16.msra.mxu1 %v6197_v61 }
 0x283   :  { %4856 = vmatprep.subr.bf16.mxu0 %v6162_v33  ;;  %4884 = vmatprep.subr.bf16.mxu1 %v5994_v48 }
 0x286   :  { %4858 = vmatpush1.bf16.msra.mxu0 %v6172_v42  ;;  %4886 = vmatpush3.bf16.msra.mxu1 %v6213_v8 }
 0x287   :  { %4860 = vmatprep.subr.bf16.mxu0 %v6175_v45  ;;  %4887 = vmatprep.subr.bf16.mxu1 %v5994_v48 }
 0x28a   :  { %4862 = vmatpush1.bf16.msra.mxu0 %v6188_v53  ;;  %4889 = vmatpush3.bf16.msra.mxu1 %v6229_v19 }
 0x28b   :  { %4864 = vmatprep.subr.bf16.mxu0 %v6191_v56  ;;  %4890 = vmatprep.subr.bf16.mxu1 %v5994_v48 }
 0x28e   :  { %4866 = vmatpush1.bf16.msra.mxu0 %v6204_v63  ;;  %4892 = vmatpush3.bf16.msra.mxu1 %v6243_v26 }
 0x28f   :  { %4868 = vmatprep.subr.bf16.mxu0 %v6207_v3  ;;  %4893 = vmatprep.subr.bf16.mxu1 %v5994_v48 }
 0x292   :  { %4870 = vmatpush1.bf16.msra.mxu0 %v6220_v10  ;;  %4895 = vmatpush3.bf16.msra.mxu1 %v6253_v29 }
 0x293   :  { %4872 = vmatprep.subr.bf16.mxu0 %v6223_v14  ;;  %4896 = vmatprep.subr.bf16.mxu1 %v5994_v48 }
 0x296   :  { %4874 = vmatpush1.bf16.msra.mxu0 %v6236_v21  ;;  %4898 = vmatpush3.bf16.msra.mxu1 %v6262_v34 }
 0x297   :  { %4900 = vmatprep.subr.bf16.mxu0 %v6135_v12  ;;  %4931 = vmatprep.subr.bf16.mxu1 %v5994_v48 }
 0x34c   :  { %v863_v43 = vpop.f32.mrb[4].mxu0  ;;  %v934_v57 = vpop.f32.mrb[12].mxu1 }
 0x34d   :  { %v5663_v60 = vadd.f32 %v863_v43, %v6319_v58  ;;  %v865_v39 = vpop.f32.mrb[5].mxu0  ;;  %v4132_v44 = vpop.f32.mrb[13].mxu1  ;;  %v952_v18 = vadd.f32 %v6337_v27, %v934_v57 }
 0x34e   :  { %v5664_v4 = vadd.f32 %v865_v39, %v6331_v11 }
 0x34f   :  { %v3659_v2 = vmul.f32 -1.442695, %v5663_v60 }
 0x350   :  { %v3660_v6 = vmul.f32 -1.442695, %v5664_v4 }
 0x351   :  { %5752 = vpow2.f32 %v3659_v2 }
 0x352   :  { %5754 = vpow2.f32 %v3660_v6 }
 0x35b   :  { %v5753_v9 = vpop.eup %5752 }
 0x35c   :  { %v942_v13 = vadd.f32 1.0, %v5753_v9  ;;  %v5755_v17 = vpop.eup %5754 }
 0x35d   :  { %v949_v28 = vadd.f32 1.0, %v5755_v17 }
 0x35e   :  { %5756 = vrcp.f32 %v942_v13 }
 0x368   :  { %v5757_v20 = vpop.eup %5756 }
 0x369   :  { %v953_v24 = vmul.f32 %v5757_v20, %v952_v18 }
 0x36b   :  { %v954_v25 = vadd.f32 %v953_v24, %v6312_v50 }
 0x36d   :  { %5758 = vtanh.f32 %v954_v25 }
 0x36e   :  { %5760 = vrcp.f32 %v949_v28 }
 0x377   :  { %v5759_v30 = vpop.eup %5758 }
 0x378   :  { %v956_v32 = vsub.f32 %v6384_v54, %v5759_v30  ;;  %v5761_v35 = vpop.eup %5760 }
 0x37a   :  { %v957_v38 = vmul.f32 %v5761_v35, %v956_v32 }
 0x37c   :  { %v6428_v41 = vadd.f32 %v5759_v30, %v957_v38 }
 0x37e   :  { %1034 = vmatmul.mubr.f32.vlgmr.msra.gmra.mrb[6].mxu0 %v6428_v41  ;;  %4166 = vmatmul.mubr.f32.vlgmr.msra.gmra.mrb[14].mxu1 %v6428_v41 }
 0x37f   :  { %4902 = vmatpush1.bf16.msra.mxu0 %v6137_v15  ;;  %4933 = vmatpush3.bf16.msra.mxu1 %v6165_v40 }
 0x380   :  { %4904 = vmatprep.subr.bf16.mxu0 %v6140_v16  ;;  %4934 = vmatprep.subr.bf16.mxu1 %v5994_v48 }
 0x381   :  { %1205 = vmatprep.mubr.f32.mxu0 %v5993_v0  ;;  %4200 = vmatprep.mubr.msk.f32.mxu1 %vm5995_vm1, %v5993_v0 }
 0x383   :  { %4906 = vmatpush1.bf16.msra.mxu0 %v6148_v22  ;;  %4936 = vmatpush3.bf16.msra.mxu1 %v6181_v51 }
 0x384   :  { %4908 = vmatprep.subr.bf16.mxu0 %v6151_v23  ;;  %4937 = vmatprep.subr.bf16.mxu1 %v5994_v48 }
 0x387   :  { %4910 = vmatpush1.bf16.msra.mxu0 %v6159_v31  ;;  %4939 = vmatpush3.bf16.msra.mxu1 %v6197_v61 }
 0x388   :  { %4912 = vmatprep.subr.bf16.mxu0 %v6162_v33  ;;  %4940 = vmatprep.subr.bf16.mxu1 %v5994_v48 }
 0x38b   :  { %4914 = vmatpush1.bf16.msra.mxu0 %v6172_v42  ;;  %4942 = vmatpush3.bf16.msra.mxu1 %v6213_v8 }
 0x38c   :  { %4916 = vmatprep.subr.bf16.mxu0 %v6175_v45  ;;  %4943 = vmatprep.subr.bf16.mxu1 %v5994_v48 }
 0x38f   :  { %4918 = vmatpush1.bf16.msra.mxu0 %v6188_v53  ;;  %4945 = vmatpush3.bf16.msra.mxu1 %v6229_v19 }
 0x390   :  { %4920 = vmatprep.subr.bf16.mxu0 %v6191_v56  ;;  %4946 = vmatprep.subr.bf16.mxu1 %v5994_v48 }
 0x393   :  { %4922 = vmatpush1.bf16.msra.mxu0 %v6204_v63  ;;  %4948 = vmatpush3.bf16.msra.mxu1 %v6243_v26 }
 0x394   :  { %4924 = vmatprep.subr.bf16.mxu0 %v6207_v3  ;;  %4949 = vmatprep.subr.bf16.mxu1 %v5994_v48 }
 0x397   :  { %4926 = vmatpush1.bf16.msra.mxu0 %v6220_v10  ;;  %4951 = vmatpush3.bf16.msra.mxu1 %v6253_v29 }
 0x398   :  { %4928 = vmatprep.subr.bf16.mxu0 %v6223_v14  ;;  %4952 = vmatprep.subr.bf16.mxu1 %v5994_v48 }
 0x39b   :  { %4930 = vmatpush1.bf16.msra.mxu0 %v6236_v21  ;;  %4954 = vmatpush3.bf16.msra.mxu1 %v6262_v34 }
 0x39c   :  { %4956 = vmatprep.subr.bf16.mxu0 %v6135_v12  ;;  %4987 = vmatprep.subr.bf16.mxu1 %v5994_v48 }
 0x451   :  { %v1035_v50 = vpop.f32.mrb[6].mxu0  ;;  %v1106_v46 = vpop.f32.mrb[14].mxu1 }
 0x452   :  { %v5665_v49 = vadd.f32 %v1035_v50, %v6319_v58  ;;  %v1037_v43 = vpop.f32.mrb[7].mxu0  ;;  %v4167_v57 = vpop.f32.mrb[15].mxu1  ;;  %v1124_v9 = vadd.f32 %v6337_v27, %v1106_v46 }
 0x453   :  { %v5666_v39 = vadd.f32 %v1037_v43, %v6331_v11 }
 0x454   :  { %v3661_v60 = vmul.f32 -1.442695, %v5665_v49 }
 0x455   :  { %v3662_v44 = vmul.f32 -1.442695, %v5666_v39 }
 0x456   :  { %5762 = vpow2.f32 %v3661_v60 }
 0x457   :  { %5764 = vpow2.f32 %v3662_v44 }
 0x460   :  { %v5763_v2 = vpop.eup %5762 }
 0x461   :  { %v1114_v4 = vadd.f32 1.0, %v5763_v2  ;;  %v5765_v6 = vpop.eup %5764 }
 0x462   :  { %v1121_v20 = vadd.f32 1.0, %v5765_v6 }
 0x463   :  { %5766 = vrcp.f32 %v1114_v4 }
 0x46d   :  { %v5767_v13 = vpop.eup %5766 }
 0x46e   :  { %v1125_v17 = vmul.f32 %v5767_v13, %v1124_v9 }
 0x470   :  { %v1126_v18 = vadd.f32 %v1125_v17, %v6310_v47 }
 0x472   :  { %5768 = vtanh.f32 %v1126_v18 }
 0x473   :  { %5770 = vrcp.f32 %v1121_v20 }
 0x47c   :  { %v5769_v24 = vpop.eup %5768 }
 0x47d   :  { %v1128_v25 = vsub.f32 %v6428_v41, %v5769_v24  ;;  %v5771_v28 = vpop.eup %5770 }
 0x47f   :  { %v1129_v30 = vmul.f32 %v5771_v28, %v1128_v25 }
 0x481   :  { %v6472_v32 = vadd.f32 %v5769_v24, %v1129_v30 }
 0x483   :  { %1206 = vmatmul.mubr.f32.vlgmr.msra.gmra.mrb[8].mxu0 %v6472_v32  ;;  %4201 = vmatmul.mubr.f32.vlgmr.msra.gmra.mrb[16].mxu1 %v6472_v32 }
 0x484   :  { %4958 = vmatpush1.bf16.msra.mxu0 %v6137_v15  ;;  %4989 = vmatpush3.bf16.msra.mxu1 %v6165_v40 }
 0x485   :  { %4960 = vmatprep.subr.bf16.mxu0 %v6140_v16  ;;  %4990 = vmatprep.subr.bf16.mxu1 %v5994_v48 }
 0x486   :  { %1377 = vmatprep.mubr.f32.mxu0 %v5993_v0  ;;  %4235 = vmatprep.mubr.msk.f32.mxu1 %vm5995_vm1, %v5993_v0 }
 0x488   :  { %4962 = vmatpush1.bf16.msra.mxu0 %v6148_v22  ;;  %4992 = vmatpush3.bf16.msra.mxu1 %v6181_v51 }
 0x489   :  { %4964 = vmatprep.subr.bf16.mxu0 %v6151_v23  ;;  %4993 = vmatprep.subr.bf16.mxu1 %v5994_v48 }
 0x48c   :  { %4966 = vmatpush1.bf16.msra.mxu0 %v6159_v31  ;;  %4995 = vmatpush3.bf16.msra.mxu1 %v6197_v61 }
 0x48d   :  { %4968 = vmatprep.subr.bf16.mxu0 %v6162_v33  ;;  %4996 = vmatprep.subr.bf16.mxu1 %v5994_v48 }
 0x490   :  { %4970 = vmatpush1.bf16.msra.mxu0 %v6172_v42  ;;  %4998 = vmatpush3.bf16.msra.mxu1 %v6213_v8 }
 0x491   :  { %4972 = vmatprep.subr.bf16.mxu0 %v6175_v45  ;;  %4999 = vmatprep.subr.bf16.mxu1 %v5994_v48 }
 0x494   :  { %4974 = vmatpush1.bf16.msra.mxu0 %v6188_v53  ;;  %5001 = vmatpush3.bf16.msra.mxu1 %v6229_v19 }
 0x495   :  { %4976 = vmatprep.subr.bf16.mxu0 %v6191_v56  ;;  %5002 = vmatprep.subr.bf16.mxu1 %v5994_v48 }
 0x498   :  { %4978 = vmatpush1.bf16.msra.mxu0 %v6204_v63  ;;  %5004 = vmatpush3.bf16.msra.mxu1 %v6243_v26 }
 0x499   :  { %4980 = vmatprep.subr.bf16.mxu0 %v6207_v3  ;;  %5005 = vmatprep.subr.bf16.mxu1 %v5994_v48 }
 0x49c   :  { %4982 = vmatpush1.bf16.msra.mxu0 %v6220_v10  ;;  %5007 = vmatpush3.bf16.msra.mxu1 %v6253_v29 }
 0x49d   :  { %4984 = vmatprep.subr.bf16.mxu0 %v6223_v14  ;;  %5008 = vmatprep.subr.bf16.mxu1 %v5994_v48 }
 0x4a0   :  { %4986 = vmatpush1.bf16.msra.mxu0 %v6236_v21  ;;  %5010 = vmatpush3.bf16.msra.mxu1 %v6262_v34 }
 0x4a1   :  { %5012 = vmatprep.subr.bf16.mxu0 %v6135_v12  ;;  %5043 = vmatprep.subr.bf16.mxu1 %v5994_v48 }
 0x556   :  { %v1207_v47 = vpop.f32.mrb[8].mxu0  ;;  %v1278_v35 = vpop.f32.mrb[16].mxu1 }
 0x557   :  { %v5667_v38 = vadd.f32 %v1207_v47, %v6319_v58  ;;  %v1209_v50 = vpop.f32.mrb[9].mxu0  ;;  %v4202_v46 = vpop.f32.mrb[17].mxu1  ;;  %v1296_v2 = vadd.f32 %v6337_v27, %v1278_v35 }
 0x558   :  { %v5668_v43 = vadd.f32 %v1209_v50, %v6331_v11 }
 0x559   :  { %v3663_v49 = vmul.f32 -1.442695, %v5667_v38 }
 0x55a   :  { %v3664_v57 = vmul.f32 -1.442695, %v5668_v43 }
 0x55b   :  { %5772 = vpow2.f32 %v3663_v49 }
 0x55c   :  { %5774 = vpow2.f32 %v3664_v57 }
 0x565   :  { %v5773_v60 = vpop.eup %5772 }
 0x566   :  { %v1286_v39 = vadd.f32 1.0, %v5773_v60  ;;  %v5775_v44 = vpop.eup %5774 }
 0x567   :  { %v1293_v13 = vadd.f32 1.0, %v5775_v44 }
 0x568   :  { %5776 = vrcp.f32 %v1286_v39 }
 0x572   :  { %v5777_v4 = vpop.eup %5776 }
 0x573   :  { %v1297_v6 = vmul.f32 %v5777_v4, %v1296_v2 }
 0x575   :  { %v1298_v9 = vadd.f32 %v1297_v6, %v6321_v59 }
 0x577   :  { %5778 = vtanh.f32 %v1298_v9 }
 0x578   :  { %5780 = vrcp.f32 %v1293_v13 }
 0x581   :  { %v5779_v17 = vpop.eup %5778 }
 0x582   :  { %v1300_v18 = vsub.f32 %v6472_v32, %v5779_v17  ;;  %v5781_v20 = vpop.eup %5780 }
 0x584   :  { %v1301_v24 = vmul.f32 %v5781_v20, %v1300_v18  ;;  %v1830_v18 = vld [vmem:[#allocation9] sm:$0xff]  ;;  %v1833_v20 = vld [vmem:[#allocation9 + $0x18] sm:$0xff] }
 0x586   :  { %v6516_v25 = vadd.f32 %v5779_v17, %v1301_v24 }
 0x588   :  { %1378 = vmatmul.mubr.f32.vlgmr.msra.gmra.mrb[10].mxu0 %v6516_v25  ;;  %4236 = vmatmul.mubr.f32.vlgmr.msra.gmra.mrb[18].mxu1 %v6516_v25 }
 0x589   :  { %5014 = vmatpush1.bf16.msra.mxu0 %v6137_v15  ;;  %5045 = vmatpush3.bf16.msra.mxu1 %v6165_v40 }
 0x58a   :  { %5016 = vmatprep.subr.bf16.mxu0 %v6140_v16  ;;  %5046 = vmatprep.subr.bf16.mxu1 %v5994_v48 }
 0x58b   :  { %1549 = vmatprep.mubr.f32.mxu0 %v5993_v0  ;;  %4270 = vmatprep.mubr.msk.f32.mxu1 %vm5995_vm1, %v5993_v0 }
 0x58d   :  { %5018 = vmatpush1.bf16.msra.mxu0 %v6148_v22  ;;  %5048 = vmatpush3.bf16.msra.mxu1 %v6181_v51 }
 0x58e   :  { %5020 = vmatprep.subr.bf16.mxu0 %v6151_v23  ;;  %5049 = vmatprep.subr.bf16.mxu1 %v5994_v48 }
 0x591   :  { %5022 = vmatpush1.bf16.msra.mxu0 %v6159_v31  ;;  %5051 = vmatpush3.bf16.msra.mxu1 %v6197_v61 }
 0x592   :  { %5024 = vmatprep.subr.bf16.mxu0 %v6162_v33  ;;  %5052 = vmatprep.subr.bf16.mxu1 %v5994_v48 }
 0x595   :  { %5026 = vmatpush1.bf16.msra.mxu0 %v6172_v42  ;;  %5054 = vmatpush3.bf16.msra.mxu1 %v6213_v8 }
 0x596   :  { %5028 = vmatprep.subr.bf16.mxu0 %v6175_v45  ;;  %5055 = vmatprep.subr.bf16.mxu1 %v5994_v48 }
 0x599   :  { %5030 = vmatpush1.bf16.msra.mxu0 %v6188_v53  ;;  %5057 = vmatpush3.bf16.msra.mxu1 %v6229_v19 }
 0x59a   :  { %5032 = vmatprep.subr.bf16.mxu0 %v6191_v56  ;;  %5058 = vmatprep.subr.bf16.mxu1 %v5994_v48 }
 0x59d   :  { %5034 = vmatpush1.bf16.msra.mxu0 %v6204_v63  ;;  %5060 = vmatpush3.bf16.msra.mxu1 %v6243_v26 }
 0x59e   :  { %5036 = vmatprep.subr.bf16.mxu0 %v6207_v3  ;;  %5061 = vmatprep.subr.bf16.mxu1 %v5994_v48 }
 0x5a1   :  { %5038 = vmatpush1.bf16.msra.mxu0 %v6220_v10  ;;  %5063 = vmatpush3.bf16.msra.mxu1 %v6253_v29 }
 0x5a2   :  { %5040 = vmatprep.subr.bf16.mxu0 %v6223_v14  ;;  %5064 = vmatprep.subr.bf16.mxu1 %v5994_v48 }
 0x5a5   :  { %5042 = vmatpush1.bf16.msra.mxu0 %v6236_v21  ;;  %5066 = vmatpush3.bf16.msra.mxu1 %v6262_v34 }
 0x5a6   :  { %5068 = vmatprep.subr.bf16.mxu0 %v6135_v12  ;;  %5099 = vmatprep.subr.bf16.mxu1 %v5994_v48 }
 0x65b   :  { %v1379_v59 = vpop.f32.mrb[10].mxu0  ;;  %v1450_v28 = vpop.f32.mrb[18].mxu1 }
 0x65c   :  { %v5669_v30 = vadd.f32 %v1379_v59, %v6319_v58  ;;  %v1381_v47 = vpop.f32.mrb[11].mxu0  ;;  %v4237_v35 = vpop.f32.mrb[19].mxu1  ;;  %v1468_v12 = vadd.f32 %v6337_v27, %v1450_v28  ;;  %v1837_v59 = vld [vmem:[#allocation9 + $0x38] sm:$0xff]  ;;  %v1840_v28 = vld [vmem:[#allocation9 + $0x50] sm:$0xff] }
 0x65d   :  { %v5670_v50 = vadd.f32 %v1381_v47, %v6331_v11  ;;  %v1838_v47 = vld [vmem:[#allocation9 + $0x40] sm:$0xff]  ;;  %v1841_v35 = vld [vmem:[#allocation9 + $0x58] sm:$0xff] }
 0x65e   :  { %v3665_v38 = vmul.f32 -1.442695, %v5669_v30 }
 0x65f   :  { %v3666_v46 = vmul.f32 -1.442695, %v5670_v50  ;;  %v5127_v50 = vpack.c.bf16 %v1840_v28, %v1837_v59  ;;  %v1868_v59 = vld [vmem:[#allocation9 + $0x130] sm:$0xff]  ;;  %v1871_v28 = vld [vmem:[#allocation9 + $0x148] sm:$0xff] }
 0x660   :  { %5782 = vpow2.f32 %v3665_v38  ;;  %v5125_v38 = vpack.c.bf16 %v1833_v20, %v1830_v18  ;;  %v1863_v18 = vld [vmem:[#allocation9 + $0x108] sm:$0xff] }
 0x661   :  { %5784 = vpow2.f32 %v3666_v46  ;;  %v1836_v46 = vld [vmem:[#allocation9 + $0x30] sm:$0xff]  ;;  %v1867_v20 = vld [vmem:[#allocation9 + $0x128] sm:$0xff] }
 0x66a   :  { %v5783_v49 = vpop.eup %5782 }
 0x66b   :  { %v1458_v43 = vadd.f32 1.0, %v5783_v49  ;;  %v5785_v57 = vpop.eup %5784  ;;  %v1843_v49 = vld [vmem:[#allocation9 + $0x68] sm:$0xff] }
 0x66c   :  { %v1465_v2 = vadd.f32 1.0, %v5785_v57  ;;  %v1846_v57 = vld [vmem:[#allocation9 + $0x80] sm:$0xff] }
 0x66d   :  { %5786 = vrcp.f32 %v1458_v43  ;;  %v5159_v43 = vpack.c.bf16 %v1841_v35, %v1838_v47  ;;  %v5179_v35 = vpack.c.bf16 %v1871_v28, %v1868_v59  ;;  %v2177_v59 = vld [vmem:[#allocation10 + $0x140] sm:$0xff] }
 0x66e   :  { %v2173_v28 = vld [vmem:[#allocation10 + $0x120] sm:$0xff] }
 0x677   :  { %v5787_v60 = vpop.eup %5786 }
 0x678   :  { %v1469_v39 = vmul.f32 %v5787_v60, %v1468_v12  ;;  %v1844_v12 = vld [vmem:[#allocation9 + $0x70] sm:$0xff]  ;;  %v1847_v60 = vld [vmem:[#allocation9 + $0x88] sm:$0xff] }
 0x67a   :  { %v1470_v44 = vadd.f32 %v1469_v39, %v6315_v55 }
 0x67c   :  { %5788 = vtanh.f32 %v1470_v44  ;;  %v5131_v44 = vpack.c.bf16 %v1846_v57, %v1843_v49  ;;  %v1874_v49 = vld [vmem:[#allocation9 + $0x160] sm:$0xff] }
 0x67d   :  { %5790 = vrcp.f32 %v1465_v2  ;;  %v5163_v2 = vpack.c.bf16 %v1847_v60, %v1844_v12 }
 0x686   :  { %v5789_v4 = vpop.eup %5788 }
 0x687   :  { %v1472_v6 = vsub.f32 %v6516_v25, %v5789_v4  ;;  %v5791_v9 = vpop.eup %5790 }
 0x689   :  { %v1473_v13 = vmul.f32 %v5791_v9, %v1472_v6  ;;  %v1845_v6 = vld [vmem:[#allocation9 + $0x78] sm:$0xff] }
 0x68a   :  { %v1849_v9 = vld [vmem:[#allocation9 + $0x98] sm:$0xff] }
 0x68b   :  { %v6560_v17 = vadd.f32 %v5789_v4, %v1473_v13  ;;  %v1842_v4 = vld [vmem:[#allocation9 + $0x60] sm:$0xff]  ;;  %v1852_v13 = vld [vmem:[#allocation9 + $0xb0] sm:$0xff] }
 0x68d   :  { %1550 = vmatmul.mubr.f32.vlgmr.msra.gmra.mrb[12].mxu0 %v6560_v17  ;;  %4271 = vmatmul.mubr.f32.vlgmr.msra.gmra.mrb[20].mxu1 %v6560_v17 }
 0x68e   :  { %5070 = vmatpush1.bf16.msra.mxu0 %v6137_v15  ;;  %5101 = vmatpush3.bf16.msra.mxu1 %v6165_v40  ;;  %v1831_v15 = vld [vmem:[#allocation9 + $0x8] sm:$0xff] }
 0x68f   :  { %5072 = vmatprep.subr.bf16.mxu0 %v6140_v16  ;;  %5102 = vmatprep.subr.bf16.mxu1 %v5994_v48  ;;  %v1834_v16 = vld [vmem:[#allocation9 + $0x20] sm:$0xff] }
 0x690   :  { %1721 = vmatprep.mubr.f32.mxu0 %v5993_v0  ;;  %4305 = vmatprep.mubr.msk.f32.mxu1 %vm5995_vm1, %v5993_v0 }
 0x692   :  { %5074 = vmatpush1.bf16.msra.mxu0 %v6148_v22  ;;  %5104 = vmatpush3.bf16.msra.mxu1 %v6181_v51  ;;  %v1832_v22 = vld [vmem:[#allocation9 + $0x10] sm:$0xff] }
 0x693   :  { %5076 = vmatprep.subr.bf16.mxu0 %v6151_v23  ;;  %5105 = vmatprep.subr.bf16.mxu1 %v5994_v48  ;;  %v5123_v23 = vpack.c.bf16 %v1834_v16, %v1831_v15  ;;  %v1850_v15 = vld [vmem:[#allocation9 + $0xa0] sm:$0xff]  ;;  %v1853_v16 = vld [vmem:[#allocation9 + $0xb8] sm:$0xff] }
 0x696   :  { %5078 = vmatpush1.bf16.msra.mxu0 %v6159_v31  ;;  %5107 = vmatpush3.bf16.msra.mxu1 %v6197_v61  ;;  %v1835_v31 = vld [vmem:[#allocation9 + $0x28] sm:$0xff] }
 0x697   :  { %5080 = vmatprep.subr.bf16.mxu0 %v6162_v33  ;;  %5108 = vmatprep.subr.bf16.mxu1 %v5994_v48  ;;  %v5155_v33 = vpack.c.bf16 %v1835_v31, %v1832_v22  ;;  %v5133_v22 = vpack.c.bf16 %v1845_v6, %v1842_v4  ;;  %v5167_v31 = vpack.c.bf16 %v1853_v16, %v1850_v15  ;;  %v2137_v4 = vld [vmem:[#allocation10] sm:$0xff]  ;;  %v2146_v15 = vld [vmem:[#allocation10 + $0x48] sm:$0xff] }
 0x69a   :  { %5082 = vmatpush1.bf16.msra.mxu0 %v6172_v42  ;;  %5110 = vmatpush3.bf16.msra.mxu1 %v6213_v8 }
 0x69b   :  { %5084 = vmatprep.subr.bf16.mxu0 %v6175_v45  ;;  %5111 = vmatprep.subr.bf16.mxu1 %v5994_v48 }
 0x69e   :  { %5086 = vmatpush1.bf16.msra.mxu0 %v6188_v53  ;;  %5113 = vmatpush3.bf16.msra.mxu1 %v6229_v19 }
 0x69f   :  { %5088 = vmatprep.subr.bf16.mxu0 %v6191_v56  ;;  %5114 = vmatprep.subr.bf16.mxu1 %v5994_v48 }
 0x6a2   :  { %5090 = vmatpush1.bf16.msra.mxu0 %v6204_v63  ;;  %5116 = vmatpush3.bf16.msra.mxu1 %v6243_v26 }
 0x6a3   :  { %5092 = vmatprep.subr.bf16.mxu0 %v6207_v3  ;;  %5117 = vmatprep.subr.bf16.mxu1 %v5994_v48 }
 0x6a6   :  { %5094 = vmatpush1.bf16.msra.mxu0 %v6220_v10  ;;  %5119 = vmatpush3.bf16.msra.mxu1 %v6253_v29 }
 0x6a7   :  { %5096 = vmatprep.subr.bf16.mxu0 %v6223_v14  ;;  %5120 = vmatprep.subr.bf16.mxu1 %v5994_v48 }
 0x6aa   :  { %5098 = vmatpush1.bf16.msra.mxu0 %v6236_v21  ;;  %5122 = vmatpush3.bf16.msra.mxu1 %v6262_v34 }
 0x6ab   :  { %5124 = vmatprep.subr.bf16.mxu0 %v5123_v23  ;;  %5156 = vmatprep.subr.bf16.mxu1 %v5155_v33  ;;  %v5135_v23 = vpack.c.bf16 %v1852_v13, %v1849_v9  ;;  %v2143_v13 = vld [vmem:[#allocation10 + $0x30] sm:$0xff] }
 0x6ac   :  { %v6637_v16 = vpack.c.bf16 %v2146_v15, %v2143_v13  ;;  %v2163_v13 = vld [vmem:[#allocation10 + $0xd0] sm:$0xff]  ;;  %v2166_v15 = vld [vmem:[#allocation10 + $0xe8] sm:$0xff] }
 0x760   :  { %v1551_v40 = vpop.f32.mrb[12].mxu0  ;;  %v1622_v42 = vpop.f32.mrb[20].mxu1 }
 0x761   :  { %v5671_v45 = vadd.f32 %v1551_v40, %v6319_v58  ;;  %v1553_v51 = vpop.f32.mrb[13].mxu0  ;;  %v4272_v53 = vpop.f32.mrb[21].mxu1  ;;  %v1640_v14 = vadd.f32 %v6337_v27, %v1622_v42  ;;  %v1851_v40 = vld [vmem:[#allocation9 + $0xa8] sm:$0xff] }
 0x762   :  { %v5672_v61 = vadd.f32 %v1553_v51, %v6331_v11  ;;  %v1855_v42 = vld [vmem:[#allocation9 + $0xc8] sm:$0xff]  ;;  %v1856_v51 = vld [vmem:[#allocation9 + $0xd0] sm:$0xff] }
 0x763   :  { %v3667_v56 = vmul.f32 -1.442695, %v5671_v45  ;;  %v1858_v45 = vld [vmem:[#allocation9 + $0xe0] sm:$0xff]  ;;  %v1859_v53 = vld [vmem:[#allocation9 + $0xe8] sm:$0xff] }
 0x764   :  { %v3668_v63 = vmul.f32 -1.442695, %v5672_v61  ;;  %v5139_v61 = vpack.c.bf16 %v1858_v45, %v1855_v42  ;;  %v2156_v45 = vld [vmem:[#allocation10 + $0x98] sm:$0xff] }
 0x765   :  { %5792 = vpow2.f32 %v3667_v56 }
 0x766   :  { %5794 = vpow2.f32 %v3668_v63  ;;  %v5171_v63 = vpack.c.bf16 %v1859_v53, %v1856_v51  ;;  %v2159_v51 = vld [vmem:[#allocation10 + $0xb0] sm:$0xff] }
 0x767   :  { %v6647_v53 = vpack.c.bf16 %v2159_v51, %v2156_v45  ;;  %v2175_v45 = vld [vmem:[#allocation10 + $0x130] sm:$0xff]  ;;  %v2178_v51 = vld [vmem:[#allocation10 + $0x148] sm:$0xff] }
 0x76f   :  { %v5793_v3 = vpop.eup %5792 }
 0x770   :  { %v1630_v8 = vadd.f32 1.0, %v5793_v3  ;;  %v5795_v10 = vpop.eup %5794  ;;  %v1854_v3 = vld [vmem:[#allocation9 + $0xc0] sm:$0xff] }
 0x771   :  { %v1637_v29 = vadd.f32 1.0, %v5795_v10  ;;  %v1861_v10 = vld [vmem:[#allocation9 + $0xf8] sm:$0xff] }
 0x772   :  { %5796 = vrcp.f32 %v1630_v8  ;;  %v1857_v8 = vld [vmem:[#allocation9 + $0xd8] sm:$0xff] }
 0x77c   :  { %v5797_v19 = vpop.eup %5796 }
 0x77d   :  { %v1641_v21 = vmul.f32 %v5797_v19, %v1640_v14  ;;  %v1864_v14 = vld [vmem:[#allocation9 + $0x110] sm:$0xff]  ;;  %v1862_v19 = vld [vmem:[#allocation9 + $0x100] sm:$0xff] }
 0x77f   :  { %v1642_v26 = vadd.f32 %v1641_v21, %v6327_v7  ;;  %v1839_v7 = vld [vmem:[#allocation9 + $0x48] sm:$0xff]  ;;  %v1865_v21 = vld [vmem:[#allocation9 + $0x118] sm:$0xff] }
 0x780   :  { %v5129_v39 = vpack.c.bf16 %v1839_v7, %v1836_v46  ;;  %v1873_v46 = vld [vmem:[#allocation9 + $0x158] sm:$0xff]  ;;  %v1876_v7 = vld [vmem:[#allocation9 + $0x170] sm:$0xff] }
 0x781   :  { %5798 = vtanh.f32 %v1642_v26  ;;  %v5141_v26 = vpack.c.bf16 %v1857_v8, %v1854_v3  ;;  %v5151_v12 = vpack.c.bf16 %v1876_v7, %v1873_v46  ;;  %v2162_v3 = vld [vmem:[#allocation10 + $0xc8] sm:$0xff]  ;;  %v2165_v8 = vld [vmem:[#allocation10 + $0xe0] sm:$0xff]  ;;  %v2180_v7 = vld [vmem:[#allocation10 + $0x158] sm:$0xff] }
 0x782   :  { %5800 = vrcp.f32 %v1637_v29  ;;  %v5143_v29 = vpack.c.bf16 %v1864_v14, %v1861_v10  ;;  %v6653_v10 = vpack.c.bf16 %v2165_v8, %v2162_v3  ;;  %v2161_v14 = vld [vmem:[#allocation10 + $0xc0] sm:$0xff]  ;;  %v2184_v3 = vld [vmem:[#allocation10 + $0x178] sm:$0xff] }
 0x78b   :  { %v5799_v34 = vpop.eup %5798 }
 0x78c   :  { %v1644_v55 = vsub.f32 %v6560_v17, %v5799_v34  ;;  %v5801_v24 = vpop.eup %5800 }
 0x78e   :  { %v1645_v30 = vmul.f32 %v5801_v24, %v1644_v55  ;;  %v1860_v55 = vld [vmem:[#allocation9 + $0xf0] sm:$0xff]  ;;  %v1870_v24 = vld [vmem:[#allocation9 + $0x140] sm:$0xff] }
 0x78f   :  { %v5147_v47 = vpack.c.bf16 %v1870_v24, %v1867_v20  ;;  %v2174_v24 = vld [vmem:[#allocation10 + $0x128] sm:$0xff] }
 0x790   :  { %v6602_v27 = vadd.f32 %v5799_v34, %v1645_v30  ;;  %v5175_v34 = vpack.c.bf16 %v1865_v21, %v1862_v19  ;;  %v5145_v30 = vpack.c.bf16 %v1863_v18, %v1860_v55  ;;  %v2164_v19 = vld [vmem:[#allocation10 + $0xd8] sm:$0xff]  ;;  %v2167_v55 = vld [vmem:[#allocation10 + $0xf0] sm:$0xff]  ;;  %v2170_v18 = vld [vmem:[#allocation10 + $0x108] sm:$0xff] }
 0x791   :  { %v6655_v21 = vpack.c.bf16 %v2164_v19, %v2161_v14  ;;  %v6661_v20 = vpack.c.bf16 %v2170_v18, %v2167_v55 }
 0x792   :  { %1722 = vmatmul.mubr.f32.vlgmr.msra.gmra.mrb[14].mxu0 %v6602_v27  ;;  %4306 = vmatmul.mubr.f32.vlgmr.msra.gmra.mrb[22].mxu1 %v6602_v27 }
 0x793   :  { %5126 = vmatpush1.bf16.msra.mxu0 %v5125_v38  ;;  %5158 = vmatpush3.bf16.msra.mxu1 %v5155_v33  ;;  %v1848_v33 = vld [vmem:[#allocation9 + $0x90] sm:$0xff]  ;;  %v1866_v38 = vld [vmem:[#allocation9 + $0x120] sm:$0xff] }
 0x794   :  { %4340 = vmatprep.mubr.f32.mxu1 %v6340_v62  ;;  %5128 = vmatprep.subr.bf16.mxu0 %v5127_v50  ;;  %v5137_v56 = vpack.c.bf16 %v1851_v40, %v1848_v33  ;;  %v1869_v50 = vld [vmem:[#allocation9 + $0x138] sm:$0xff]  ;;  %v2149_v33 = vld [vmem:[#allocation10 + $0x60] sm:$0xff] }
 0x795   :  { %5160 = vmatprep.subr.bf16.mxu1 %v5159_v43  ;;  %1959 = vmatprep.mubr.f32.mxu0 %v5993_v0  ;;  %v5149_v57 = vpack.c.bf16 %v1869_v50, %v1866_v38  ;;  %v2152_v40 = vld [vmem:[#allocation10 + $0x78] sm:$0xff]  ;;  %v2142_v38 = vld [vmem:[#allocation10 + $0x28] sm:$0xff] }
 0x796   :  { %v6643_v42 = vpack.c.bf16 %v2152_v40, %v2149_v33  ;;  %v2172_v33 = vld [vmem:[#allocation10 + $0x118] sm:$0xff] }
 0x797   :  { %5130 = vmatpush1.bf16.msra.mxu0 %v5129_v39  ;;  %5162 = vmatpush3.bf16.msra.mxu1 %v5159_v43  ;;  %v1877_v43 = vld [vmem:[#allocation9 + $0x178] sm:$0xff]  ;;  %v1872_v39 = vld [vmem:[#allocation9 + $0x150] sm:$0xff] }
 0x798   :  { %5132 = vmatprep.subr.bf16.mxu0 %v5131_v44  ;;  %5164 = vmatprep.subr.bf16.mxu1 %v5163_v2  ;;  %v5183_v60 = vpack.c.bf16 %v1877_v43, %v1874_v49  ;;  %v1875_v44 = vld [vmem:[#allocation9 + $0x168] sm:$0xff]  ;;  %v2183_v49 = vld [vmem:[#allocation10 + $0x170] sm:$0xff] }
 0x799   :  { %v6675_v43 = vpack.c.bf16 %v2183_v49, %v2180_v7 }
 0x79b   :  { %5134 = vmatpush1.bf16.msra.mxu0 %v5133_v22  ;;  %5166 = vmatpush3.bf16.msra.mxu1 %v5163_v2  ;;  %v5153_v2 = vpack.c.bf16 %v1875_v44, %v1872_v39  ;;  %v2150_v22 = vld [vmem:[#allocation10 + $0x68] sm:$0xff]  ;;  %v2145_v39 = vld [vmem:[#allocation10 + $0x40] sm:$0xff]  ;;  %v2148_v44 = vld [vmem:[#allocation10 + $0x58] sm:$0xff] }
 0x79c   :  { %5136 = vmatprep.subr.bf16.mxu0 %v5135_v23  ;;  %5168 = vmatprep.subr.bf16.mxu1 %v5167_v31  ;;  %v2153_v23 = vld [vmem:[#allocation10 + $0x80] sm:$0xff] }
 0x79f   :  { %5138 = vmatpush1.bf16.msra.mxu0 %v5137_v56  ;;  %5170 = vmatpush3.bf16.msra.mxu1 %v5167_v31  ;;  %v6641_v31 = vpack.c.bf16 %v2153_v23, %v2150_v22  ;;  %v2155_v56 = vld [vmem:[#allocation10 + $0x90] sm:$0xff]  ;;  %v6693_v22 = vpack.c.bf16 %v2166_v15, %v2163_v13  ;;  %v2169_v23 = vld [vmem:[#allocation10 + $0x100] sm:$0xff] }
 0x7a0   :  { %5140 = vmatprep.subr.bf16.mxu0 %v5139_v61  ;;  %5172 = vmatprep.subr.bf16.mxu1 %v5171_v63  ;;  %v2158_v61 = vld [vmem:[#allocation10 + $0xa8] sm:$0xff]  ;;  %v6697_v40 = vpack.c.bf16 %v2172_v33, %v2169_v23 }
 0x7a3   :  { %5142 = vmatpush1.bf16.msra.mxu0 %v5141_v26  ;;  %5174 = vmatpush3.bf16.msra.mxu1 %v5171_v63  ;;  %v6649_v63 = vpack.c.bf16 %v2158_v61, %v2155_v56  ;;  %v2168_v26 = vld [vmem:[#allocation10 + $0xf8] sm:$0xff]  ;;  %v6701_v56 = vpack.c.bf16 %v2178_v51, %v2175_v45  ;;  %v2181_v61 = vld [vmem:[#allocation10 + $0x160] sm:$0xff] }
 0x7a4   :  { %5144 = vmatprep.subr.bf16.mxu0 %v5143_v29  ;;  %5176 = vmatprep.subr.bf16.mxu1 %v5175_v34  ;;  %v2171_v29 = vld [vmem:[#allocation10 + $0x110] sm:$0xff]  ;;  %v6705_v8 = vpack.c.bf16 %v2184_v3, %v2181_v61 }
 0x7a7   :  { %5146 = vmatpush1.bf16.msra.mxu0 %v5145_v30  ;;  %5178 = vmatpush3.bf16.msra.mxu1 %v5175_v34  ;;  %v6659_v34 = vpack.c.bf16 %v2171_v29, %v2168_v26  ;;  %v6664_v30 = vpack.c.bf16 %v2177_v59, %v2174_v24 }
 0x7a8   :  { %5148 = vmatprep.subr.bf16.mxu0 %v5147_v47  ;;  %5180 = vmatprep.subr.bf16.mxu1 %v5179_v35  ;;  %v2176_v47 = vld [vmem:[#allocation10 + $0x138] sm:$0xff] }
 0x7a9   :  { %v6667_v50 = vpack.c.bf16 %v2176_v47, %v2173_v28 }
 0x7ab   :  { %5150 = vmatpush1.bf16.msra.mxu0 %v5149_v57  ;;  %5182 = vmatpush3.bf16.msra.mxu1 %v5179_v35  ;;  %v2139_v35 = vld [vmem:[#allocation10 + $0x10] sm:$0xff] }
 0x7ac   :  { %5152 = vmatprep.subr.bf16.mxu0 %v5151_v12  ;;  %5184 = vmatprep.subr.bf16.mxu1 %v5183_v60  ;;  %v6669_v46 = vpack.c.bf16 %v2142_v38, %v2139_v35  ;;  %v2179_v57 = vld [vmem:[#allocation10 + $0x150] sm:$0xff]  ;;  %v2182_v12 = vld [vmem:[#allocation10 + $0x168] sm:$0xff] }
 0x7ad   :  { %v5892_v38 = vld [vmem:[%s7139_s4] ss:$0 sm:$0xff] }
 0x7af   :  { %5154 = vmatpush1.bf16.msra.mxu0 %v5153_v2  ;;  %5186 = vmatpush3.bf16.msra.mxu1 %v5183_v60  ;;  %v6677_v60 = vpack.c.bf16 %v2182_v12, %v2179_v57  ;;  %v6680_v2 = vpack.c.bf16 %v2148_v44, %v2145_v39 }
 0x7b0   :  { %5219 = vmatprep.subr.bf16.mxu1 %v5994_v48 }
 0x7b2   :  { %1960 = vmatmul.mubr.f32.vlgmr.msra.gmra.mrb[16].mxu0 %v6340_v62  ;;  %4341 = vmatmul.mubr.f32.vlgmr.msra.gmra.mrb[24].mxu1 %v6384_v54  ;;  %v2138_v62 = vld [vmem:[#allocation10 + $0x8] sm:$0xff] }
 0x7b3   :  { %4343 = vmatprep.mubr.f32.mxu1 %v6428_v41  ;;  %1965 = vmatprep.mubr.f32.mxu0 %v5993_v0 }
 0x7b4   :  { %5221 = vmatpush3.bf16.msra.mxu1 %v6669_v46 }
 0x7b5   :  { %5222 = vmatprep.subr.bf16.mxu1 %v5994_v48 }
 0x7b6   :  { %1966 = vmatmul.mubr.f32.gmra.mrb[18].mxu0 %v6384_v54  ;;  %4344 = vmatmul.mubr.f32.gmra.mrb[26].mxu1 %v6472_v32  ;;  %v2141_v54 = vld [vmem:[#allocation10 + $0x20] sm:$0xff] }
 0x7b7   :  { %4346 = vmatprep.mubr.f32.mxu1 %v6516_v25  ;;  %1971 = vmatprep.mubr.f32.mxu0 %v5993_v0 }
 0x7b8   :  { %5224 = vmatpush3.bf16.msra.mxu1 %v6680_v2 }
 0x7b9   :  { %5225 = vmatprep.subr.bf16.mxu1 %v5994_v48 }
 0x7ba   :  { %1972 = vmatmul.mubr.f32.gmra.mrb[20].mxu0 %v6428_v41  ;;  %4347 = vmatmul.mubr.f32.gmra.mrb[28].mxu1 %v6560_v17  ;;  %v6629_v41 = vpack.c.bf16 %v2141_v54, %v2138_v62  ;;  %v2151_v62 = vld [vmem:[#allocation10 + $0x70] sm:$0xff]  ;;  %v2154_v54 = vld [vmem:[#allocation10 + $0x88] sm:$0xff] }
 0x7bb   :  { %4349 = vmatprep.mubr.f32.mxu1 %v6602_v27  ;;  %1977 = vmatprep.mubr.f32.mxu0 %v5993_v0 }
 0x7bc   :  { %5188 = vmatprep.subr.bf16.mxu0 %v6629_v41 }
 0x7be   :  { %1978 = vmatmul.mubr.f32.gmra.mrb[22].mxu0 %v6472_v32  ;;  %v2140_v32 = vld [vmem:[#allocation10 + $0x18] sm:$0xff] }
 0x7bf   :  { %1983 = vmatprep.mubr.f32.mxu0 %v5993_v0  ;;  %v6631_v6 = vpack.c.bf16 %v2140_v32, %v2137_v4  ;;  %v2157_v4 = vld [vmem:[#allocation10 + $0xa0] sm:$0xff]  ;;  %v6686_v32 = vpack.c.bf16 %v2154_v54, %v2151_v62 }
 0x7c1   :  { %5190 = vmatpush1.bf16.msra.mxu0 %v6631_v6  ;;  %5227 = vmatpush3.bf16.msra.mxu1 %v6686_v32 }
 0x7c2   :  { %1984 = vmatmul.mubr.f32.gmra.mrb[24].mxu0 %v6516_v25  ;;  %v2144_v25 = vld [vmem:[#allocation10 + $0x38] sm:$0xff]  ;;  %5228 = vmatprep.subr.bf16.mxu1 %v5994_v48 }
 0x7c3   :  { %1989 = vmatprep.mubr.f32.mxu0 %v5993_v0 }
 0x7c6   :  { %1990 = vmatmul.mubr.f32.gmra.mrb[26].mxu0 %v6560_v17  ;;  %v2147_v17 = vld [vmem:[#allocation10 + $0x50] sm:$0xff] }
 0x7c7   :  { %1995 = vmatprep.mubr.f32.mxu0 %v5993_v0  ;;  %v6635_v9 = vpack.c.bf16 %v2147_v17, %v2144_v25  ;;  %v2160_v25 = vld [vmem:[#allocation10 + $0xb8] sm:$0xff] }
 0x7c8   :  { %v6689_v17 = vpack.c.bf16 %v2160_v25, %v2157_v4 }
 0x7c9   :  { %5192 = vmatprep.subr.bf16.mxu0 %v6635_v9 }
 0x7ca   :  { %1996 = vmatmul.mubr.f32.gmra.mrb[28].mxu0 %v6602_v27  ;;  %5230 = vmatpush3.bf16.msra.mxu1 %v6689_v17 }
 0x7cb   :  { %2001 = vmatprep.mubr.f32.mxu0 %v5993_v0  ;;  %5194 = vmatpush1.bf16.msra.mxu0 %v6637_v16 }
 0x7cc   :  { %5196 = vmatprep.subr.bf16.mxu0 %v6641_v31  ;;  %5231 = vmatprep.subr.bf16.mxu1 %v5994_v48 }
 0x7ce   :  { %5233 = vmatpush3.bf16.msra.mxu1 %v6693_v22 }
 0x7cf   :  { %5198 = vmatpush1.bf16.msra.mxu0 %v6643_v42  ;;  %5234 = vmatprep.subr.bf16.mxu1 %v5994_v48 }
 0x7d0   :  { %5200 = vmatprep.subr.bf16.mxu0 %v6647_v53 }
 0x7d2   :  { %5236 = vmatpush3.bf16.msra.mxu1 %v6697_v40 }
 0x7d3   :  { %5202 = vmatpush1.bf16.msra.mxu0 %v6649_v63  ;;  %5237 = vmatprep.subr.bf16.mxu1 %v5994_v48 }
 0x7d4   :  { %5204 = vmatprep.subr.bf16.mxu0 %v6653_v10 }
 0x7d6   :  { %5239 = vmatpush3.bf16.msra.mxu1 %v6701_v56 }
 0x7d7   :  { %5206 = vmatpush1.bf16.msra.mxu0 %v6655_v21  ;;  %5240 = vmatprep.subr.bf16.mxu1 %v5994_v48 }
 0x7d8   :  { %5208 = vmatprep.subr.bf16.mxu0 %v6659_v34 }
 0x7da   :  { %5242 = vmatpush3.bf16.msra.mxu1 %v6705_v8 }
 0x7db   :  { %5210 = vmatpush1.bf16.msra.mxu0 %v6661_v20  ;;  %5275 = vmatprep.subr.bf16.mxu1 %v5994_v48 }
 0x7dc   :  { %5212 = vmatprep.subr.bf16.mxu0 %v6664_v30 }
 0x7df   :  { %5214 = vmatpush1.bf16.msra.mxu0 %v6667_v50 }
 0x7e0   :  { %5216 = vmatprep.subr.bf16.mxu0 %v6675_v43 }
 0x7e3   :  { %5218 = vmatpush1.bf16.msra.mxu0 %v6677_v60 }
 0x7e4   :  { %5244 = vmatprep.subr.bf16.mxu0 %v6629_v41 }
 0x865   :  { %v1723_v14 = vpop.f32.mrb[14].mxu0  ;;  %v1794_v19 = vpop.f32.mrb[22].mxu1 }
 0x866   :  { %v5673_v26 = vadd.f32 %v1723_v14, %v6319_v58  ;;  %v1725_v29 = vpop.f32.mrb[15].mxu0  ;;  %v4307_v55 = vpop.f32.mrb[23].mxu1  ;;  %v1812_v7 = vadd.f32 %v5892_v38, %v1794_v19 }
 0x867   :  { %v5674_v24 = vadd.f32 %v1725_v29, %v6331_v11 }
 0x868   :  { %v3669_v18 = vmul.f32 -1.442695, %v5673_v26 }
 0x869   :  { %v3670_v59 = vmul.f32 -1.442695, %v5674_v24 }
 0x86a   :  { %5802 = vpow2.f32 %v3669_v18 }
 0x86b   :  { %5804 = vpow2.f32 %v3670_v59 }
 0x874   :  { %v5803_v28 = vpop.eup %5802 }
 0x875   :  { %v1802_v47 = vadd.f32 1.0, %v5803_v28  ;;  %v5805_v35 = vpop.eup %5804 }
 0x876   :  { %v1809_v12 = vadd.f32 1.0, %v5805_v35 }
 0x877   :  { %5806 = vrcp.f32 %v1802_v47 }
 0x881   :  { %v5807_v49 = vpop.eup %5806 }
 0x882   :  { %v1813_v57 = vmul.f32 %v5807_v49, %v1812_v7 }
 0x884   :  { %v1814_v58 = vadd.f32 %v1813_v57, %v6323_v1 }
 0x885   :  { %v6716_v39 = vpop.f32.mrb[24].mxu1 }
 0x886   :  { %5808 = vtanh.f32 %v1814_v58  ;;  %v6718_v11 = vpop.f32.mrb[25].mxu1 }
 0x887   :  { %5810 = vrcp.f32 %v1809_v12 }
 0x889   :  { %v6720_v44 = vpop.f32.mrb[26].mxu1 }
 0x88a   :  { %v6722_v62 = vpop.f32.mrb[27].mxu1 }
 0x88d   :  { %v6724_v54 = vpop.f32.mrb[28].mxu1 }
 0x88e   :  { %v6726_v4 = vpop.f32.mrb[29].mxu1 }
 0x890   :  { %v5809_v25 = vpop.eup %5808 }
 0x891   :  { %v1816_v13 = vsub.f32 %v6602_v27, %v5809_v25  ;;  %v5811_v15 = vpop.eup %5810  ;;  %v1878_v27 = vld [vmem:[%s7142_s7] sm:$0x7] }
 0x892   :  { %v6778_v51 = vrot.slane %v1878_v27, %v111_v52  ;;  %v6783_v55 = vrot.slane %v1878_v27, %v115_v5  ;;  %v6789_v52 = vld [vmem:[%s7143_s8] ss:$0 sm:$0xff]  ;;  %v6793_v47 = vrot.slane %v1878_v27, %v119_v37 }
 0x893   :  { %v1817_v1 = vmul.f32 %v5811_v15, %v1816_v13 }
 0x894   :  { %v2075_v7 = vadd.f32 %v6718_v11, %v6793_v47 }
 0x895   :  { %v1818_v23 = vadd.f32 %v5809_v25, %v1817_v1 }
 0x897   :  { %2002 = vmatmul.mubr.f32.gmra.mrb[30].mxu0 %v1818_v23  ;;  %4350 = vmatmul.mubr.f32.gmra.mrb[30].mxu1 %v1818_v23 }
 0x898   :  { %2261 = vmatprep.mubr.f32.mxu0 %v5993_v0  ;;  %4384 = vmatprep.mubr.msk.f32.mxu1 %vm5995_vm1, %v5993_v0 }
 0x89b   :  { %2262 = vmatmul.mubr.f32.vlgmr.msra.gmra.mrb[16].mxu0 %v5993_v0  ;;  %4385 = vmatmul.mubr.f32.vlgmr.msra.gmra.mrb[32].mxu1 %v5993_v0 }
 0x89c   :  { %5246 = vmatpush1.bf16.msra.mxu0 %v6631_v6  ;;  %5277 = vmatpush3.bf16.msra.mxu1 %v6669_v46 }
 0x89d   :  { %5248 = vmatprep.subr.bf16.mxu0 %v6635_v9  ;;  %5278 = vmatprep.subr.bf16.mxu1 %v5994_v48 }
 0x89e   :  { %2428 = vmatprep.mubr.f32.mxu0 %v5993_v0  ;;  %4419 = vmatprep.mubr.msk.f32.mxu1 %vm5995_vm1, %v5993_v0 }
 0x8a0   :  { %5250 = vmatpush1.bf16.msra.mxu0 %v6637_v16  ;;  %5280 = vmatpush3.bf16.msra.mxu1 %v6680_v2 }
 0x8a1   :  { %5252 = vmatprep.subr.bf16.mxu0 %v6641_v31  ;;  %5281 = vmatprep.subr.bf16.mxu1 %v5994_v48 }
 0x8a4   :  { %5254 = vmatpush1.bf16.msra.mxu0 %v6643_v42  ;;  %5283 = vmatpush3.bf16.msra.mxu1 %v6686_v32 }
 0x8a5   :  { %5256 = vmatprep.subr.bf16.mxu0 %v6647_v53  ;;  %5284 = vmatprep.subr.bf16.mxu1 %v5994_v48 }
 0x8a8   :  { %5258 = vmatpush1.bf16.msra.mxu0 %v6649_v63  ;;  %5286 = vmatpush3.bf16.msra.mxu1 %v6689_v17 }
 0x8a9   :  { %5260 = vmatprep.subr.bf16.mxu0 %v6653_v10  ;;  %5287 = vmatprep.subr.bf16.mxu1 %v5994_v48 }
 0x8ac   :  { %5262 = vmatpush1.bf16.msra.mxu0 %v6655_v21  ;;  %5289 = vmatpush3.bf16.msra.mxu1 %v6693_v22 }
 0x8ad   :  { %5264 = vmatprep.subr.bf16.mxu0 %v6659_v34  ;;  %5290 = vmatprep.subr.bf16.mxu1 %v5994_v48 }
 0x8b0   :  { %5266 = vmatpush1.bf16.msra.mxu0 %v6661_v20  ;;  %5292 = vmatpush3.bf16.msra.mxu1 %v6697_v40 }
 0x8b1   :  { %5268 = vmatprep.subr.bf16.mxu0 %v6664_v30  ;;  %5293 = vmatprep.subr.bf16.mxu1 %v5994_v48 }
 0x8b4   :  { %5270 = vmatpush1.bf16.msra.mxu0 %v6667_v50  ;;  %5295 = vmatpush3.bf16.msra.mxu1 %v6701_v56 }
 0x8b5   :  { %5272 = vmatprep.subr.bf16.mxu0 %v6675_v43  ;;  %5296 = vmatprep.subr.bf16.mxu1 %v5994_v48 }
 0x8b8   :  { %5274 = vmatpush1.bf16.msra.mxu0 %v6677_v60  ;;  %5298 = vmatpush3.bf16.msra.mxu1 %v6705_v8 }
 0x8b9   :  { %5300 = vmatprep.subr.bf16.mxu0 %v6629_v41  ;;  %5331 = vmatprep.subr.bf16.mxu1 %v5994_v48 }
 0x96a   :  { %v6772_v33 = vpop.f32.mrb[30].mxu1 }
 0x96b   :  { %v6774_v45 = vpop.f32.mrb[31].mxu1 }
 0x96e   :  { %v2263_v61 = vpop.f32.mrb[16].mxu0  ;;  %v2334_v3 = vpop.f32.mrb[32].mxu1 }
 0x96f   :  { %v5675_v14 = vadd.f32 %v2263_v61, %v6778_v51  ;;  %v2265_v19 = vpop.f32.mrb[17].mxu0  ;;  %v4386_v26 = vpop.f32.mrb[33].mxu1  ;;  %v2352_v35 = vadd.f32 %v6789_v52, %v2334_v3 }
 0x970   :  { %v5676_v18 = vadd.f32 %v2265_v19, %v6783_v55 }
 0x971   :  { %v3672_v29 = vmul.f32 -1.442695, %v5675_v14 }
 0x972   :  { %v3673_v24 = vmul.f32 -1.442695, %v5676_v18 }
 0x973   :  { %5812 = vpow2.f32 %v3672_v29 }
 0x974   :  { %5814 = vpow2.f32 %v3673_v24 }
 0x97d   :  { %v5813_v59 = vpop.eup %5812 }
 0x97e   :  { %v2342_v28 = vadd.f32 1.0, %v5813_v59  ;;  %v5815_v5 = vpop.eup %5814  ;;  %v2080_v59 = vadd.f32 %v6716_v39, %v6793_v47 }
 0x97f   :  { %v2349_v57 = vadd.f32 1.0, %v5815_v5 }
 0x980   :  { %5816 = vrcp.f32 %v2342_v28 }
 0x98a   :  { %v5817_v38 = vpop.eup %5816 }
 0x98b   :  { %v2353_v49 = vmul.f32 %v5817_v38, %v2352_v35 }
 0x98d   :  { %v2354_v58 = vadd.f32 %v2353_v49, %v2075_v7 }
 0x98f   :  { %5818 = vtanh.f32 %v2354_v58 }
 0x990   :  { %5820 = vrcp.f32 %v2349_v57 }
 0x999   :  { %v5819_v12 = vpop.eup %5818 }
 0x99a   :  { %v2356_v25 = vsub.f32 0.0, %v5819_v12  ;;  %v5821_v13 = vpop.eup %5820 }
 0x99c   :  { %v2357_v15 = vmul.f32 %v5821_v13, %v2356_v25 }
 0x99e   :  { %v6798_v1 = vadd.f32 %v5819_v12, %v2357_v15 }
 0x9a0   :  { %2429 = vmatmul.mubr.f32.vlgmr.msra.gmra.mrb[18].mxu0 %v6798_v1  ;;  %4420 = vmatmul.mubr.f32.vlgmr.msra.gmra.mrb[34].mxu1 %v6798_v1 }
 0x9a1   :  { %5302 = vmatpush1.bf16.msra.mxu0 %v6631_v6  ;;  %5333 = vmatpush3.bf16.msra.mxu1 %v6669_v46 }
 0x9a2   :  { %5304 = vmatprep.subr.bf16.mxu0 %v6635_v9  ;;  %5334 = vmatprep.subr.bf16.mxu1 %v5994_v48 }
 0x9a3   :  { %2595 = vmatprep.mubr.f32.mxu0 %v5993_v0  ;;  %4454 = vmatprep.mubr.msk.f32.mxu1 %vm5995_vm1, %v5993_v0 }
 0x9a5   :  { %5306 = vmatpush1.bf16.msra.mxu0 %v6637_v16  ;;  %5336 = vmatpush3.bf16.msra.mxu1 %v6680_v2 }
 0x9a6   :  { %5308 = vmatprep.subr.bf16.mxu0 %v6641_v31  ;;  %5337 = vmatprep.subr.bf16.mxu1 %v5994_v48 }
 0x9a9   :  { %5310 = vmatpush1.bf16.msra.mxu0 %v6643_v42  ;;  %5339 = vmatpush3.bf16.msra.mxu1 %v6686_v32 }
 0x9aa   :  { %5312 = vmatprep.subr.bf16.mxu0 %v6647_v53  ;;  %5340 = vmatprep.subr.bf16.mxu1 %v5994_v48 }
 0x9ad   :  { %5314 = vmatpush1.bf16.msra.mxu0 %v6649_v63  ;;  %5342 = vmatpush3.bf16.msra.mxu1 %v6689_v17 }
 0x9ae   :  { %5316 = vmatprep.subr.bf16.mxu0 %v6653_v10  ;;  %5343 = vmatprep.subr.bf16.mxu1 %v5994_v48 }
 0x9b1   :  { %5318 = vmatpush1.bf16.msra.mxu0 %v6655_v21  ;;  %5345 = vmatpush3.bf16.msra.mxu1 %v6693_v22 }
 0x9b2   :  { %5320 = vmatprep.subr.bf16.mxu0 %v6659_v34  ;;  %5346 = vmatprep.subr.bf16.mxu1 %v5994_v48 }
 0x9b5   :  { %5322 = vmatpush1.bf16.msra.mxu0 %v6661_v20  ;;  %5348 = vmatpush3.bf16.msra.mxu1 %v6697_v40 }
 0x9b6   :  { %5324 = vmatprep.subr.bf16.mxu0 %v6664_v30  ;;  %5349 = vmatprep.subr.bf16.mxu1 %v5994_v48 }
 0x9b9   :  { %5326 = vmatpush1.bf16.msra.mxu0 %v6667_v50  ;;  %5351 = vmatpush3.bf16.msra.mxu1 %v6701_v56 }
 0x9ba   :  { %5328 = vmatprep.subr.bf16.mxu0 %v6675_v43  ;;  %5352 = vmatprep.subr.bf16.mxu1 %v5994_v48 }
 0x9bd   :  { %5330 = vmatpush1.bf16.msra.mxu0 %v6677_v60  ;;  %5354 = vmatpush3.bf16.msra.mxu1 %v6705_v8 }
 0x9be   :  { %5356 = vmatprep.subr.bf16.mxu0 %v6629_v41  ;;  %5387 = vmatprep.subr.bf16.mxu1 %v5994_v48 }
 0xa73   :  { %v2430_v36 = vpop.f32.mrb[18].mxu0  ;;  %v2501_v37 = vpop.f32.mrb[34].mxu1 }
 0xa74   :  { %v5677_v11 = vadd.f32 %v2430_v36, %v6778_v51  ;;  %v2432_v23 = vpop.f32.mrb[19].mxu0  ;;  %v4421_v27 = vpop.f32.mrb[35].mxu1  ;;  %v2519_v18 = vadd.f32 %v6789_v52, %v2501_v37 }
 0xa75   :  { %v5678_v3 = vadd.f32 %v2432_v23, %v6783_v55 }
 0xa76   :  { %v3674_v61 = vmul.f32 -1.442695, %v5677_v11 }
 0xa77   :  { %v3675_v14 = vmul.f32 -1.442695, %v5678_v3 }
 0xa78   :  { %5822 = vpow2.f32 %v3674_v61 }
 0xa79   :  { %5824 = vpow2.f32 %v3675_v14  ;;  %v2085_v14 = vadd.f32 %v6722_v62, %v6793_v47 }
 0xa82   :  { %v5823_v19 = vpop.eup %5822 }
 0xa83   :  { %v2509_v26 = vadd.f32 1.0, %v5823_v19  ;;  %v5825_v29 = vpop.eup %5824 }
 0xa84   :  { %v2516_v5 = vadd.f32 1.0, %v5825_v29 }
 0xa85   :  { %5826 = vrcp.f32 %v2509_v26 }
 0xa8f   :  { %v5827_v24 = vpop.eup %5826 }
 0xa90   :  { %v2520_v28 = vmul.f32 %v5827_v24, %v2519_v18 }
 0xa92   :  { %v2521_v35 = vadd.f32 %v2520_v28, %v2080_v59 }
 0xa94   :  { %5828 = vtanh.f32 %v2521_v35 }
 0xa95   :  { %5830 = vrcp.f32 %v2516_v5 }
 0xa9e   :  { %v5829_v38 = vpop.eup %5828 }
 0xa9f   :  { %v2523_v7 = vsub.f32 %v6798_v1, %v5829_v38  ;;  %v5831_v49 = vpop.eup %5830 }
 0xaa1   :  { %v2524_v57 = vmul.f32 %v5831_v49, %v2523_v7 }
 0xaa3   :  { %v6843_v58 = vadd.f32 %v5829_v38, %v2524_v57 }
 0xaa5   :  { %2596 = vmatmul.mubr.f32.vlgmr.msra.gmra.mrb[20].mxu0 %v6843_v58  ;;  %4455 = vmatmul.mubr.f32.vlgmr.msra.gmra.mrb[36].mxu1 %v6843_v58 }
 0xaa6   :  { %5358 = vmatpush1.bf16.msra.mxu0 %v6631_v6  ;;  %5389 = vmatpush3.bf16.msra.mxu1 %v6669_v46 }
 0xaa7   :  { %5360 = vmatprep.subr.bf16.mxu0 %v6635_v9  ;;  %5390 = vmatprep.subr.bf16.mxu1 %v5994_v48 }
 0xaa8   :  { %2762 = vmatprep.mubr.f32.mxu0 %v5993_v0  ;;  %4489 = vmatprep.mubr.msk.f32.mxu1 %vm5995_vm1, %v5993_v0 }
 0xaaa   :  { %5362 = vmatpush1.bf16.msra.mxu0 %v6637_v16  ;;  %5392 = vmatpush3.bf16.msra.mxu1 %v6680_v2 }
 0xaab   :  { %5364 = vmatprep.subr.bf16.mxu0 %v6641_v31  ;;  %5393 = vmatprep.subr.bf16.mxu1 %v5994_v48 }
 0xaae   :  { %5366 = vmatpush1.bf16.msra.mxu0 %v6643_v42  ;;  %5395 = vmatpush3.bf16.msra.mxu1 %v6686_v32 }
 0xaaf   :  { %5368 = vmatprep.subr.bf16.mxu0 %v6647_v53  ;;  %5396 = vmatprep.subr.bf16.mxu1 %v5994_v48 }
 0xab2   :  { %5370 = vmatpush1.bf16.msra.mxu0 %v6649_v63  ;;  %5398 = vmatpush3.bf16.msra.mxu1 %v6689_v17 }
 0xab3   :  { %5372 = vmatprep.subr.bf16.mxu0 %v6653_v10  ;;  %5399 = vmatprep.subr.bf16.mxu1 %v5994_v48 }
 0xab6   :  { %5374 = vmatpush1.bf16.msra.mxu0 %v6655_v21  ;;  %5401 = vmatpush3.bf16.msra.mxu1 %v6693_v22 }
 0xab7   :  { %5376 = vmatprep.subr.bf16.mxu0 %v6659_v34  ;;  %5402 = vmatprep.subr.bf16.mxu1 %v5994_v48 }
 0xaba   :  { %5378 = vmatpush1.bf16.msra.mxu0 %v6661_v20  ;;  %5404 = vmatpush3.bf16.msra.mxu1 %v6697_v40 }
 0xabb   :  { %5380 = vmatprep.subr.bf16.mxu0 %v6664_v30  ;;  %5405 = vmatprep.subr.bf16.mxu1 %v5994_v48 }
 0xabe   :  { %5382 = vmatpush1.bf16.msra.mxu0 %v6667_v50  ;;  %5407 = vmatpush3.bf16.msra.mxu1 %v6701_v56 }
 0xabf   :  { %5384 = vmatprep.subr.bf16.mxu0 %v6675_v43  ;;  %5408 = vmatprep.subr.bf16.mxu1 %v5994_v48 }
 0xac2   :  { %5386 = vmatpush1.bf16.msra.mxu0 %v6677_v60  ;;  %5410 = vmatpush3.bf16.msra.mxu1 %v6705_v8 }
 0xac3   :  { %5412 = vmatprep.subr.bf16.mxu0 %v6629_v41  ;;  %5443 = vmatprep.subr.bf16.mxu1 %v5994_v48 }
 0xb78   :  { %v2597_v39 = vpop.f32.mrb[20].mxu0  ;;  %v2668_v12 = vpop.f32.mrb[36].mxu1 }
 0xb79   :  { %v5679_v25 = vadd.f32 %v2597_v39, %v6778_v51  ;;  %v2599_v13 = vpop.f32.mrb[21].mxu0  ;;  %v4456_v15 = vpop.f32.mrb[37].mxu1  ;;  %v2686_v61 = vadd.f32 %v6789_v52, %v2668_v12 }
 0xb7a   :  { %v5680_v36 = vadd.f32 %v2599_v13, %v6783_v55 }
 0xb7b   :  { %v3676_v1 = vmul.f32 -1.442695, %v5679_v25 }
 0xb7c   :  { %v3677_v37 = vmul.f32 -1.442695, %v5680_v36  ;;  %v2090_v36 = vadd.f32 %v6720_v44, %v6793_v47 }
 0xb7d   :  { %5832 = vpow2.f32 %v3676_v1 }
 0xb7e   :  { %5834 = vpow2.f32 %v3677_v37 }
 0xb87   :  { %v5833_v11 = vpop.eup %5832 }
 0xb88   :  { %v2676_v23 = vadd.f32 1.0, %v5833_v11  ;;  %v5835_v27 = vpop.eup %5834 }
 0xb89   :  { %v2683_v29 = vadd.f32 1.0, %v5835_v27 }
 0xb8a   :  { %5836 = vrcp.f32 %v2676_v23 }
 0xb94   :  { %v5837_v3 = vpop.eup %5836 }
 0xb95   :  { %v2687_v19 = vmul.f32 %v5837_v3, %v2686_v61 }
 0xb97   :  { %v2688_v26 = vadd.f32 %v2687_v19, %v2085_v14 }
 0xb99   :  { %5838 = vtanh.f32 %v2688_v26 }
 0xb9a   :  { %5840 = vrcp.f32 %v2683_v29 }
 0xba3   :  { %v5839_v18 = vpop.eup %5838 }
 0xba4   :  { %v2690_v24 = vsub.f32 %v6843_v58, %v5839_v18  ;;  %v5841_v59 = vpop.eup %5840 }
 0xba6   :  { %v2691_v28 = vmul.f32 %v5841_v59, %v2690_v24 }
 0xba8   :  { %v6888_v35 = vadd.f32 %v5839_v18, %v2691_v28 }
 0xbaa   :  { %2763 = vmatmul.mubr.f32.vlgmr.msra.gmra.mrb[22].mxu0 %v6888_v35  ;;  %4490 = vmatmul.mubr.f32.vlgmr.msra.gmra.mrb[38].mxu1 %v6888_v35 }
 0xbab   :  { %5414 = vmatpush1.bf16.msra.mxu0 %v6631_v6  ;;  %5445 = vmatpush3.bf16.msra.mxu1 %v6669_v46 }
 0xbac   :  { %5416 = vmatprep.subr.bf16.mxu0 %v6635_v9  ;;  %5446 = vmatprep.subr.bf16.mxu1 %v5994_v48 }
 0xbad   :  { %2929 = vmatprep.mubr.f32.mxu0 %v5993_v0  ;;  %4524 = vmatprep.mubr.msk.f32.mxu1 %vm5995_vm1, %v5993_v0 }
 0xbaf   :  { %5418 = vmatpush1.bf16.msra.mxu0 %v6637_v16  ;;  %5448 = vmatpush3.bf16.msra.mxu1 %v6680_v2 }
 0xbb0   :  { %5420 = vmatprep.subr.bf16.mxu0 %v6641_v31  ;;  %5449 = vmatprep.subr.bf16.mxu1 %v5994_v48 }
 0xbb3   :  { %5422 = vmatpush1.bf16.msra.mxu0 %v6643_v42  ;;  %5451 = vmatpush3.bf16.msra.mxu1 %v6686_v32 }
 0xbb4   :  { %5424 = vmatprep.subr.bf16.mxu0 %v6647_v53  ;;  %5452 = vmatprep.subr.bf16.mxu1 %v5994_v48 }
 0xbb7   :  { %5426 = vmatpush1.bf16.msra.mxu0 %v6649_v63  ;;  %5454 = vmatpush3.bf16.msra.mxu1 %v6689_v17 }
 0xbb8   :  { %5428 = vmatprep.subr.bf16.mxu0 %v6653_v10  ;;  %5455 = vmatprep.subr.bf16.mxu1 %v5994_v48 }
 0xbbb   :  { %5430 = vmatpush1.bf16.msra.mxu0 %v6655_v21  ;;  %5457 = vmatpush3.bf16.msra.mxu1 %v6693_v22 }
 0xbbc   :  { %5432 = vmatprep.subr.bf16.mxu0 %v6659_v34  ;;  %5458 = vmatprep.subr.bf16.mxu1 %v5994_v48 }
 0xbbf   :  { %5434 = vmatpush1.bf16.msra.mxu0 %v6661_v20  ;;  %5460 = vmatpush3.bf16.msra.mxu1 %v6697_v40 }
 0xbc0   :  { %5436 = vmatprep.subr.bf16.mxu0 %v6664_v30  ;;  %5461 = vmatprep.subr.bf16.mxu1 %v5994_v48 }
 0xbc3   :  { %5438 = vmatpush1.bf16.msra.mxu0 %v6667_v50  ;;  %5463 = vmatpush3.bf16.msra.mxu1 %v6701_v56 }
 0xbc4   :  { %5440 = vmatprep.subr.bf16.mxu0 %v6675_v43  ;;  %5464 = vmatprep.subr.bf16.mxu1 %v5994_v48 }
 0xbc7   :  { %5442 = vmatpush1.bf16.msra.mxu0 %v6677_v60  ;;  %5466 = vmatpush3.bf16.msra.mxu1 %v6705_v8 }
 0xbc8   :  { %5468 = vmatprep.subr.bf16.mxu0 %v6629_v41  ;;  %5499 = vmatprep.subr.bf16.mxu1 %v5994_v48 }
 0xc7d   :  { %v2764_v62 = vpop.f32.mrb[22].mxu0  ;;  %v2835_v5 = vpop.f32.mrb[38].mxu1 }
 0xc7e   :  { %v5681_v38 = vadd.f32 %v2764_v62, %v6778_v51  ;;  %v2766_v7 = vpop.f32.mrb[23].mxu0  ;;  %v4491_v49 = vpop.f32.mrb[39].mxu1  ;;  %v2853_v15 = vadd.f32 %v6789_v52, %v2835_v5 }
 0xc7f   :  { %v5682_v58 = vadd.f32 %v2766_v7, %v6783_v55 }
 0xc80   :  { %v3678_v57 = vmul.f32 -1.442695, %v5681_v38 }
 0xc81   :  { %v3679_v39 = vmul.f32 -1.442695, %v5682_v58 }
 0xc82   :  { %5842 = vpow2.f32 %v3678_v57  ;;  %v2095_v57 = vadd.f32 %v6726_v4, %v6793_v47 }
 0xc83   :  { %5844 = vpow2.f32 %v3679_v39 }
 0xc8c   :  { %v5843_v12 = vpop.eup %5842 }
 0xc8d   :  { %v2843_v25 = vadd.f32 1.0, %v5843_v12  ;;  %v5845_v13 = vpop.eup %5844 }
 0xc8e   :  { %v2850_v23 = vadd.f32 1.0, %v5845_v13 }
 0xc8f   :  { %5846 = vrcp.f32 %v2843_v25 }
 0xc99   :  { %v5847_v1 = vpop.eup %5846 }
 0xc9a   :  { %v2854_v37 = vmul.f32 %v5847_v1, %v2853_v15 }
 0xc9c   :  { %v2855_v11 = vadd.f32 %v2854_v37, %v2090_v36 }
 0xc9e   :  { %5848 = vtanh.f32 %v2855_v11 }
 0xc9f   :  { %5850 = vrcp.f32 %v2850_v23 }
 0xca8   :  { %v5849_v27 = vpop.eup %5848 }
 0xca9   :  { %v2857_v61 = vsub.f32 %v6888_v35, %v5849_v27  ;;  %v5851_v3 = vpop.eup %5850 }
 0xcab   :  { %v2858_v14 = vmul.f32 %v5851_v3, %v2857_v61 }
 0xcad   :  { %v6933_v19 = vadd.f32 %v5849_v27, %v2858_v14 }
 0xcaf   :  { %2930 = vmatmul.mubr.f32.vlgmr.msra.gmra.mrb[24].mxu0 %v6933_v19  ;;  %4525 = vmatmul.mubr.f32.vlgmr.msra.gmra.mrb[40].mxu1 %v6933_v19 }
 0xcb0   :  { %5470 = vmatpush1.bf16.msra.mxu0 %v6631_v6  ;;  %5501 = vmatpush3.bf16.msra.mxu1 %v6669_v46 }
 0xcb1   :  { %5472 = vmatprep.subr.bf16.mxu0 %v6635_v9  ;;  %5502 = vmatprep.subr.bf16.mxu1 %v5994_v48 }
 0xcb2   :  { %3096 = vmatprep.mubr.f32.mxu0 %v5993_v0  ;;  %4559 = vmatprep.mubr.msk.f32.mxu1 %vm5995_vm1, %v5993_v0 }
 0xcb4   :  { %5474 = vmatpush1.bf16.msra.mxu0 %v6637_v16  ;;  %5504 = vmatpush3.bf16.msra.mxu1 %v6680_v2 }
 0xcb5   :  { %5476 = vmatprep.subr.bf16.mxu0 %v6641_v31  ;;  %5505 = vmatprep.subr.bf16.mxu1 %v5994_v48 }
 0xcb8   :  { %5478 = vmatpush1.bf16.msra.mxu0 %v6643_v42  ;;  %5507 = vmatpush3.bf16.msra.mxu1 %v6686_v32 }
 0xcb9   :  { %5480 = vmatprep.subr.bf16.mxu0 %v6647_v53  ;;  %5508 = vmatprep.subr.bf16.mxu1 %v5994_v48 }
 0xcbc   :  { %5482 = vmatpush1.bf16.msra.mxu0 %v6649_v63  ;;  %5510 = vmatpush3.bf16.msra.mxu1 %v6689_v17 }
 0xcbd   :  { %5484 = vmatprep.subr.bf16.mxu0 %v6653_v10  ;;  %5511 = vmatprep.subr.bf16.mxu1 %v5994_v48 }
 0xcc0   :  { %5486 = vmatpush1.bf16.msra.mxu0 %v6655_v21  ;;  %5513 = vmatpush3.bf16.msra.mxu1 %v6693_v22 }
 0xcc1   :  { %5488 = vmatprep.subr.bf16.mxu0 %v6659_v34  ;;  %5514 = vmatprep.subr.bf16.mxu1 %v5994_v48 }
 0xcc4   :  { %5490 = vmatpush1.bf16.msra.mxu0 %v6661_v20  ;;  %5516 = vmatpush3.bf16.msra.mxu1 %v6697_v40 }
 0xcc5   :  { %5492 = vmatprep.subr.bf16.mxu0 %v6664_v30  ;;  %5517 = vmatprep.subr.bf16.mxu1 %v5994_v48 }
 0xcc8   :  { %5494 = vmatpush1.bf16.msra.mxu0 %v6667_v50  ;;  %5519 = vmatpush3.bf16.msra.mxu1 %v6701_v56 }
 0xcc9   :  { %5496 = vmatprep.subr.bf16.mxu0 %v6675_v43  ;;  %5520 = vmatprep.subr.bf16.mxu1 %v5994_v48 }
 0xccc   :  { %5498 = vmatpush1.bf16.msra.mxu0 %v6677_v60  ;;  %5522 = vmatpush3.bf16.msra.mxu1 %v6705_v8 }
 0xccd   :  { %5524 = vmatprep.subr.bf16.mxu0 %v6629_v41  ;;  %5555 = vmatprep.subr.bf16.mxu1 %v5994_v48 }
 0xd82   :  { %v2931_v44 = vpop.f32.mrb[24].mxu0  ;;  %v3002_v26 = vpop.f32.mrb[40].mxu1 }
 0xd83   :  { %v5683_v29 = vadd.f32 %v2931_v44, %v6778_v51  ;;  %v2933_v18 = vpop.f32.mrb[25].mxu0  ;;  %v4526_v24 = vpop.f32.mrb[41].mxu1  ;;  %v3020_v7 = vadd.f32 %v6789_v52, %v3002_v26 }
 0xd84   :  { %v5684_v28 = vadd.f32 %v2933_v18, %v6783_v55  ;;  %v2100_v18 = vadd.f32 %v6724_v54, %v6793_v47  ;;  %v3531_v54 = vld [vmem:[%s7144_s9 + $0x8] sm:$0xff] }
 0xd85   :  { %v3680_v59 = vmul.f32 -1.442695, %v5683_v29 }
 0xd86   :  { %v3681_v35 = vmul.f32 -1.442695, %v5684_v28 }
 0xd87   :  { %5852 = vpow2.f32 %v3680_v59 }
 0xd88   :  { %5854 = vpow2.f32 %v3681_v35 }
 0xd91   :  { %v5853_v62 = vpop.eup %5852 }
 0xd92   :  { %v3010_v5 = vadd.f32 1.0, %v5853_v62  ;;  %v5855_v38 = vpop.eup %5854 }
 0xd93   :  { %v3017_v12 = vadd.f32 1.0, %v5855_v38 }
 0xd94   :  { %5856 = vrcp.f32 %v3010_v5 }
 0xd9e   :  { %v5857_v49 = vpop.eup %5856 }
 0xd9f   :  { %v3021_v58 = vmul.f32 %v5857_v49, %v3020_v7  ;;  %v3532_v49 = vld [vmem:[%s7144_s9 + $0x10] sm:$0xff] }
 0xda1   :  { %v3022_v39 = vadd.f32 %v3021_v58, %v2095_v57  ;;  %v3534_v58 = vld [vmem:[%s7144_s9 + $0x20] sm:$0xff] }
 0xda3   :  { %5858 = vtanh.f32 %v3022_v39  ;;  %v3535_v39 = vld [vmem:[%s7144_s9 + $0x28] sm:$0xff] }
 0xda4   :  { %5860 = vrcp.f32 %v3017_v12  ;;  %v5642_v12 = vpack.c.bf16 %v3535_v39, %v3534_v58 }
 0xdad   :  { %v5859_v25 = vpop.eup %5858 }
 0xdae   :  { %v3024_v13 = vsub.f32 %v6933_v19, %v5859_v25  ;;  %v5861_v15 = vpop.eup %5860 }
 0xdb0   :  { %v3025_v1 = vmul.f32 %v5861_v15, %v3024_v13  ;;  %v3537_v13 = vld [vmem:[%s7144_s9 + $0x38] sm:$0xff] }
 0xdb2   :  { %v6978_v36 = vadd.f32 %v5859_v25, %v3025_v1  ;;  %v3536_v25 = vld [vmem:[%s7144_s9 + $0x30] sm:$0xff]  ;;  %v3538_v1 = vld [vmem:[%s7144_s9 + $0x40] sm:$0xff] }
 0xdb3   :  { %v5645_v15 = vpack.c.bf16 %v3537_v13, %v3536_v25 }
 0xdb4   :  { %3097 = vmatmul.mubr.f32.vlgmr.msra.gmra.mrb[26].mxu0 %v6978_v36  ;;  %4560 = vmatmul.mubr.f32.vlgmr.msra.gmra.mrb[42].mxu1 %v6978_v36 }
 0xdb5   :  { %5526 = vmatpush1.bf16.msra.mxu0 %v6631_v6  ;;  %5557 = vmatpush3.bf16.msra.mxu1 %v6669_v46 }
 0xdb6   :  { %5528 = vmatprep.subr.bf16.mxu0 %v6635_v9  ;;  %5558 = vmatprep.subr.bf16.mxu1 %v5994_v48 }
 0xdb7   :  { %3263 = vmatprep.mubr.f32.mxu0 %v5993_v0  ;;  %4594 = vmatprep.mubr.msk.f32.mxu1 %vm5995_vm1, %v5993_v0 }
 0xdb9   :  { %5530 = vmatpush1.bf16.msra.mxu0 %v6637_v16  ;;  %5560 = vmatpush3.bf16.msra.mxu1 %v6680_v2 }
 0xdba   :  { %5532 = vmatprep.subr.bf16.mxu0 %v6641_v31  ;;  %5561 = vmatprep.subr.bf16.mxu1 %v5994_v48 }
 0xdbd   :  { %5534 = vmatpush1.bf16.msra.mxu0 %v6643_v42  ;;  %5563 = vmatpush3.bf16.msra.mxu1 %v6686_v32 }
 0xdbe   :  { %5536 = vmatprep.subr.bf16.mxu0 %v6647_v53  ;;  %5564 = vmatprep.subr.bf16.mxu1 %v5994_v48 }
 0xdc1   :  { %5538 = vmatpush1.bf16.msra.mxu0 %v6649_v63  ;;  %5566 = vmatpush3.bf16.msra.mxu1 %v6689_v17 }
 0xdc2   :  { %5540 = vmatprep.subr.bf16.mxu0 %v6653_v10  ;;  %5567 = vmatprep.subr.bf16.mxu1 %v5994_v48 }
 0xdc5   :  { %5542 = vmatpush1.bf16.msra.mxu0 %v6655_v21  ;;  %5569 = vmatpush3.bf16.msra.mxu1 %v6693_v22 }
 0xdc6   :  { %5544 = vmatprep.subr.bf16.mxu0 %v6659_v34  ;;  %5570 = vmatprep.subr.bf16.mxu1 %v5994_v48 }
 0xdc9   :  { %5546 = vmatpush1.bf16.msra.mxu0 %v6661_v20  ;;  %5572 = vmatpush3.bf16.msra.mxu1 %v6697_v40 }
 0xdca   :  { %5548 = vmatprep.subr.bf16.mxu0 %v6664_v30  ;;  %5573 = vmatprep.subr.bf16.mxu1 %v5994_v48 }
 0xdcd   :  { %5550 = vmatpush1.bf16.msra.mxu0 %v6667_v50  ;;  %5575 = vmatpush3.bf16.msra.mxu1 %v6701_v56 }
 0xdce   :  { %5552 = vmatprep.subr.bf16.mxu0 %v6675_v43  ;;  %5576 = vmatprep.subr.bf16.mxu1 %v5994_v48 }
 0xdd1   :  { %5554 = vmatpush1.bf16.msra.mxu0 %v6677_v60  ;;  %5578 = vmatpush3.bf16.msra.mxu1 %v6705_v8 }
 0xdd2   :  { %5580 = vmatprep.subr.bf16.mxu0 %v6629_v41  ;;  %5611 = vmatprep.subr.bf16.mxu1 %v5994_v48 }
 0xe87   :  { %v3098_v4 = vpop.f32.mrb[26].mxu0  ;;  %v3169_v37 = vpop.f32.mrb[42].mxu1 }
 0xe88   :  { %v5685_v11 = vadd.f32 %v3098_v4, %v6778_v51  ;;  %v3100_v23 = vpop.f32.mrb[27].mxu0  ;;  %v4561_v27 = vpop.f32.mrb[43].mxu1  ;;  %v3187_v41 = vadd.f32 %v6789_v52, %v3169_v37  ;;  %v3540_v4 = vld [vmem:[%s7144_s9 + $0x50] sm:$0xff] }
 0xe89   :  { %v5686_v3 = vadd.f32 %v3100_v23, %v6783_v55  ;;  %v3542_v27 = vld [vmem:[%s7144_s9 + $0x60] sm:$0xff] }
 0xe8a   :  { %v3682_v61 = vmul.f32 -1.442695, %v5685_v11  ;;  %v3541_v11 = vld [vmem:[%s7144_s9 + $0x58] sm:$0xff] }
 0xe8b   :  { %v3683_v14 = vmul.f32 -1.442695, %v5686_v3  ;;  %v5651_v23 = vpack.c.bf16 %v3541_v11, %v3540_v4 }
 0xe8c   :  { %5862 = vpow2.f32 %v3682_v61  ;;  %v3543_v61 = vld [vmem:[%s7144_s9 + $0x68] sm:$0xff] }
 0xe8d   :  { %5864 = vpow2.f32 %v3683_v14  ;;  %v5654_v3 = vpack.c.bf16 %v3543_v61, %v3542_v27  ;;  %v3544_v14 = vld [vmem:[%s7144_s9 + $0x70] sm:$0xff] }
 0xe96   :  { %v5863_v19 = vpop.eup %5862 }
 0xe97   :  { %v3177_v44 = vadd.f32 1.0, %v5863_v19  ;;  %v5865_v26 = vpop.eup %5864  ;;  %v3545_v19 = vld [vmem:[%s7144_s9 + $0x78] sm:$0xff] }
 0xe98   :  { %v3184_v28 = vadd.f32 1.0, %v5865_v26 }
 0xe99   :  { %5866 = vrcp.f32 %v3177_v44  ;;  %v5657_v44 = vpack.c.bf16 %v3545_v19, %v3544_v14 }
 0xea3   :  { %v5867_v29 = vpop.eup %5866 }
 0xea4   :  { %v3188_v24 = vmul.f32 %v5867_v29, %v3187_v41 }
 0xea6   :  { %v3189_v59 = vadd.f32 %v3188_v24, %v2100_v18 }
 0xea8   :  { %5868 = vtanh.f32 %v3189_v59 }
 0xea9   :  { %5870 = vrcp.f32 %v3184_v28 }
 0xeb2   :  { %v5869_v35 = vpop.eup %5868 }
 0xeb3   :  { %v3191_v62 = vsub.f32 %v6978_v36, %v5869_v35  ;;  %v5871_v5 = vpop.eup %5870  ;;  %v3539_v36 = vld [vmem:[%s7144_s9 + $0x48] sm:$0xff] }
 0xeb4   :  { %v5648_v37 = vpack.c.bf16 %v3539_v36, %v3538_v1 }
 0xeb5   :  { %v3192_v38 = vmul.f32 %v5871_v5, %v3191_v62 }
 0xeb7   :  { %v3193_v7 = vadd.f32 %v5869_v35, %v3192_v38 }
 0xeb9   :  { %3264 = vmatmul.mubr.f32.vlgmr.msra.gmra.mrb[28].mxu0 %v3193_v7  ;;  %4595 = vmatmul.mubr.f32.vlgmr.msra.gmra.mrb[44].mxu1 %v3193_v7 }
 0xeba   :  { %5582 = vmatpush1.bf16.msra.mxu0 %v6631_v6  ;;  %5613 = vmatpush3.bf16.msra.mxu1 %v6669_v46  ;;  %v2105_v46 = vadd.f32 %v6774_v45, %v6793_v47 }
 0xebb   :  { %5584 = vmatprep.subr.bf16.mxu0 %v6635_v9  ;;  %5614 = vmatprep.subr.bf16.mxu1 %v5994_v48 }
 0xebc   :  { %3430 = vmatprep.mubr.f32.mxu0 %v5993_v0  ;;  %4629 = vmatprep.mubr.msk.f32.mxu1 %vm5995_vm1, %v5993_v0 }
 0xebe   :  { %5586 = vmatpush1.bf16.msra.mxu0 %v6637_v16  ;;  %5616 = vmatpush3.bf16.msra.mxu1 %v6680_v2 }
 0xebf   :  { %5588 = vmatprep.subr.bf16.mxu0 %v6641_v31  ;;  %5617 = vmatprep.subr.bf16.mxu1 %v5994_v48 }
 0xec2   :  { %5590 = vmatpush1.bf16.msra.mxu0 %v6643_v42  ;;  %5619 = vmatpush3.bf16.msra.mxu1 %v6686_v32 }
 0xec3   :  { %5592 = vmatprep.subr.bf16.mxu0 %v6647_v53  ;;  %5620 = vmatprep.subr.bf16.mxu1 %v5994_v48 }
 0xec6   :  { %5594 = vmatpush1.bf16.msra.mxu0 %v6649_v63  ;;  %5622 = vmatpush3.bf16.msra.mxu1 %v6689_v17 }
 0xec7   :  { %5596 = vmatprep.subr.bf16.mxu0 %v6653_v10  ;;  %5623 = vmatprep.subr.bf16.mxu1 %v5994_v48 }
 0xeca   :  { %5598 = vmatpush1.bf16.msra.mxu0 %v6655_v21  ;;  %5625 = vmatpush3.bf16.msra.mxu1 %v6693_v22 }
 0xecb   :  { %5600 = vmatprep.subr.bf16.mxu0 %v6659_v34  ;;  %5626 = vmatprep.subr.bf16.mxu1 %v5994_v48 }
 0xece   :  { %5602 = vmatpush1.bf16.msra.mxu0 %v6661_v20  ;;  %5628 = vmatpush3.bf16.msra.mxu1 %v6697_v40 }
 0xecf   :  { %5604 = vmatprep.subr.bf16.mxu0 %v6664_v30  ;;  %5629 = vmatprep.subr.bf16.mxu1 %v5994_v48 }
 0xed2   :  { %5606 = vmatpush1.bf16.msra.mxu0 %v6667_v50  ;;  %5631 = vmatpush3.bf16.msra.mxu1 %v6701_v56 }
 0xed3   :  { %5608 = vmatprep.subr.bf16.mxu0 %v6675_v43  ;;  %5632 = vmatprep.subr.bf16.mxu1 %v5994_v48 }
 0xed6   :  { %5610 = vmatpush1.bf16.msra.mxu0 %v6677_v60  ;;  %5634 = vmatpush3.bf16.msra.mxu1 %v6705_v8  ;;  %v3530_v8 = vld [vmem:[%s7144_s9] sm:$0xff] }
 0xed7   :  { %5635 = vmatprep.subr.bf16.mxu0 %v5994_v48  ;;  %v5636_v45 = vpack.c.bf16 %v3531_v54, %v3530_v8 }
 0xf8c   :  { %v3265_v6 = vpop.f32.mrb[28].mxu0  ;;  %v3336_v9 = vpop.f32.mrb[44].mxu1 }
 0xf8d   :  { %v5687_v16 = vadd.f32 %v3265_v6, %v6778_v51  ;;  %v3267_v31 = vpop.f32.mrb[29].mxu0  ;;  %v4596_v42 = vpop.f32.mrb[45].mxu1  ;;  %v3354_v30 = vadd.f32 %v6789_v52, %v3336_v9  ;;  %v2110_v6 = vadd.f32 %v6772_v33, %v6793_v47 }
 0xf8e   :  { %v5688_v63 = vadd.f32 %v3267_v31, %v6783_v55 }
 0xf8f   :  { %v3684_v53 = vmul.f32 -1.442695, %v5687_v16 }
 0xf90   :  { %v3685_v10 = vmul.f32 -1.442695, %v5688_v63 }
 0xf91   :  { %5872 = vpow2.f32 %v3684_v53 }
 0xf92   :  { %5874 = vpow2.f32 %v3685_v10 }
 0xf9b   :  { %v5873_v21 = vpop.eup %5872 }
 0xf9c   :  { %v3344_v34 = vadd.f32 1.0, %v5873_v21  ;;  %v5875_v20 = vpop.eup %5874 }
 0xf9d   :  { %v3351_v2 = vadd.f32 1.0, %v5875_v20 }
 0xf9e   :  { %5876 = vrcp.f32 %v3344_v34 }
 0xfa8   :  { %v5877_v50 = vpop.eup %5876 }
 0xfa9   :  { %v3355_v43 = vmul.f32 %v5877_v50, %v3354_v30 }
 0xfab   :  { %v3356_v60 = vadd.f32 %v3355_v43, %v2105_v46 }
 0xfad   :  { %5878 = vtanh.f32 %v3356_v60 }
 0xfae   :  { %5880 = vrcp.f32 %v3351_v2 }
 0xfb7   :  { %v5879_v32 = vpop.eup %5878 }
 0xfb8   :  { %v3358_v17 = vsub.f32 %v3193_v7, %v5879_v32  ;;  %v5881_v22 = vpop.eup %5880 }
 0xfba   :  { %v3359_v40 = vmul.f32 %v5881_v22, %v3358_v17 }
 0xfbc   :  { %v7062_v56 = vadd.f32 %v5879_v32, %v3359_v40 }
 0xfbe   :  { %3431 = vmatmul.mubr.f32.vlgmr.msra.gmra.mrb[30].mxu0 %v7062_v56  ;;  %4630 = vmatmul.mubr.f32.vlgmr.msra.gmra.mrb[46].mxu1 %v7062_v56 }
 0xfbf   :  { %4664 = vmatprep.mubr.msk.f32.mxu0 %vm5995_vm1, %v5993_v0  ;;  %5637 = vmatpush3.bf16.msra.mxu0 %v5636_v45  ;;  %v3533_v0 = vld [vmem:[%s7144_s9 + $0x18] sm:$0xff] }
 0xfc0   :  { %5638 = vmatprep.subr.bf16.mxu0 %v5994_v48  ;;  %v5639_v57 = vpack.c.bf16 %v3533_v0, %v3532_v49 }
 0xfc3   :  { %5640 = vmatpush3.bf16.msra.mxu0 %v5639_v57 }
 0xfc4   :  { %5641 = vmatprep.subr.bf16.mxu0 %v5994_v48 }
 0xfc7   :  { %5643 = vmatpush3.bf16.msra.mxu0 %v5642_v12 }
 0xfc8   :  { %5644 = vmatprep.subr.bf16.mxu0 %v5994_v48 }
 0xfcb   :  { %5646 = vmatpush3.bf16.msra.mxu0 %v5645_v15 }
 0xfcc   :  { %5647 = vmatprep.subr.bf16.mxu0 %v5994_v48 }
 0xfcf   :  { %5649 = vmatpush3.bf16.msra.mxu0 %v5648_v37 }
 0xfd0   :  { %5650 = vmatprep.subr.bf16.mxu0 %v5994_v48 }
 0xfd3   :  { %5652 = vmatpush3.bf16.msra.mxu0 %v5651_v23 }
 0xfd4   :  { %5653 = vmatprep.subr.bf16.mxu0 %v5994_v48 }
 0xfd7   :  { %5655 = vmatpush3.bf16.msra.mxu0 %v5654_v3 }
 0xfd8   :  { %5656 = vmatprep.subr.bf16.mxu0 %v5994_v48 }
 0xfdb   :  { %5658 = vmatpush3.bf16.msra.mxu0 %v5657_v44 }
0x1091   :  { %v3432_v26 = vpop.f32.mrb[30].mxu0  ;;  %v3503_v41 = vpop.f32.mrb[46].mxu1 }
0x1092   :  { %v5689_v29 = vadd.f32 %v3432_v26, %v6778_v51  ;;  %v3434_v18 = vpop.f32.mrb[31].mxu0  ;;  %v4631_v24 = vpop.f32.mrb[47].mxu1  ;;  %v3521_v7 = vadd.f32 %v6789_v52, %v3503_v41  ;;  %v3688_v52 = vld [vmem:[%s7145_s10] ss:$0 sm:$0xff] }
0x1093   :  { %v5690_v28 = vadd.f32 %v3434_v18, %v6783_v55 }
0x1094   :  { %v3686_v59 = vmul.f32 -1.442695, %v5689_v29 }
0x1095   :  { %v3687_v35 = vmul.f32 -1.442695, %v5690_v28 }
0x1096   :  { %5882 = vpow2.f32 %v3686_v59 }
0x1097   :  { %5884 = vpow2.f32 %v3687_v35 }
0x10a0   :  { %v5883_v62 = vpop.eup %5882 }
0x10a1   :  { %v3511_v5 = vadd.f32 1.0, %v5883_v62  ;;  %v5885_v38 = vpop.eup %5884 }
0x10a2   :  { %v3518_v16 = vadd.f32 1.0, %v5885_v38 }
0x10a3   :  { %5886 = vrcp.f32 %v3511_v5 }
0x10ad   :  { %v5887_v48 = vpop.eup %5886 }
0x10ae   :  { %v3522_v9 = vmul.f32 %v5887_v48, %v3521_v7 }
0x10b0   :  { %v3523_v51 = vadd.f32 %v3522_v9, %v2110_v6 }
0x10b2   :  { %5888 = vtanh.f32 %v3523_v51 }
0x10b3   :  { %5890 = vrcp.f32 %v3518_v16 }
0x10bc   :  { %v5889_v31 = vpop.eup %5888 }
0x10bd   :  { %v3525_v55 = vsub.f32 %v7062_v56, %v5889_v31  ;;  %v5891_v42 = vpop.eup %5890 }
0x10bf   :  { %v3526_v53 = vmul.f32 %v5891_v42, %v3525_v55 }
0x10c1   :  { %v3527_v63 = vadd.f32 %v5889_v31, %v3526_v53 }
0x10c3   :  { %4665 = vmatmul.mubr.f32.vlgmr.msra.gmra.mrb[32].mxu0 %v3527_v63 }
0x1196   :  { %v3619_v10 = vpop.f32.mrb[32].mxu0 }
0x1197   :  { %v3620_v21 = vadd.f32 %v3688_v52, %v3619_v10  ;;  %v4666_v34 = vpop.f32.mrb[33].mxu0 }
0x1199   :  { %3623 = vst [vmem:[%s7146_s11] sm:$0xff] %v3620_v21 }
0x119a   :  { %3628 = vsyncpa [#allocation6], 1 }
0x119b   :  { %3629 = vsyncpa [#allocation8], 1 }
0x119c   :  { %3630 = vsyncpa [#allocation11], 1 }

</bundles_post_ra>
